<compile_context>
chip_gen: v7x
topology: tpu7x:2x2x1
jax: 0.10.0
libtpu: 0.0.40
codegen_flags: <defaults>
</compile_context>

<pallas_src>
import numpy as np
import jax
import jax.numpy as jnp
from jax.experimental import pallas as pl
from jax.experimental.pallas import tpu as pltpu

D = 192            # d_model, fixed by the module
NHEAD = 3
HD = D // NHEAD    # 64
EPS = 1e-5
NUM_LAYERS = 2

# ---- square-weight slab (NSQ, D, D), bf16 -----------------------------------
SQ_OUT = lambda l: 3 * l          # attention out-projection W.T of layer l
SQ_FF1 = lambda l: 3 * l + 1      # linear1.T of layer l
SQ_FF2 = lambda l: 3 * l + 2      # linear2.T of layer l
SQ_GA = 3 * NUM_LAYERS
SQ_GB = SQ_GA + 1
SQ_RHO = SQ_GB + 1
SQ_CLS = SQ_RHO + 1               # classifier W.T zero-padded to (D, D)
NSQ = SQ_CLS + 1

# ---- bias / LN slab (NB, D), f32 --------------------------------------------
B_PHI = 0
B_OUT = 1
B_LN1W = B_OUT + NUM_LAYERS
B_LN1B = B_LN1W + NUM_LAYERS
B_FF1 = B_LN1B + NUM_LAYERS
B_FF2 = B_FF1 + NUM_LAYERS
B_LN2W = B_FF2 + NUM_LAYERS
B_LN2B = B_LN2W + NUM_LAYERS
B_GA = B_LN2B + NUM_LAYERS
B_GB = B_GA + 1
B_GC = B_GB + 1
B_WC = B_GC + 1                   # attention_c weight row (1, D)
B_RHO = B_WC + 1
B_CLS = B_RHO + 1                 # classifier bias zero-padded to D
NB = B_CLS + 1


def _layernorm(x, w, b):
    mu = jnp.mean(x, axis=-1, keepdims=True)
    xc = x - mu
    var = jnp.mean(xc * xc, axis=-1, keepdims=True)
    return xc * jax.lax.rsqrt(var + EPS) * w + b


# ----------------------------- Pallas kernel --------------------------------
def transformer_mil_kernel(feat_ref, phi_w_ref, wqkv_ref, qkvb_ref, wsq_ref,
                           b_ref, out_ref):
    f32 = jnp.float32
    bf16 = jnp.bfloat16

    def mm(a, b):
        # bf16 MXU inputs, f32 accumulation.
        return jnp.dot(a.astype(bf16), b.astype(bf16),
                       preferred_element_type=f32)

    def mm_t(a, b):
        # a @ b.T, contracting last dims of both operands (no XLU transpose).
        return jax.lax.dot_general(a.astype(bf16), b.astype(bf16),
                                   (((1,), (1,)), ((), ())),
                                   preferred_element_type=f32)

    def ln(x, w, b):
        mu = jnp.mean(x, axis=-1, keepdims=True)
        xc = x - mu
        var = jnp.mean(xc * xc, axis=-1, keepdims=True)
        return xc * jax.lax.rsqrt(var + EPS) * w + b

    def softmax_last(x):
        x = x - jnp.max(x, axis=-1, keepdims=True)
        e = jnp.exp(x)
        return e * pl.reciprocal(jnp.sum(e, axis=-1, keepdims=True), approx=True)

    def brow(i):
        return b_ref[i:i + 1, :]                                   # (1, D) f32

    # phi: Linear -> ReLU (Dropout = identity at inference)
    x = feat_ref[...]                                              # (N, F) f32
    x = jnp.maximum(mm(x, phi_w_ref[...]) + brow(B_PHI), 0.0)      # (N, D) f32

    # 2 post-norm TransformerEncoder layers (nhead=3, dim_feedforward=192, relu)
    for l in range(NUM_LAYERS):
        # fused Q/K/V: one lane-dense (N, 576) matmul; Q already scaled.
        qkv = mm(x, wqkv_ref[l]) + qkvb_ref[l:l + 1, :]            # (N, 3D) f32
        heads = []
        for h in range(NHEAD):
            q = qkv[:, h * HD:(h + 1) * HD]                        # (N, HD)
            k = qkv[:, D + h * HD:D + (h + 1) * HD]
            v = qkv[:, 2 * D + h * HD:2 * D + (h + 1) * HD]
            s = mm_t(q, k)                                         # (N, N) f32
            p = softmax_last(s)
            heads.append(mm(p, v))                                 # (N, HD) f32
        o_cat = jnp.concatenate(heads, axis=-1)                    # (N, D)
        attn = mm(o_cat, wsq_ref[SQ_OUT(l)]) + brow(B_OUT + l)     # (N, D)
        x = ln(x + attn, brow(B_LN1W + l), brow(B_LN1B + l))
        ff = jnp.maximum(mm(x, wsq_ref[SQ_FF1(l)]) + brow(B_FF1 + l), 0.0)
        ff = mm(ff, wsq_ref[SQ_FF2(l)]) + brow(B_FF2 + l)
        x = ln(x + ff, brow(B_LN2W + l), brow(B_LN2B + l))

    # Gated attention pooling
    a = jnp.tanh(mm(x, wsq_ref[SQ_GA]) + brow(B_GA))
    g = jax.nn.sigmoid(mm(x, wsq_ref[SQ_GB]) + brow(B_GB))
    # (1, N) attention logits computed directly (no (N,1) -> transpose);
    # the scalar gc bias cancels in softmax but is kept for literal semantics.
    att = mm_t(brow(B_WC), a * g) + brow(B_GC)[:, :1]              # (1, N)
    w_att = softmax_last(att)
    pooled = mm(w_att, x)                                          # (1, D)

    # rho -> classifier (weights/bias zero-padded to D cols -> lane-dense store)
    hrep = jnp.maximum(mm(pooled, wsq_ref[SQ_RHO]) + brow(B_RHO), 0.0)
    out_ref[...] = mm(hrep, wsq_ref[SQ_CLS]) + brow(B_CLS)         # (1, D)


# --------------------------- parameter handling ------------------------------
def init_params(key, in_features, out_features):
    """Deterministic synthetic parameters in PyTorch (out, in) layout."""
    keys = iter(jax.random.split(key, 64))

    def w(shape, scale=0.05):
        return (scale * jax.random.normal(next(keys), shape)).astype(jnp.float32)

    p = {}
    p["phi_w"] = w((D, in_features)); p["phi_b"] = w((D,), 0.01)
    for name, shape in [("in_w", (3 * D, D)), ("out_w", (D, D)),
                        ("l1_w", (D, D)), ("l2_w", (D, D))]:
        p[name] = jnp.stack([w(shape) for _ in range(NUM_LAYERS)])
    for name, dim in [("in_b", 3 * D), ("out_b", D), ("l1_b", D), ("l2_b", D)]:
        p[name] = jnp.stack([w((dim,), 0.01) for _ in range(NUM_LAYERS)])
    for name in ["n1_w", "n2_w"]:
        p[name] = jnp.ones((NUM_LAYERS, D), jnp.float32)
    for name in ["n1_b", "n2_b"]:
        p[name] = jnp.zeros((NUM_LAYERS, D), jnp.float32)
    p["ga_w"] = w((D, D)); p["ga_b"] = w((D,), 0.01)
    p["gb_w"] = w((D, D)); p["gb_b"] = w((D,), 0.01)
    p["gc_w"] = w((1, D)); p["gc_b"] = w((1,), 0.01)
    p["rho_w"] = w((D, D)); p["rho_b"] = w((D,), 0.01)
    p["cls_w"] = w((out_features, D)); p["cls_b"] = w((out_features,), 0.01)
    return p


def pack_params(p, out_features):
    """Pack PyTorch-layout params into 5 slabs. Call ONCE at model-load time."""
    bf16 = jnp.bfloat16
    scale = jnp.float32(1.0 / np.sqrt(HD))                         # 0.125 exact
    scale_cols = jnp.concatenate(
        [jnp.full((D,), scale, jnp.float32), jnp.ones((2 * D,), jnp.float32)])

    # fused QKV weight (L, D, 3D) bf16 with Q columns pre-scaled, + (L, 3D) bias
    wqkv, qkv_b = [], []
    for l in range(NUM_LAYERS):
        wqkv.append(p["in_w"][l].T * scale_cols)                   # (D, 3D)
        qkv_b.append(p["in_b"][l] * scale_cols)                    # (3D,)
    wqkv = jnp.stack(wqkv).astype(bf16)
    qkv_b = jnp.stack(qkv_b).astype(jnp.float32)

    # square weights (NSQ, D, D) bf16
    sq = []
    for l in range(NUM_LAYERS):
        sq.append(p["out_w"][l].T)
        sq.append(p["l1_w"][l].T)
        sq.append(p["l2_w"][l].T)
    sq += [p["ga_w"].T, p["gb_w"].T, p["rho_w"].T]
    sq.append(jnp.pad(p["cls_w"].T, ((0, 0), (0, D - out_features))))
    assert len(sq) == NSQ
    w_square = jnp.stack(sq).astype(bf16)

    # bias / LN slab (NB, D) f32, short vectors zero-padded to D
    def row(v):
        v = jnp.asarray(v, jnp.float32).reshape(-1)
        return jnp.pad(v, (0, D - v.shape[0]))

    rows = [row(p["phi_b"])]
    rows += [row(p["out_b"][l]) for l in range(NUM_LAYERS)]
    rows += [row(p["n1_w"][l]) for l in range(NUM_LAYERS)]
    rows += [row(p["n1_b"][l]) for l in range(NUM_LAYERS)]
    rows += [row(p["l1_b"][l]) for l in range(NUM_LAYERS)]
    rows += [row(p["l2_b"][l]) for l in range(NUM_LAYERS)]
    rows += [row(p["n2_w"][l]) for l in range(NUM_LAYERS)]
    rows += [row(p["n2_b"][l]) for l in range(NUM_LAYERS)]
    rows += [row(p["ga_b"]), row(p["gb_b"]), row(p["gc_b"]),
             row(p["gc_w"]), row(p["rho_b"]), row(p["cls_b"])]
    assert len(rows) == NB
    bias_slab = jnp.stack(rows)                                    # (NB, D) f32

    phi_w = p["phi_w"].T.astype(bf16)                              # (F, D) bf16
    return phi_w, wqkv, qkv_b, w_square, bias_slab


def make_transformer_forward(out_features):
    """Returns a jitted forward(features, slabs) -> (1, out_features) logits."""
    vmem = pl.BlockSpec(memory_space=pltpu.MemorySpace.VMEM)
    call = pl.pallas_call(
        transformer_mil_kernel,
        out_shape=jax.ShapeDtypeStruct((1, D), jnp.float32),
        in_specs=[vmem] * 6,
        out_specs=vmem,
    )

    @jax.jit
    def forward(features, slabs):
        feat2d = jnp.squeeze(features, axis=0).astype(jnp.float32)  # (N, F)
        phi_w, wqkv, qkv_b, w_square, bias_slab = slabs
        out = call(feat2d, phi_w, wqkv, qkv_b, w_square, bias_slab)
        return out[:, :out_features]

    return forward


# ------------------------------ JAX reference --------------------------------
def reference_forward(features, p):
    """Pure-JAX reference mirroring the PyTorch forward (eval mode)."""
    hi = jax.lax.Precision.HIGHEST
    x = jnp.squeeze(features, axis=0).astype(jnp.float32)
    x = jnp.maximum(x @ p["phi_w"].T + p["phi_b"], 0.0)
    scale = 1.0 / (HD ** 0.5)
    for l in range(NUM_LAYERS):
        qkv = jnp.dot(x, p["in_w"][l].T, precision=hi) + p["in_b"][l]
        heads = []
        for h in range(NHEAD):
            q = qkv[:, h * HD:(h + 1) * HD]
            k = qkv[:, D + h * HD:D + (h + 1) * HD]
            v = qkv[:, 2 * D + h * HD:2 * D + (h + 1) * HD]
            s = jnp.dot(q, k.T, precision=hi) * scale
            heads.append(jnp.dot(jax.nn.softmax(s, axis=-1), v, precision=hi))
        attn = jnp.concatenate(heads, axis=-1)
        attn = jnp.dot(attn, p["out_w"][l].T, precision=hi) + p["out_b"][l]
        x = _layernorm(x + attn, p["n1_w"][l], p["n1_b"][l])
        ff = jnp.maximum(jnp.dot(x, p["l1_w"][l].T, precision=hi) + p["l1_b"][l], 0.0)
        ff = jnp.dot(ff, p["l2_w"][l].T, precision=hi) + p["l2_b"][l]
        x = _layernorm(x + ff, p["n2_w"][l], p["n2_b"][l])
    a = jnp.tanh(jnp.dot(x, p["ga_w"].T, precision=hi) + p["ga_b"])
    b = jax.nn.sigmoid(jnp.dot(x, p["gb_w"].T, precision=hi) + p["gb_b"])
    att = jnp.dot(a * b, p["gc_w"].T, precision=hi) + p["gc_b"]          # (N, 1)
    w_att = jax.nn.softmax(att.T, axis=1)                                # (1, N)
    mm = jnp.dot(w_att, x, precision=hi)                                 # (1, D)
    h = jnp.maximum(jnp.dot(mm, p["rho_w"].T, precision=hi) + p["rho_b"], 0.0)
    return jnp.dot(h, p["cls_w"].T, precision=hi) + p["cls_b"]


if __name__ == "__main__":
    IN_FEATURES = 32
    OUT_FEATURES = 4
    N_TILES = 8

    key = jax.random.PRNGKey(0)
    k_feat, k_param = jax.random.split(key)
    features = jax.random.normal(k_feat, (1, N_TILES, IN_FEATURES), dtype=jnp.float32)
    params = init_params(k_param, IN_FEATURES, OUT_FEATURES)

    # Pack once (model-load time); the jitted forward only consumes the slabs.
    slabs = jax.block_until_ready(pack_params(params, OUT_FEATURES))
    forward = make_transformer_forward(OUT_FEATURES)

    logits = jax.block_until_ready(forward(features, slabs))

    ref = jax.block_until_ready(reference_forward(features, params))
    if not np.allclose(np.asarray(logits), np.asarray(ref), rtol=5e-2, atol=5e-2):
        raise AssertionError(
            f"mismatch: pallas={np.asarray(logits)} ref={np.asarray(ref)}")

    print("KERNEL_OK")
</pallas_src>

<mosaic_0001>
module attributes {stable_mosaic.version = 11 : i64} {
  func.func @transformer_mil_kernel(%arg0: memref<8x32xf32, #tpu.memory_space<vmem>>, %arg1: memref<32x192xbf16, #tpu.memory_space<vmem>>, %arg2: memref<2x192x576xbf16, #tpu.memory_space<vmem>>, %arg3: memref<2x576xf32, #tpu.memory_space<vmem>>, %arg4: memref<10x192x192xbf16, #tpu.memory_space<vmem>>, %arg5: memref<21x192xf32, #tpu.memory_space<vmem>>, %arg6: memref<1x192xf32, #tpu.memory_space<vmem>>) attributes {dimension_semantics = [], scalar_prefetch = 0 : i64, scratch_operands = 0 : i64, tpu.core_type = #tpu.core_type<tc>} {
    %c0 = arith.constant 0 : index
    %c0_0 = arith.constant 0 : index
    %0 = vector.load %arg0[%c0, %c0_0] : memref<8x32xf32, #tpu.memory_space<vmem>>, vector<8x32xf32>
    %c0_1 = arith.constant 0 : index
    %c0_2 = arith.constant 0 : index
    %1 = vector.load %arg1[%c0_1, %c0_2] : memref<32x192xbf16, #tpu.memory_space<vmem>>, vector<32x192xbf16>
    %2 = arith.truncf %0 : vector<8x32xf32> to vector<8x32xbf16>
    %cst = arith.constant dense<0.000000e+00> : vector<8x192xf32>
    %3 = tpu.matmul %2, %1, %cst {dimension_numbers = #tpu.dot_dimension_numbers<[1], [0], [0], [1], [0, 0, 1, 1], [], []>} : vector<8x32xbf16>, vector<32x192xbf16>, vector<8x192xf32> -> vector<8x192xf32>
    %c0_3 = arith.constant 0 : index
    %c0_4 = arith.constant 0 : index
    %4 = vector.load %arg5[%c0_3, %c0_4] : memref<21x192xf32, #tpu.memory_space<vmem>>, vector<1x192xf32>
    %5 = vector.broadcast %4 : vector<1x192xf32> to vector<8x192xf32>
    %6 = arith.addf %3, %5 : vector<8x192xf32>
    %cst_5 = arith.constant 0.000000e+00 : f32
    %7 = vector.broadcast %cst_5 : f32 to vector<8x192xf32>
    %8 = arith.maximumf %6, %7 : vector<8x192xf32>
    %c0_6 = arith.constant 0 : index
    %c0_7 = arith.constant 0 : index
    %c0_8 = arith.constant 0 : index
    %9 = vector.load %arg2[%c0_6, %c0_7, %c0_8] : memref<2x192x576xbf16, #tpu.memory_space<vmem>>, vector<1x192x576xbf16>
    %10 = vector.shape_cast %9 : vector<1x192x576xbf16> to vector<192x576xbf16>
    %11 = arith.truncf %8 : vector<8x192xf32> to vector<8x192xbf16>
    %cst_9 = arith.constant dense<0.000000e+00> : vector<8x576xf32>
    %12 = tpu.matmul %11, %10, %cst_9 {dimension_numbers = #tpu.dot_dimension_numbers<[1], [0], [0], [1], [0, 0, 1, 1], [], []>} : vector<8x192xbf16>, vector<192x576xbf16>, vector<8x576xf32> -> vector<8x576xf32>
    %c0_10 = arith.constant 0 : index
    %c0_11 = arith.constant 0 : index
    %13 = vector.load %arg3[%c0_10, %c0_11] : memref<2x576xf32, #tpu.memory_space<vmem>>, vector<1x576xf32>
    %14 = vector.broadcast %13 : vector<1x576xf32> to vector<8x576xf32>
    %15 = arith.addf %12, %14 : vector<8x576xf32>
    %16 = vector.extract_strided_slice %15 {offsets = [0, 0], sizes = [8, 64], strides = [1, 1]} : vector<8x576xf32> to vector<8x64xf32>
    %17 = vector.extract_strided_slice %15 {offsets = [0, 192], sizes = [8, 64], strides = [1, 1]} : vector<8x576xf32> to vector<8x64xf32>
    %18 = vector.extract_strided_slice %15 {offsets = [0, 384], sizes = [8, 64], strides = [1, 1]} : vector<8x576xf32> to vector<8x64xf32>
    %19 = arith.truncf %16 : vector<8x64xf32> to vector<8x64xbf16>
    %20 = arith.truncf %17 : vector<8x64xf32> to vector<8x64xbf16>
    %cst_12 = arith.constant dense<0.000000e+00> : vector<8x8xf32>
    %21 = tpu.matmul %19, %20, %cst_12 {dimension_numbers = #tpu.dot_dimension_numbers<[1], [1], [0], [0], [0, 0, 1, 0], [], []>} : vector<8x64xbf16>, vector<8x64xbf16>, vector<8x8xf32> -> vector<8x8xf32>
    %cst_13 = arith.constant dense<0xFF800000> : vector<8xf32>
    %22 = vector.multi_reduction <maximumf>, %21, %cst_13 [1] : vector<8x8xf32> to vector<8xf32>
    %23 = vector.shape_cast %22 : vector<8xf32> to vector<8x1xf32>
    %24 = vector.broadcast %23 : vector<8x1xf32> to vector<8x8xf32>
    %25 = arith.subf %21, %24 : vector<8x8xf32>
    %26 = math.exp %25 : vector<8x8xf32>
    %cst_14 = arith.constant dense<0.000000e+00> : vector<8xf32>
    %27 = vector.multi_reduction <add>, %26, %cst_14 [1] : vector<8x8xf32> to vector<8xf32>
    %28 = vector.shape_cast %27 : vector<8xf32> to vector<8x1xf32>
    %29 = tpu.reciprocal %28 {approx = true} : vector<8x1xf32> -> vector<8x1xf32>
    %30 = vector.broadcast %29 : vector<8x1xf32> to vector<8x8xf32>
    %31 = arith.mulf %26, %30 : vector<8x8xf32>
    %32 = arith.truncf %31 : vector<8x8xf32> to vector<8x8xbf16>
    %33 = arith.truncf %18 : vector<8x64xf32> to vector<8x64xbf16>
    %cst_15 = arith.constant dense<0.000000e+00> : vector<8x64xf32>
    %34 = tpu.matmul %32, %33, %cst_15 {dimension_numbers = #tpu.dot_dimension_numbers<[1], [0], [0], [1], [0, 0, 1, 1], [], []>} : vector<8x8xbf16>, vector<8x64xbf16>, vector<8x64xf32> -> vector<8x64xf32>
    %35 = vector.extract_strided_slice %15 {offsets = [0, 64], sizes = [8, 64], strides = [1, 1]} : vector<8x576xf32> to vector<8x64xf32>
    %36 = vector.extract_strided_slice %15 {offsets = [0, 256], sizes = [8, 64], strides = [1, 1]} : vector<8x576xf32> to vector<8x64xf32>
    %37 = vector.extract_strided_slice %15 {offsets = [0, 448], sizes = [8, 64], strides = [1, 1]} : vector<8x576xf32> to vector<8x64xf32>
    %38 = arith.truncf %35 : vector<8x64xf32> to vector<8x64xbf16>
    %39 = arith.truncf %36 : vector<8x64xf32> to vector<8x64xbf16>
    %cst_16 = arith.constant dense<0.000000e+00> : vector<8x8xf32>
    %40 = tpu.matmul %38, %39, %cst_16 {dimension_numbers = #tpu.dot_dimension_numbers<[1], [1], [0], [0], [0, 0, 1, 0], [], []>} : vector<8x64xbf16>, vector<8x64xbf16>, vector<8x8xf32> -> vector<8x8xf32>
    %cst_17 = arith.constant dense<0xFF800000> : vector<8xf32>
    %41 = vector.multi_reduction <maximumf>, %40, %cst_17 [1] : vector<8x8xf32> to vector<8xf32>
    %42 = vector.shape_cast %41 : vector<8xf32> to vector<8x1xf32>
    %43 = vector.broadcast %42 : vector<8x1xf32> to vector<8x8xf32>
    %44 = arith.subf %40, %43 : vector<8x8xf32>
    %45 = math.exp %44 : vector<8x8xf32>
    %cst_18 = arith.constant dense<0.000000e+00> : vector<8xf32>
    %46 = vector.multi_reduction <add>, %45, %cst_18 [1] : vector<8x8xf32> to vector<8xf32>
    %47 = vector.shape_cast %46 : vector<8xf32> to vector<8x1xf32>
    %48 = tpu.reciprocal %47 {approx = true} : vector<8x1xf32> -> vector<8x1xf32>
    %49 = vector.broadcast %48 : vector<8x1xf32> to vector<8x8xf32>
    %50 = arith.mulf %45, %49 : vector<8x8xf32>
    %51 = arith.truncf %50 : vector<8x8xf32> to vector<8x8xbf16>
    %52 = arith.truncf %37 : vector<8x64xf32> to vector<8x64xbf16>
    %cst_19 = arith.constant dense<0.000000e+00> : vector<8x64xf32>
    %53 = tpu.matmul %51, %52, %cst_19 {dimension_numbers = #tpu.dot_dimension_numbers<[1], [0], [0], [1], [0, 0, 1, 1], [], []>} : vector<8x8xbf16>, vector<8x64xbf16>, vector<8x64xf32> -> vector<8x64xf32>
    %54 = vector.extract_strided_slice %15 {offsets = [0, 128], sizes = [8, 64], strides = [1, 1]} : vector<8x576xf32> to vector<8x64xf32>
    %55 = vector.extract_strided_slice %15 {offsets = [0, 320], sizes = [8, 64], strides = [1, 1]} : vector<8x576xf32> to vector<8x64xf32>
    %56 = vector.extract_strided_slice %15 {offsets = [0, 512], sizes = [8, 64], strides = [1, 1]} : vector<8x576xf32> to vector<8x64xf32>
    %57 = arith.truncf %54 : vector<8x64xf32> to vector<8x64xbf16>
    %58 = arith.truncf %55 : vector<8x64xf32> to vector<8x64xbf16>
    %cst_20 = arith.constant dense<0.000000e+00> : vector<8x8xf32>
    %59 = tpu.matmul %57, %58, %cst_20 {dimension_numbers = #tpu.dot_dimension_numbers<[1], [1], [0], [0], [0, 0, 1, 0], [], []>} : vector<8x64xbf16>, vector<8x64xbf16>, vector<8x8xf32> -> vector<8x8xf32>
    %cst_21 = arith.constant dense<0xFF800000> : vector<8xf32>
    %60 = vector.multi_reduction <maximumf>, %59, %cst_21 [1] : vector<8x8xf32> to vector<8xf32>
    %61 = vector.shape_cast %60 : vector<8xf32> to vector<8x1xf32>
    %62 = vector.broadcast %61 : vector<8x1xf32> to vector<8x8xf32>
    %63 = arith.subf %59, %62 : vector<8x8xf32>
    %64 = math.exp %63 : vector<8x8xf32>
    %cst_22 = arith.constant dense<0.000000e+00> : vector<8xf32>
    %65 = vector.multi_reduction <add>, %64, %cst_22 [1] : vector<8x8xf32> to vector<8xf32>
    %66 = vector.shape_cast %65 : vector<8xf32> to vector<8x1xf32>
    %67 = tpu.reciprocal %66 {approx = true} : vector<8x1xf32> -> vector<8x1xf32>
    %68 = vector.broadcast %67 : vector<8x1xf32> to vector<8x8xf32>
    %69 = arith.mulf %64, %68 : vector<8x8xf32>
    %70 = arith.truncf %69 : vector<8x8xf32> to vector<8x8xbf16>
    %71 = arith.truncf %56 : vector<8x64xf32> to vector<8x64xbf16>
    %cst_23 = arith.constant dense<0.000000e+00> : vector<8x64xf32>
    %72 = tpu.matmul %70, %71, %cst_23 {dimension_numbers = #tpu.dot_dimension_numbers<[1], [0], [0], [1], [0, 0, 1, 1], [], []>} : vector<8x8xbf16>, vector<8x64xbf16>, vector<8x64xf32> -> vector<8x64xf32>
    %73 = tpu.concatenate %34, %53, %72 in 1 : vector<8x64xf32>, vector<8x64xf32>, vector<8x64xf32> -> vector<8x192xf32>
    %c0_24 = arith.constant 0 : index
    %c0_25 = arith.constant 0 : index
    %c0_26 = arith.constant 0 : index
    %74 = vector.load %arg4[%c0_24, %c0_25, %c0_26] : memref<10x192x192xbf16, #tpu.memory_space<vmem>>, vector<1x192x192xbf16>
    %75 = vector.shape_cast %74 : vector<1x192x192xbf16> to vector<192x192xbf16>
    %76 = arith.truncf %73 : vector<8x192xf32> to vector<8x192xbf16>
    %cst_27 = arith.constant dense<0.000000e+00> : vector<8x192xf32>
    %77 = tpu.matmul %76, %75, %cst_27 {dimension_numbers = #tpu.dot_dimension_numbers<[1], [0], [0], [1], [0, 0, 1, 1], [], []>} : vector<8x192xbf16>, vector<192x192xbf16>, vector<8x192xf32> -> vector<8x192xf32>
    %c1 = arith.constant 1 : index
    %c0_28 = arith.constant 0 : index
    %78 = vector.load %arg5[%c1, %c0_28] : memref<21x192xf32, #tpu.memory_space<vmem>>, vector<1x192xf32>
    %79 = vector.broadcast %78 : vector<1x192xf32> to vector<8x192xf32>
    %80 = arith.addf %77, %79 : vector<8x192xf32>
    %81 = arith.addf %8, %80 : vector<8x192xf32>
    %c3 = arith.constant 3 : index
    %c0_29 = arith.constant 0 : index
    %82 = vector.load %arg5[%c3, %c0_29] : memref<21x192xf32, #tpu.memory_space<vmem>>, vector<1x192xf32>
    %c5 = arith.constant 5 : index
    %c0_30 = arith.constant 0 : index
    %83 = vector.load %arg5[%c5, %c0_30] : memref<21x192xf32, #tpu.memory_space<vmem>>, vector<1x192xf32>
    %cst_31 = arith.constant dense<0.000000e+00> : vector<8xf32>
    %84 = vector.multi_reduction <add>, %81, %cst_31 [1] : vector<8x192xf32> to vector<8xf32>
    %85 = vector.shape_cast %84 : vector<8xf32> to vector<8x1xf32>
    %cst_32 = arith.constant 1.920000e+02 : f32
    %86 = vector.broadcast %cst_32 : f32 to vector<8x1xf32>
    %87 = arith.divf %85, %86 : vector<8x1xf32>
    %88 = vector.broadcast %87 : vector<8x1xf32> to vector<8x192xf32>
    %89 = arith.subf %81, %88 : vector<8x192xf32>
    %90 = arith.mulf %89, %89 : vector<8x192xf32>
    %cst_33 = arith.constant dense<0.000000e+00> : vector<8xf32>
    %91 = vector.multi_reduction <add>, %90, %cst_33 [1] : vector<8x192xf32> to vector<8xf32>
    %92 = vector.shape_cast %91 : vector<8xf32> to vector<8x1xf32>
    %cst_34 = arith.constant 1.920000e+02 : f32
    %93 = vector.broadcast %cst_34 : f32 to vector<8x1xf32>
    %94 = arith.divf %92, %93 : vector<8x1xf32>
    %cst_35 = arith.constant 9.99999974E-6 : f32
    %95 = vector.broadcast %cst_35 : f32 to vector<8x1xf32>
    %96 = arith.addf %94, %95 : vector<8x1xf32>
    %97 = math.rsqrt %96 : vector<8x1xf32>
    %98 = vector.broadcast %97 : vector<8x1xf32> to vector<8x192xf32>
    %99 = arith.mulf %89, %98 : vector<8x192xf32>
    %100 = vector.broadcast %82 : vector<1x192xf32> to vector<8x192xf32>
    %101 = arith.mulf %99, %100 : vector<8x192xf32>
    %102 = vector.broadcast %83 : vector<1x192xf32> to vector<8x192xf32>
    %103 = arith.addf %101, %102 : vector<8x192xf32>
    %c1_36 = arith.constant 1 : index
    %c0_37 = arith.constant 0 : index
    %c0_38 = arith.constant 0 : index
    %104 = vector.load %arg4[%c1_36, %c0_37, %c0_38] : memref<10x192x192xbf16, #tpu.memory_space<vmem>>, vector<1x192x192xbf16>
    %105 = vector.shape_cast %104 : vector<1x192x192xbf16> to vector<192x192xbf16>
    %106 = arith.truncf %103 : vector<8x192xf32> to vector<8x192xbf16>
    %cst_39 = arith.constant dense<0.000000e+00> : vector<8x192xf32>
    %107 = tpu.matmul %106, %105, %cst_39 {dimension_numbers = #tpu.dot_dimension_numbers<[1], [0], [0], [1], [0, 0, 1, 1], [], []>} : vector<8x192xbf16>, vector<192x192xbf16>, vector<8x192xf32> -> vector<8x192xf32>
    %c7 = arith.constant 7 : index
    %c0_40 = arith.constant 0 : index
    %108 = vector.load %arg5[%c7, %c0_40] : memref<21x192xf32, #tpu.memory_space<vmem>>, vector<1x192xf32>
    %109 = vector.broadcast %108 : vector<1x192xf32> to vector<8x192xf32>
    %110 = arith.addf %107, %109 : vector<8x192xf32>
    %cst_41 = arith.constant 0.000000e+00 : f32
    %111 = vector.broadcast %cst_41 : f32 to vector<8x192xf32>
    %112 = arith.maximumf %110, %111 : vector<8x192xf32>
    %c2 = arith.constant 2 : index
    %c0_42 = arith.constant 0 : index
    %c0_43 = arith.constant 0 : index
    %113 = vector.load %arg4[%c2, %c0_42, %c0_43] : memref<10x192x192xbf16, #tpu.memory_space<vmem>>, vector<1x192x192xbf16>
    %114 = vector.shape_cast %113 : vector<1x192x192xbf16> to vector<192x192xbf16>
    %115 = arith.truncf %112 : vector<8x192xf32> to vector<8x192xbf16>
    %cst_44 = arith.constant dense<0.000000e+00> : vector<8x192xf32>
    %116 = tpu.matmul %115, %114, %cst_44 {dimension_numbers = #tpu.dot_dimension_numbers<[1], [0], [0], [1], [0, 0, 1, 1], [], []>} : vector<8x192xbf16>, vector<192x192xbf16>, vector<8x192xf32> -> vector<8x192xf32>
    %c9 = arith.constant 9 : index
    %c0_45 = arith.constant 0 : index
    %117 = vector.load %arg5[%c9, %c0_45] : memref<21x192xf32, #tpu.memory_space<vmem>>, vector<1x192xf32>
    %118 = vector.broadcast %117 : vector<1x192xf32> to vector<8x192xf32>
    %119 = arith.addf %116, %118 : vector<8x192xf32>
    %120 = arith.addf %103, %119 : vector<8x192xf32>
    %c11 = arith.constant 11 : index
    %c0_46 = arith.constant 0 : index
    %121 = vector.load %arg5[%c11, %c0_46] : memref<21x192xf32, #tpu.memory_space<vmem>>, vector<1x192xf32>
    %c13 = arith.constant 13 : index
    %c0_47 = arith.constant 0 : index
    %122 = vector.load %arg5[%c13, %c0_47] : memref<21x192xf32, #tpu.memory_space<vmem>>, vector<1x192xf32>
    %cst_48 = arith.constant dense<0.000000e+00> : vector<8xf32>
    %123 = vector.multi_reduction <add>, %120, %cst_48 [1] : vector<8x192xf32> to vector<8xf32>
    %124 = vector.shape_cast %123 : vector<8xf32> to vector<8x1xf32>
    %cst_49 = arith.constant 1.920000e+02 : f32
    %125 = vector.broadcast %cst_49 : f32 to vector<8x1xf32>
    %126 = arith.divf %124, %125 : vector<8x1xf32>
    %127 = vector.broadcast %126 : vector<8x1xf32> to vector<8x192xf32>
    %128 = arith.subf %120, %127 : vector<8x192xf32>
    %129 = arith.mulf %128, %128 : vector<8x192xf32>
    %cst_50 = arith.constant dense<0.000000e+00> : vector<8xf32>
    %130 = vector.multi_reduction <add>, %129, %cst_50 [1] : vector<8x192xf32> to vector<8xf32>
    %131 = vector.shape_cast %130 : vector<8xf32> to vector<8x1xf32>
    %cst_51 = arith.constant 1.920000e+02 : f32
    %132 = vector.broadcast %cst_51 : f32 to vector<8x1xf32>
    %133 = arith.divf %131, %132 : vector<8x1xf32>
    %cst_52 = arith.constant 9.99999974E-6 : f32
    %134 = vector.broadcast %cst_52 : f32 to vector<8x1xf32>
    %135 = arith.addf %133, %134 : vector<8x1xf32>
    %136 = math.rsqrt %135 : vector<8x1xf32>
    %137 = vector.broadcast %136 : vector<8x1xf32> to vector<8x192xf32>
    %138 = arith.mulf %128, %137 : vector<8x192xf32>
    %139 = vector.broadcast %121 : vector<1x192xf32> to vector<8x192xf32>
    %140 = arith.mulf %138, %139 : vector<8x192xf32>
    %141 = vector.broadcast %122 : vector<1x192xf32> to vector<8x192xf32>
    %142 = arith.addf %140, %141 : vector<8x192xf32>
    %c1_53 = arith.constant 1 : index
    %c0_54 = arith.constant 0 : index
    %c0_55 = arith.constant 0 : index
    %143 = vector.load %arg2[%c1_53, %c0_54, %c0_55] : memref<2x192x576xbf16, #tpu.memory_space<vmem>>, vector<1x192x576xbf16>
    %144 = vector.shape_cast %143 : vector<1x192x576xbf16> to vector<192x576xbf16>
    %145 = arith.truncf %142 : vector<8x192xf32> to vector<8x192xbf16>
    %cst_56 = arith.constant dense<0.000000e+00> : vector<8x576xf32>
    %146 = tpu.matmul %145, %144, %cst_56 {dimension_numbers = #tpu.dot_dimension_numbers<[1], [0], [0], [1], [0, 0, 1, 1], [], []>} : vector<8x192xbf16>, vector<192x576xbf16>, vector<8x576xf32> -> vector<8x576xf32>
    %c1_57 = arith.constant 1 : index
    %c0_58 = arith.constant 0 : index
    %147 = vector.load %arg3[%c1_57, %c0_58] : memref<2x576xf32, #tpu.memory_space<vmem>>, vector<1x576xf32>
    %148 = vector.broadcast %147 : vector<1x576xf32> to vector<8x576xf32>
    %149 = arith.addf %146, %148 : vector<8x576xf32>
    %150 = vector.extract_strided_slice %149 {offsets = [0, 0], sizes = [8, 64], strides = [1, 1]} : vector<8x576xf32> to vector<8x64xf32>
    %151 = vector.extract_strided_slice %149 {offsets = [0, 192], sizes = [8, 64], strides = [1, 1]} : vector<8x576xf32> to vector<8x64xf32>
    %152 = vector.extract_strided_slice %149 {offsets = [0, 384], sizes = [8, 64], strides = [1, 1]} : vector<8x576xf32> to vector<8x64xf32>
    %153 = arith.truncf %150 : vector<8x64xf32> to vector<8x64xbf16>
    %154 = arith.truncf %151 : vector<8x64xf32> to vector<8x64xbf16>
    %cst_59 = arith.constant dense<0.000000e+00> : vector<8x8xf32>
    %155 = tpu.matmul %153, %154, %cst_59 {dimension_numbers = #tpu.dot_dimension_numbers<[1], [1], [0], [0], [0, 0, 1, 0], [], []>} : vector<8x64xbf16>, vector<8x64xbf16>, vector<8x8xf32> -> vector<8x8xf32>
    %cst_60 = arith.constant dense<0xFF800000> : vector<8xf32>
    %156 = vector.multi_reduction <maximumf>, %155, %cst_60 [1] : vector<8x8xf32> to vector<8xf32>
    %157 = vector.shape_cast %156 : vector<8xf32> to vector<8x1xf32>
    %158 = vector.broadcast %157 : vector<8x1xf32> to vector<8x8xf32>
    %159 = arith.subf %155, %158 : vector<8x8xf32>
    %160 = math.exp %159 : vector<8x8xf32>
    %cst_61 = arith.constant dense<0.000000e+00> : vector<8xf32>
    %161 = vector.multi_reduction <add>, %160, %cst_61 [1] : vector<8x8xf32> to vector<8xf32>
    %162 = vector.shape_cast %161 : vector<8xf32> to vector<8x1xf32>
    %163 = tpu.reciprocal %162 {approx = true} : vector<8x1xf32> -> vector<8x1xf32>
    %164 = vector.broadcast %163 : vector<8x1xf32> to vector<8x8xf32>
    %165 = arith.mulf %160, %164 : vector<8x8xf32>
    %166 = arith.truncf %165 : vector<8x8xf32> to vector<8x8xbf16>
    %167 = arith.truncf %152 : vector<8x64xf32> to vector<8x64xbf16>
    %cst_62 = arith.constant dense<0.000000e+00> : vector<8x64xf32>
    %168 = tpu.matmul %166, %167, %cst_62 {dimension_numbers = #tpu.dot_dimension_numbers<[1], [0], [0], [1], [0, 0, 1, 1], [], []>} : vector<8x8xbf16>, vector<8x64xbf16>, vector<8x64xf32> -> vector<8x64xf32>
    %169 = vector.extract_strided_slice %149 {offsets = [0, 64], sizes = [8, 64], strides = [1, 1]} : vector<8x576xf32> to vector<8x64xf32>
    %170 = vector.extract_strided_slice %149 {offsets = [0, 256], sizes = [8, 64], strides = [1, 1]} : vector<8x576xf32> to vector<8x64xf32>
    %171 = vector.extract_strided_slice %149 {offsets = [0, 448], sizes = [8, 64], strides = [1, 1]} : vector<8x576xf32> to vector<8x64xf32>
    %172 = arith.truncf %169 : vector<8x64xf32> to vector<8x64xbf16>
    %173 = arith.truncf %170 : vector<8x64xf32> to vector<8x64xbf16>
    %cst_63 = arith.constant dense<0.000000e+00> : vector<8x8xf32>
    %174 = tpu.matmul %172, %173, %cst_63 {dimension_numbers = #tpu.dot_dimension_numbers<[1], [1], [0], [0], [0, 0, 1, 0], [], []>} : vector<8x64xbf16>, vector<8x64xbf16>, vector<8x8xf32> -> vector<8x8xf32>
    %cst_64 = arith.constant dense<0xFF800000> : vector<8xf32>
    %175 = vector.multi_reduction <maximumf>, %174, %cst_64 [1] : vector<8x8xf32> to vector<8xf32>
    %176 = vector.shape_cast %175 : vector<8xf32> to vector<8x1xf32>
    %177 = vector.broadcast %176 : vector<8x1xf32> to vector<8x8xf32>
    %178 = arith.subf %174, %177 : vector<8x8xf32>
    %179 = math.exp %178 : vector<8x8xf32>
    %cst_65 = arith.constant dense<0.000000e+00> : vector<8xf32>
    %180 = vector.multi_reduction <add>, %179, %cst_65 [1] : vector<8x8xf32> to vector<8xf32>
    %181 = vector.shape_cast %180 : vector<8xf32> to vector<8x1xf32>
    %182 = tpu.reciprocal %181 {approx = true} : vector<8x1xf32> -> vector<8x1xf32>
    %183 = vector.broadcast %182 : vector<8x1xf32> to vector<8x8xf32>
    %184 = arith.mulf %179, %183 : vector<8x8xf32>
    %185 = arith.truncf %184 : vector<8x8xf32> to vector<8x8xbf16>
    %186 = arith.truncf %171 : vector<8x64xf32> to vector<8x64xbf16>
    %cst_66 = arith.constant dense<0.000000e+00> : vector<8x64xf32>
    %187 = tpu.matmul %185, %186, %cst_66 {dimension_numbers = #tpu.dot_dimension_numbers<[1], [0], [0], [1], [0, 0, 1, 1], [], []>} : vector<8x8xbf16>, vector<8x64xbf16>, vector<8x64xf32> -> vector<8x64xf32>
    %188 = vector.extract_strided_slice %149 {offsets = [0, 128], sizes = [8, 64], strides = [1, 1]} : vector<8x576xf32> to vector<8x64xf32>
    %189 = vector.extract_strided_slice %149 {offsets = [0, 320], sizes = [8, 64], strides = [1, 1]} : vector<8x576xf32> to vector<8x64xf32>
    %190 = vector.extract_strided_slice %149 {offsets = [0, 512], sizes = [8, 64], strides = [1, 1]} : vector<8x576xf32> to vector<8x64xf32>
    %191 = arith.truncf %188 : vector<8x64xf32> to vector<8x64xbf16>
    %192 = arith.truncf %189 : vector<8x64xf32> to vector<8x64xbf16>
    %cst_67 = arith.constant dense<0.000000e+00> : vector<8x8xf32>
    %193 = tpu.matmul %191, %192, %cst_67 {dimension_numbers = #tpu.dot_dimension_numbers<[1], [1], [0], [0], [0, 0, 1, 0], [], []>} : vector<8x64xbf16>, vector<8x64xbf16>, vector<8x8xf32> -> vector<8x8xf32>
    %cst_68 = arith.constant dense<0xFF800000> : vector<8xf32>
    %194 = vector.multi_reduction <maximumf>, %193, %cst_68 [1] : vector<8x8xf32> to vector<8xf32>
    %195 = vector.shape_cast %194 : vector<8xf32> to vector<8x1xf32>
    %196 = vector.broadcast %195 : vector<8x1xf32> to vector<8x8xf32>
    %197 = arith.subf %193, %196 : vector<8x8xf32>
    %198 = math.exp %197 : vector<8x8xf32>
    %cst_69 = arith.constant dense<0.000000e+00> : vector<8xf32>
    %199 = vector.multi_reduction <add>, %198, %cst_69 [1] : vector<8x8xf32> to vector<8xf32>
    %200 = vector.shape_cast %199 : vector<8xf32> to vector<8x1xf32>
    %201 = tpu.reciprocal %200 {approx = true} : vector<8x1xf32> -> vector<8x1xf32>
    %202 = vector.broadcast %201 : vector<8x1xf32> to vector<8x8xf32>
    %203 = arith.mulf %198, %202 : vector<8x8xf32>
    %204 = arith.truncf %203 : vector<8x8xf32> to vector<8x8xbf16>
    %205 = arith.truncf %190 : vector<8x64xf32> to vector<8x64xbf16>
    %cst_70 = arith.constant dense<0.000000e+00> : vector<8x64xf32>
    %206 = tpu.matmul %204, %205, %cst_70 {dimension_numbers = #tpu.dot_dimension_numbers<[1], [0], [0], [1], [0, 0, 1, 1], [], []>} : vector<8x8xbf16>, vector<8x64xbf16>, vector<8x64xf32> -> vector<8x64xf32>
    %207 = tpu.concatenate %168, %187, %206 in 1 : vector<8x64xf32>, vector<8x64xf32>, vector<8x64xf32> -> vector<8x192xf32>
    %c3_71 = arith.constant 3 : index
    %c0_72 = arith.constant 0 : index
    %c0_73 = arith.constant 0 : index
    %208 = vector.load %arg4[%c3_71, %c0_72, %c0_73] : memref<10x192x192xbf16, #tpu.memory_space<vmem>>, vector<1x192x192xbf16>
    %209 = vector.shape_cast %208 : vector<1x192x192xbf16> to vector<192x192xbf16>
    %210 = arith.truncf %207 : vector<8x192xf32> to vector<8x192xbf16>
    %cst_74 = arith.constant dense<0.000000e+00> : vector<8x192xf32>
    %211 = tpu.matmul %210, %209, %cst_74 {dimension_numbers = #tpu.dot_dimension_numbers<[1], [0], [0], [1], [0, 0, 1, 1], [], []>} : vector<8x192xbf16>, vector<192x192xbf16>, vector<8x192xf32> -> vector<8x192xf32>
    %c2_75 = arith.constant 2 : index
    %c0_76 = arith.constant 0 : index
    %212 = vector.load %arg5[%c2_75, %c0_76] : memref<21x192xf32, #tpu.memory_space<vmem>>, vector<1x192xf32>
    %213 = vector.broadcast %212 : vector<1x192xf32> to vector<8x192xf32>
    %214 = arith.addf %211, %213 : vector<8x192xf32>
    %215 = arith.addf %142, %214 : vector<8x192xf32>
    %c4 = arith.constant 4 : index
    %c0_77 = arith.constant 0 : index
    %216 = vector.load %arg5[%c4, %c0_77] : memref<21x192xf32, #tpu.memory_space<vmem>>, vector<1x192xf32>
    %c6 = arith.constant 6 : index
    %c0_78 = arith.constant 0 : index
    %217 = vector.load %arg5[%c6, %c0_78] : memref<21x192xf32, #tpu.memory_space<vmem>>, vector<1x192xf32>
    %cst_79 = arith.constant dense<0.000000e+00> : vector<8xf32>
    %218 = vector.multi_reduction <add>, %215, %cst_79 [1] : vector<8x192xf32> to vector<8xf32>
    %219 = vector.shape_cast %218 : vector<8xf32> to vector<8x1xf32>
    %cst_80 = arith.constant 1.920000e+02 : f32
    %220 = vector.broadcast %cst_80 : f32 to vector<8x1xf32>
    %221 = arith.divf %219, %220 : vector<8x1xf32>
    %222 = vector.broadcast %221 : vector<8x1xf32> to vector<8x192xf32>
    %223 = arith.subf %215, %222 : vector<8x192xf32>
    %224 = arith.mulf %223, %223 : vector<8x192xf32>
    %cst_81 = arith.constant dense<0.000000e+00> : vector<8xf32>
    %225 = vector.multi_reduction <add>, %224, %cst_81 [1] : vector<8x192xf32> to vector<8xf32>
    %226 = vector.shape_cast %225 : vector<8xf32> to vector<8x1xf32>
    %cst_82 = arith.constant 1.920000e+02 : f32
    %227 = vector.broadcast %cst_82 : f32 to vector<8x1xf32>
    %228 = arith.divf %226, %227 : vector<8x1xf32>
    %cst_83 = arith.constant 9.99999974E-6 : f32
    %229 = vector.broadcast %cst_83 : f32 to vector<8x1xf32>
    %230 = arith.addf %228, %229 : vector<8x1xf32>
    %231 = math.rsqrt %230 : vector<8x1xf32>
    %232 = vector.broadcast %231 : vector<8x1xf32> to vector<8x192xf32>
    %233 = arith.mulf %223, %232 : vector<8x192xf32>
    %234 = vector.broadcast %216 : vector<1x192xf32> to vector<8x192xf32>
    %235 = arith.mulf %233, %234 : vector<8x192xf32>
    %236 = vector.broadcast %217 : vector<1x192xf32> to vector<8x192xf32>
    %237 = arith.addf %235, %236 : vector<8x192xf32>
    %c4_84 = arith.constant 4 : index
    %c0_85 = arith.constant 0 : index
    %c0_86 = arith.constant 0 : index
    %238 = vector.load %arg4[%c4_84, %c0_85, %c0_86] : memref<10x192x192xbf16, #tpu.memory_space<vmem>>, vector<1x192x192xbf16>
    %239 = vector.shape_cast %238 : vector<1x192x192xbf16> to vector<192x192xbf16>
    %240 = arith.truncf %237 : vector<8x192xf32> to vector<8x192xbf16>
    %cst_87 = arith.constant dense<0.000000e+00> : vector<8x192xf32>
    %241 = tpu.matmul %240, %239, %cst_87 {dimension_numbers = #tpu.dot_dimension_numbers<[1], [0], [0], [1], [0, 0, 1, 1], [], []>} : vector<8x192xbf16>, vector<192x192xbf16>, vector<8x192xf32> -> vector<8x192xf32>
    %c8 = arith.constant 8 : index
    %c0_88 = arith.constant 0 : index
    %242 = vector.load %arg5[%c8, %c0_88] : memref<21x192xf32, #tpu.memory_space<vmem>>, vector<1x192xf32>
    %243 = vector.broadcast %242 : vector<1x192xf32> to vector<8x192xf32>
    %244 = arith.addf %241, %243 : vector<8x192xf32>
    %cst_89 = arith.constant 0.000000e+00 : f32
    %245 = vector.broadcast %cst_89 : f32 to vector<8x192xf32>
    %246 = arith.maximumf %244, %245 : vector<8x192xf32>
    %c5_90 = arith.constant 5 : index
    %c0_91 = arith.constant 0 : index
    %c0_92 = arith.constant 0 : index
    %247 = vector.load %arg4[%c5_90, %c0_91, %c0_92] : memref<10x192x192xbf16, #tpu.memory_space<vmem>>, vector<1x192x192xbf16>
    %248 = vector.shape_cast %247 : vector<1x192x192xbf16> to vector<192x192xbf16>
    %249 = arith.truncf %246 : vector<8x192xf32> to vector<8x192xbf16>
    %cst_93 = arith.constant dense<0.000000e+00> : vector<8x192xf32>
    %250 = tpu.matmul %249, %248, %cst_93 {dimension_numbers = #tpu.dot_dimension_numbers<[1], [0], [0], [1], [0, 0, 1, 1], [], []>} : vector<8x192xbf16>, vector<192x192xbf16>, vector<8x192xf32> -> vector<8x192xf32>
    %c10 = arith.constant 10 : index
    %c0_94 = arith.constant 0 : index
    %251 = vector.load %arg5[%c10, %c0_94] : memref<21x192xf32, #tpu.memory_space<vmem>>, vector<1x192xf32>
    %252 = vector.broadcast %251 : vector<1x192xf32> to vector<8x192xf32>
    %253 = arith.addf %250, %252 : vector<8x192xf32>
    %254 = arith.addf %237, %253 : vector<8x192xf32>
    %c12 = arith.constant 12 : index
    %c0_95 = arith.constant 0 : index
    %255 = vector.load %arg5[%c12, %c0_95] : memref<21x192xf32, #tpu.memory_space<vmem>>, vector<1x192xf32>
    %c14 = arith.constant 14 : index
    %c0_96 = arith.constant 0 : index
    %256 = vector.load %arg5[%c14, %c0_96] : memref<21x192xf32, #tpu.memory_space<vmem>>, vector<1x192xf32>
    %cst_97 = arith.constant dense<0.000000e+00> : vector<8xf32>
    %257 = vector.multi_reduction <add>, %254, %cst_97 [1] : vector<8x192xf32> to vector<8xf32>
    %258 = vector.shape_cast %257 : vector<8xf32> to vector<8x1xf32>
    %cst_98 = arith.constant 1.920000e+02 : f32
    %259 = vector.broadcast %cst_98 : f32 to vector<8x1xf32>
    %260 = arith.divf %258, %259 : vector<8x1xf32>
    %261 = vector.broadcast %260 : vector<8x1xf32> to vector<8x192xf32>
    %262 = arith.subf %254, %261 : vector<8x192xf32>
    %263 = arith.mulf %262, %262 : vector<8x192xf32>
    %cst_99 = arith.constant dense<0.000000e+00> : vector<8xf32>
    %264 = vector.multi_reduction <add>, %263, %cst_99 [1] : vector<8x192xf32> to vector<8xf32>
    %265 = vector.shape_cast %264 : vector<8xf32> to vector<8x1xf32>
    %cst_100 = arith.constant 1.920000e+02 : f32
    %266 = vector.broadcast %cst_100 : f32 to vector<8x1xf32>
    %267 = arith.divf %265, %266 : vector<8x1xf32>
    %cst_101 = arith.constant 9.99999974E-6 : f32
    %268 = vector.broadcast %cst_101 : f32 to vector<8x1xf32>
    %269 = arith.addf %267, %268 : vector<8x1xf32>
    %270 = math.rsqrt %269 : vector<8x1xf32>
    %271 = vector.broadcast %270 : vector<8x1xf32> to vector<8x192xf32>
    %272 = arith.mulf %262, %271 : vector<8x192xf32>
    %273 = vector.broadcast %255 : vector<1x192xf32> to vector<8x192xf32>
    %274 = arith.mulf %272, %273 : vector<8x192xf32>
    %275 = vector.broadcast %256 : vector<1x192xf32> to vector<8x192xf32>
    %276 = arith.addf %274, %275 : vector<8x192xf32>
    %c6_102 = arith.constant 6 : index
    %c0_103 = arith.constant 0 : index
    %c0_104 = arith.constant 0 : index
    %277 = vector.load %arg4[%c6_102, %c0_103, %c0_104] : memref<10x192x192xbf16, #tpu.memory_space<vmem>>, vector<1x192x192xbf16>
    %278 = vector.shape_cast %277 : vector<1x192x192xbf16> to vector<192x192xbf16>
    %279 = arith.truncf %276 : vector<8x192xf32> to vector<8x192xbf16>
    %cst_105 = arith.constant dense<0.000000e+00> : vector<8x192xf32>
    %280 = tpu.matmul %279, %278, %cst_105 {dimension_numbers = #tpu.dot_dimension_numbers<[1], [0], [0], [1], [0, 0, 1, 1], [], []>} : vector<8x192xbf16>, vector<192x192xbf16>, vector<8x192xf32> -> vector<8x192xf32>
    %c15 = arith.constant 15 : index
    %c0_106 = arith.constant 0 : index
    %281 = vector.load %arg5[%c15, %c0_106] : memref<21x192xf32, #tpu.memory_space<vmem>>, vector<1x192xf32>
    %282 = vector.broadcast %281 : vector<1x192xf32> to vector<8x192xf32>
    %283 = arith.addf %280, %282 : vector<8x192xf32>
    %284 = math.tanh %283 : vector<8x192xf32>
    %c7_107 = arith.constant 7 : index
    %c0_108 = arith.constant 0 : index
    %c0_109 = arith.constant 0 : index
    %285 = vector.load %arg4[%c7_107, %c0_108, %c0_109] : memref<10x192x192xbf16, #tpu.memory_space<vmem>>, vector<1x192x192xbf16>
    %286 = vector.shape_cast %285 : vector<1x192x192xbf16> to vector<192x192xbf16>
    %287 = arith.truncf %276 : vector<8x192xf32> to vector<8x192xbf16>
    %cst_110 = arith.constant dense<0.000000e+00> : vector<8x192xf32>
    %288 = tpu.matmul %287, %286, %cst_110 {dimension_numbers = #tpu.dot_dimension_numbers<[1], [0], [0], [1], [0, 0, 1, 1], [], []>} : vector<8x192xbf16>, vector<192x192xbf16>, vector<8x192xf32> -> vector<8x192xf32>
    %c16 = arith.constant 16 : index
    %c0_111 = arith.constant 0 : index
    %289 = vector.load %arg5[%c16, %c0_111] : memref<21x192xf32, #tpu.memory_space<vmem>>, vector<1x192xf32>
    %290 = vector.broadcast %289 : vector<1x192xf32> to vector<8x192xf32>
    %291 = arith.addf %288, %290 : vector<8x192xf32>
    %292 = arith.negf %291 : vector<8x192xf32>
    %293 = math.exp %292 : vector<8x192xf32>
    %cst_112 = arith.constant 1.000000e+00 : f32
    %294 = vector.broadcast %cst_112 : f32 to vector<8x192xf32>
    %295 = arith.addf %294, %293 : vector<8x192xf32>
    %296 = arith.divf %294, %295 : vector<8x192xf32>
    %c18 = arith.constant 18 : index
    %c0_113 = arith.constant 0 : index
    %297 = vector.load %arg5[%c18, %c0_113] : memref<21x192xf32, #tpu.memory_space<vmem>>, vector<1x192xf32>
    %298 = arith.mulf %284, %296 : vector<8x192xf32>
    %299 = arith.truncf %297 : vector<1x192xf32> to vector<1x192xbf16>
    %300 = arith.truncf %298 : vector<8x192xf32> to vector<8x192xbf16>
    %cst_114 = arith.constant dense<0.000000e+00> : vector<1x8xf32>
    %301 = tpu.matmul %299, %300, %cst_114 {dimension_numbers = #tpu.dot_dimension_numbers<[1], [1], [0], [0], [0, 0, 1, 0], [], []>} : vector<1x192xbf16>, vector<8x192xbf16>, vector<1x8xf32> -> vector<1x8xf32>
    %c17 = arith.constant 17 : index
    %c0_115 = arith.constant 0 : index
    %302 = vector.load %arg5[%c17, %c0_115] : memref<21x192xf32, #tpu.memory_space<vmem>>, vector<1x192xf32>
    %303 = vector.extract_strided_slice %302 {offsets = [0, 0], sizes = [1, 1], strides = [1, 1]} : vector<1x192xf32> to vector<1x1xf32>
    %304 = vector.broadcast %303 : vector<1x1xf32> to vector<1x8xf32>
    %305 = arith.addf %301, %304 : vector<1x8xf32>
    %cst_116 = arith.constant dense<0xFF800000> : vector<1xf32>
    %306 = vector.multi_reduction <maximumf>, %305, %cst_116 [1] : vector<1x8xf32> to vector<1xf32>
    %307 = vector.shape_cast %306 : vector<1xf32> to vector<1x1xf32>
    %308 = vector.broadcast %307 : vector<1x1xf32> to vector<1x8xf32>
    %309 = arith.subf %305, %308 : vector<1x8xf32>
    %310 = math.exp %309 : vector<1x8xf32>
    %cst_117 = arith.constant dense<0.000000e+00> : vector<1xf32>
    %311 = vector.multi_reduction <add>, %310, %cst_117 [1] : vector<1x8xf32> to vector<1xf32>
    %312 = vector.shape_cast %311 : vector<1xf32> to vector<1x1xf32>
    %313 = tpu.reciprocal %312 {approx = true} : vector<1x1xf32> -> vector<1x1xf32>
    %314 = vector.broadcast %313 : vector<1x1xf32> to vector<1x8xf32>
    %315 = arith.mulf %310, %314 : vector<1x8xf32>
    %316 = arith.truncf %315 : vector<1x8xf32> to vector<1x8xbf16>
    %317 = arith.truncf %276 : vector<8x192xf32> to vector<8x192xbf16>
    %cst_118 = arith.constant dense<0.000000e+00> : vector<1x192xf32>
    %318 = tpu.matmul %316, %317, %cst_118 {dimension_numbers = #tpu.dot_dimension_numbers<[1], [0], [0], [1], [0, 0, 1, 1], [], []>} : vector<1x8xbf16>, vector<8x192xbf16>, vector<1x192xf32> -> vector<1x192xf32>
    %c8_119 = arith.constant 8 : index
    %c0_120 = arith.constant 0 : index
    %c0_121 = arith.constant 0 : index
    %319 = vector.load %arg4[%c8_119, %c0_120, %c0_121] : memref<10x192x192xbf16, #tpu.memory_space<vmem>>, vector<1x192x192xbf16>
    %320 = vector.shape_cast %319 : vector<1x192x192xbf16> to vector<192x192xbf16>
    %321 = arith.truncf %318 : vector<1x192xf32> to vector<1x192xbf16>
    %cst_122 = arith.constant dense<0.000000e+00> : vector<1x192xf32>
    %322 = tpu.matmul %321, %320, %cst_122 {dimension_numbers = #tpu.dot_dimension_numbers<[1], [0], [0], [1], [0, 0, 1, 1], [], []>} : vector<1x192xbf16>, vector<192x192xbf16>, vector<1x192xf32> -> vector<1x192xf32>
    %c19 = arith.constant 19 : index
    %c0_123 = arith.constant 0 : index
    %323 = vector.load %arg5[%c19, %c0_123] : memref<21x192xf32, #tpu.memory_space<vmem>>, vector<1x192xf32>
    %324 = arith.addf %322, %323 : vector<1x192xf32>
    %cst_124 = arith.constant 0.000000e+00 : f32
    %325 = vector.broadcast %cst_124 : f32 to vector<1x192xf32>
    %326 = arith.maximumf %324, %325 : vector<1x192xf32>
    %c9_125 = arith.constant 9 : index
    %c0_126 = arith.constant 0 : index
    %c0_127 = arith.constant 0 : index
    %327 = vector.load %arg4[%c9_125, %c0_126, %c0_127] : memref<10x192x192xbf16, #tpu.memory_space<vmem>>, vector<1x192x192xbf16>
    %328 = vector.shape_cast %327 : vector<1x192x192xbf16> to vector<192x192xbf16>
    %329 = arith.truncf %326 : vector<1x192xf32> to vector<1x192xbf16>
    %cst_128 = arith.constant dense<0.000000e+00> : vector<1x192xf32>
    %330 = tpu.matmul %329, %328, %cst_128 {dimension_numbers = #tpu.dot_dimension_numbers<[1], [0], [0], [1], [0, 0, 1, 1], [], []>} : vector<1x192xbf16>, vector<192x192xbf16>, vector<1x192xf32> -> vector<1x192xf32>
    %c20 = arith.constant 20 : index
    %c0_129 = arith.constant 0 : index
    %331 = vector.load %arg5[%c20, %c0_129] : memref<21x192xf32, #tpu.memory_space<vmem>>, vector<1x192xf32>
    %332 = arith.addf %330, %331 : vector<1x192xf32>
    %c0_130 = arith.constant 0 : index
    %c0_131 = arith.constant 0 : index
    %333 = vector.load %arg6[%c0_130, %c0_131] : memref<1x192xf32, #tpu.memory_space<vmem>>, vector<1x192xf32>
    tpu.vector_store %arg6[%c0_130, %c0_131], %332 {strides = array<i32>} : memref<1x192xf32, #tpu.memory_space<vmem>>, vector<1x192xf32>,
    return
  }
}

</mosaic_0001>

<bundles_post_ra>
// kernel: forward.1
= control target key start
LH: loop header
LB: loop body
LE: loop exit
PB: predicated region body
PF: predicated region fallthrough
CT: control target
= control target key end

     0   :  { %11 = vsyncpa [#allocation3], 0  ;;  %s5966_s0 = inlined_call_operand.hbm [shape: f32[8,32], index: 0, kind: input, shape index: {}]   ;;  %s5967_s1 = inlined_call_operand.hbm [shape: bf16[32,192], index: 1, kind: input, shape index: {}]   ;;  %s5968_s2 = inlined_call_operand.hbm [shape: bf16[2,192,576], index: 2, kind: input, shape index: {}]   ;;  %s5969_s3 = inlined_call_operand.vmem [shape: f32[2,576], index: 3, kind: input, shape index: {}]   ;;  %s5970_s4 = inlined_call_operand.hbm [shape: bf16[10,192,192], index: 4, kind: input, shape index: {}]   ;;  %s5971_s5 = inlined_call_operand.hbm [shape: f32[21,192], index: 5, kind: input, shape index: {}]   ;;  %s5972_s6 = inlined_call_operand.vmem [shape: f32[1,192], index: 6, kind: output, shape index: {}]  }
   0x1   :  { %12 = vsyncpa [#allocation5], 0 }
   0x2   :  { %13 = vsyncpa [#allocation8], 0  ;;  %s5558_s21 = smov [#allocation4]   ;;  %s5442_s25 = scalar_lea.hbm %s5967_s1, 512 }
   0x3   :  { %s29_s22 = sshll.u32 %s5558_s21, 4  ;;  %p5443_p0 = scmp.ne.s32.totalorder %s5967_s1, %s5442_s25  ;;  %s30_s22 = int_to_ptr.vmem [resolvable:$true] %s29_s22 }
   0x4   :  { %p5446_p1 = scmp.lt.u32.totalorder %s5442_s25, %s5967_s1 }
   0x6   :  { %p5448_p2 = pnand %p5446_p1, %p5443_p0 }
   0x8   :  { %5451 = shalt.err (!%p5448_p2)
}
   0x9   :  { %s5452_s30 = scalar_lea.vmem %s30_s22, 512  ;;  %p5457_p4 = scmp.lt.s32.totalorder %s30_s22, %s30_s22 }
   0xa   :  { %p5453_p3 = scmp.ne.s32.totalorder %s30_s22, %s5452_s30  ;;  %p5458_p5 = scmp.lt.s32.totalorder %s5452_s30, %s5452_s30 }
   0xc   :  { %p5459_p6 = por %p5458_p5, %p5457_p4 }
   0xe   :  { %p5460_p7 = pnand %p5459_p6, %p5453_p3 }
  0x10   :  { %5463 = shalt.err (!%p5460_p7)
}
  0x11   :  { %s5559_s7 = smov 128   ;;  %s5560_s8 = smov 8  }
  0x12   :  { %35 = dma.hbm_to_vmem [thread:$0]  %s5967_s1, 512, %s30_s22, [#allocation5], %s5559_s7, %s5559_s7, %s5560_s8  }
  0x13   :  { %s5561_s11 = smov [#allocation7]   ;;  %s5562_s13 = smov [#allocation2]  }
  0x14   :  { %s55_s12 = sshll.u32 %s5561_s11, 4  ;;  %s20_s14 = sshll.u32 %s5562_s13, 4  ;;  %s56_s12 = int_to_ptr.vmem [resolvable:$true] %s55_s12  ;;  %s21_s14 = int_to_ptr.vmem [resolvable:$true] %s20_s14 }
  0x15   :  { %s5464_s17 = scalar_lea.hbm %s5970_s4, 30720 }
  0x16   :  { %p5465_p8 = scmp.ne.s32.totalorder %s5970_s4, %s5464_s17  ;;  %p5468_p9 = scmp.lt.u32.totalorder %s5464_s17, %s5970_s4 }
  0x18   :  { %p5470_p10 = pnand %p5468_p9, %p5465_p8 }
  0x1a   :  { %5473 = shalt.err (!%p5470_p10)
}
  0x1b   :  { %s5474_s1 = scalar_lea.vmem %s56_s12, 30720  ;;  %p5479_p12 = scmp.lt.s32.totalorder %s56_s12, %s56_s12 }
  0x1c   :  { %p5475_p11 = scmp.ne.s32.totalorder %s56_s12, %s5474_s1  ;;  %p5480_p13 = scmp.lt.s32.totalorder %s5474_s1, %s5474_s1 }
  0x1e   :  { %p5481_p0 = por %p5480_p13, %p5479_p12 }
  0x20   :  { %p5482_p1 = pnand %p5481_p0, %p5475_p11 }
  0x22   :  { %5485 = shalt.err (!%p5482_p1)
}
  0x23   :  { %61 = dma.hbm_to_vmem [thread:$0]  %s5970_s4, 30720, %s56_s12, [#allocation8], %s5559_s7, %s5559_s7, %s5560_s8  }
  0x24   :  { %s5486_s26 = scalar_lea.hbm %s5966_s0, 128 }
  0x25   :  { %p5487_p2 = scmp.ne.s32.totalorder %s5966_s0, %s5486_s26  ;;  %p5490_p3 = scmp.lt.u32.totalorder %s5486_s26, %s5966_s0 }
  0x27   :  { %p5492_p4 = pnand %p5490_p3, %p5487_p2 }
  0x29   :  { %5495 = shalt.err (!%p5492_p4)
}
  0x2a   :  { %s5496_s9 = scalar_lea.vmem %s21_s14, 128  ;;  %p5501_p6 = scmp.lt.s32.totalorder %s21_s14, %s21_s14 }
  0x2b   :  { %p5497_p5 = scmp.ne.s32.totalorder %s21_s14, %s5496_s9  ;;  %p5502_p7 = scmp.lt.s32.totalorder %s5496_s9, %s5496_s9 }
  0x2d   :  { %p5503_p8 = por %p5502_p7, %p5501_p6 }
  0x2f   :  { %p5504_p9 = pnand %p5503_p8, %p5497_p5 }
  0x31   :  { %5507 = shalt.err (!%p5504_p9)
}
  0x32   :  { %23 = dma.hbm_to_vmem [thread:$0]  %s5966_s0, 128, %s21_s14, [#allocation3]  }
  0x33   :  { %s5563_s8 = smov [#allocation6]   ;;  %s5508_s13 = scalar_lea.hbm %s5968_s2, 15360 }
  0x34   :  { %s41_s10 = sshll.u32 %s5563_s8, 4  ;;  %p5509_p10 = scmp.ne.s32.totalorder %s5968_s2, %s5508_s13  ;;  %s42_s10 = int_to_ptr.vmem [resolvable:$true] %s41_s10 }
  0x35   :  { %p5512_p11 = scmp.lt.u32.totalorder %s5508_s13, %s5968_s2 }
  0x37   :  { %p5514_p12 = pnand %p5512_p11, %p5509_p10 }
  0x39   :  { %5517 = shalt.err (!%p5514_p12)
}
  0x3a   :  { %s5518_s19 = scalar_lea.vmem %s42_s10, 15360  ;;  %p5523_p0 = scmp.lt.s32.totalorder %s42_s10, %s42_s10 }
  0x3b   :  { %p5519_p13 = scmp.ne.s32.totalorder %s42_s10, %s5518_s19  ;;  %p5524_p1 = scmp.lt.s32.totalorder %s5518_s19, %s5518_s19 }
  0x3d   :  { %p5525_p2 = por %p5524_p1, %p5523_p0 }
  0x3f   :  { %p5526_p3 = pnand %p5525_p2, %p5519_p13 }
  0x41   :  { %5529 = shalt.err (!%p5526_p3)
}
  0x42   :  { %s5564_s0 = smov 320   ;;  %s5565_s14 = smov 20  }
  0x43   :  { %47 = dma.hbm_to_vmem [thread:$0]  %s5968_s2, 15360, %s42_s10, [#allocation5], %s5564_s0, %s5564_s0, %s5565_s14  }
  0x44   :  { %s5566_s1 = smov [#allocation9]   ;;  %s5530_s25 = scalar_lea.hbm %s5971_s5, 768 }
  0x45   :  { %s67_s22 = sshll.u32 %s5566_s1, 4  ;;  %p5531_p4 = scmp.ne.s32.totalorder %s5971_s5, %s5530_s25  ;;  %s68_s22 = int_to_ptr.vmem [resolvable:$true] %s67_s22 }
  0x46   :  { %p5534_p5 = scmp.lt.u32.totalorder %s5530_s25, %s5971_s5 }
  0x48   :  { %p5536_p6 = pnand %p5534_p5, %p5531_p4 }
  0x4a   :  { %5539 = shalt.err (!%p5536_p6)
}
  0x4b   :  { %s5540_s30 = scalar_lea.vmem %s68_s22, 768  ;;  %p5545_p8 = scmp.lt.s32.totalorder %s68_s22, %s68_s22 }
  0x4c   :  { %p5541_p7 = scmp.ne.s32.totalorder %s68_s22, %s5540_s30  ;;  %p5546_p9 = scmp.lt.s32.totalorder %s5540_s30, %s5540_s30 }
  0x4e   :  { %p5547_p10 = por %p5546_p9, %p5545_p8 }
  0x50   :  { %p5548_p11 = pnand %p5547_p10, %p5541_p7 }
  0x52   :  { %5551 = shalt.err (!%p5548_p11)
}
  0x53   :  { %s5567_s2 = smov 256   ;;  %s5568_s9 = smov 16  }
  0x54   :  { %73 = dma.hbm_to_vmem [thread:$0]  %s5971_s5, 768, %s68_s22, [#allocation8], %s5567_s2, %s5567_s2, %s5568_s9  }
  0x55   :  { %5552 = dma.done.wait [#allocation3], 128  }
  0x56   :  { %5553 = vsyncadd [#allocation3], 4294967168 }
  0x57   :  { %5554 = dma.done.wait [#allocation5], 15872  }
  0x58   :  { %5555 = vsyncadd [#allocation5], 4294951424 }
  0x59   :  { %5556 = dma.done.wait [#allocation8], 31488  }
  0x5a   :  { %5557 = vsyncadd [#allocation8], 4294935808  ;;  %v5569_v0 = vmov 0   ;;  %v4860_v1 = vld [vmem:[#allocation4 + $0x4] ss:$8 sps:$4 sm:$0xff]   ;;  %v90_v5 = vld [vmem:[#allocation2] sm:$0xff]  ;;  %v98_v55 = vlaneseq }
  0x5b   :  { %164 = vmatprep.mubr.bf16.mxu0 %v5569_v0  ;;  %4859 = vset.pattern.permute.xlu0 %v5569_v0  ;;  %v4862_v2 = vld [vmem:[#allocation4] ss:$8 sps:$4 sm:$0xff]   ;;  %v4863_v3 = vld [vmem:[#allocation4 + $0x14] ss:$8 sps:$4 sm:$0xff]   ;;  %v4865_v4 = vld [vmem:[#allocation4 + $0x10] ss:$8 sps:$4 sm:$0xff]   ;;  %v95_v9 = vpack.c.bf16 %v90_v5, %v90_v5 }
  0x5c   :  { %132 = vmatprep.subr.bf16.mxu0 %v4860_v1  ;;  %v4866_v6 = vld [vmem:[#allocation6 + $0x4] ss:$20 sps:$4 sm:$0xff]   ;;  %v4868_v7 = vld [vmem:[#allocation6] ss:$20 sps:$4 sm:$0xff]   ;;  %v4874_v11 = vld [vmem:[#allocation6 + $0x28] ss:$20 sps:$4 sm:$0xff]  }
  0x5d   :  { %133 = vmatpush1.bf16.msra.mxu0 %v4862_v2  ;;  %592 = vmatprep.subr.bf16.mxu1 %v4866_v6  ;;  %v4871_v8 = vld [vmem:[#allocation6 + $0xc] ss:$20 sps:$4 sm:$0xff]   ;;  %vm128_vm0 = vcmask 261120   ;;  %v4869_v12 = vld [vmem:[#allocation6 + $0x8] ss:$20 sps:$4 sm:$0xff]   ;;  %v5673_v56 = vshrl.u32 %v98_v55, 7 }
  0x5e   :  { %134 = vmatprep.subr.bf16.mxu0 %v4863_v3  ;;  %593 = vmatpush1.bf16.msra.mxu1 %v4868_v7  ;;  %v4872_v10 = vld [vmem:[#allocation6 + $0x2c] ss:$20 sps:$4 sm:$0xff]   ;;  %v4877_v13 = vld [vmem:[#allocation6 + $0x34] ss:$20 sps:$4 sm:$0xff]   ;;  %v4875_v15 = vld [vmem:[#allocation6 + $0x30] ss:$20 sps:$4 sm:$0xff]  }
  0x5f   :  { %594 = vmatprep.subr.bf16.mxu1 %v4872_v10  ;;  %v4878_v14 = vld [vmem:[#allocation6 + $0x54] ss:$20 sps:$4 sm:$0xff]   ;;  %v4880_v16 = vld [vmem:[#allocation6 + $0x50] ss:$20 sps:$4 sm:$0xff]   ;;  %v4881_v19 = vld [vmem:[#allocation6 + $0x58] ss:$20 sps:$4 sm:$0xff]  }
  0x60   :  { %v4884_v17 = vld [vmem:[#allocation6 + $0x7c] ss:$20 sps:$4 sm:$0xff]   ;;  %v4886_v20 = vld [vmem:[#allocation6 + $0x78] ss:$20 sps:$4 sm:$0xff]   ;;  %v4887_v23 = vld [vmem:[#allocation6 + $0x80] ss:$20 sps:$4 sm:$0xff]  }
  0x61   :  { %135 = vmatpush1.bf16.msra.mxu0 %v4865_v4  ;;  %v4883_v18 = vld [vmem:[#allocation6 + $0x5c] ss:$20 sps:$4 sm:$0xff]   ;;  %v4890_v21 = vld [vmem:[#allocation6 + $0xa4] ss:$20 sps:$4 sm:$0xff]   ;;  %v4892_v24 = vld [vmem:[#allocation6 + $0xa0] ss:$20 sps:$4 sm:$0xff]  }
  0x62   :  { %633 = vmatprep.subr.bf16.mxu0 %v4871_v8  ;;  %595 = vmatpush1.bf16.msra.mxu1 %v4874_v11  ;;  %v4889_v22 = vld [vmem:[#allocation6 + $0x84] ss:$20 sps:$4 sm:$0xff]   ;;  %v4896_v25 = vld [vmem:[#allocation6 + $0xcc] ss:$20 sps:$4 sm:$0xff]   ;;  %v4893_v27 = vld [vmem:[#allocation6 + $0xa8] ss:$20 sps:$4 sm:$0xff]  }
  0x63   :  { %596 = vmatprep.subr.bf16.mxu1 %v4878_v14  ;;  %v4895_v26 = vld [vmem:[#allocation6 + $0xac] ss:$20 sps:$4 sm:$0xff]   ;;  %v4898_v28 = vld [vmem:[#allocation6 + $0xc8] ss:$20 sps:$4 sm:$0xff]   ;;  %v4899_v31 = vld [vmem:[#allocation6 + $0xd0] ss:$20 sps:$4 sm:$0xff]  }
  0x64   :  { %4351 = vmatmul.mubr.msk.bf16.vlgmr.msra.gmra.mrb[0].mxu0 %vm128_vm0, %v95_v9  ;;  %v4902_v29 = vld [vmem:[#allocation6 + $0xf4] ss:$20 sps:$4 sm:$0xff]   ;;  %v4904_v32 = vld [vmem:[#allocation6 + $0xf0] ss:$20 sps:$4 sm:$0xff]   ;;  %v4905_v35 = vld [vmem:[#allocation6 + $0xf8] ss:$20 sps:$4 sm:$0xff]  }
  0x65   :  { %634 = vmatpush1.bf16.msra.mxu0 %v4869_v12  ;;  %v4901_v30 = vld [vmem:[#allocation6 + $0xd4] ss:$20 sps:$4 sm:$0xff]   ;;  %v4908_v33 = vld [vmem:[#allocation6 + $0x11c] ss:$20 sps:$4 sm:$0xff]   ;;  %v4910_v36 = vld [vmem:[#allocation6 + $0x118] ss:$20 sps:$4 sm:$0xff]  }
  0x66   :  { %635 = vmatprep.subr.bf16.mxu0 %v4877_v13  ;;  %597 = vmatpush1.bf16.msra.mxu1 %v4880_v16  ;;  %v4907_v34 = vld [vmem:[#allocation6 + $0xfc] ss:$20 sps:$4 sm:$0xff]   ;;  %v4913_v37 = vld [vmem:[#allocation6 + $0x124] ss:$20 sps:$4 sm:$0xff]   ;;  %v4916_v39 = vld [vmem:[#allocation6 + $0x140] ss:$20 sps:$4 sm:$0xff]  }
  0x67   :  { %598 = vmatprep.subr.bf16.mxu1 %v4884_v17  ;;  %v4914_v38 = vld [vmem:[#allocation6 + $0x144] ss:$20 sps:$4 sm:$0xff]   ;;  %v4911_v40 = vld [vmem:[#allocation6 + $0x120] ss:$20 sps:$4 sm:$0xff]   ;;  %v4922_v43 = vld [vmem:[#allocation6 + $0x168] ss:$20 sps:$4 sm:$0xff]  }
  0x68   :  { %v4920_v41 = vld [vmem:[#allocation6 + $0x16c] ss:$20 sps:$4 sm:$0xff]   ;;  %v4917_v44 = vld [vmem:[#allocation6 + $0x148] ss:$20 sps:$4 sm:$0xff]   ;;  %v4923_v46 = vld [vmem:[#allocation6 + $0x170] ss:$20 sps:$4 sm:$0xff]  }
  0x69   :  { %636 = vmatpush1.bf16.msra.mxu0 %v4875_v15  ;;  %v4919_v42 = vld [vmem:[#allocation6 + $0x14c] ss:$20 sps:$4 sm:$0xff]   ;;  %v4925_v45 = vld [vmem:[#allocation6 + $0x174] ss:$20 sps:$4 sm:$0xff]   ;;  %v4928_v48 = vld [vmem:[#allocation6 + $0x190] ss:$20 sps:$4 sm:$0xff]  }
  0x6a   :  { %637 = vmatprep.subr.bf16.mxu0 %v4883_v18  ;;  %599 = vmatpush1.bf16.msra.mxu1 %v4886_v20  ;;  %v4926_v47 = vld [vmem:[#allocation6 + $0x194] ss:$20 sps:$4 sm:$0xff]   ;;  %v4931_v49 = vld [vmem:[#allocation6 + $0x19c] ss:$20 sps:$4 sm:$0xff]   ;;  %v4929_v50 = vld [vmem:[#allocation6 + $0x198] ss:$20 sps:$4 sm:$0xff]  }
  0x6b   :  { %600 = vmatprep.subr.bf16.mxu1 %v4890_v21  ;;  %v4932_v51 = vld [vmem:[#allocation6 + $0x1bc] ss:$20 sps:$4 sm:$0xff]   ;;  %v4934_v52 = vld [vmem:[#allocation6 + $0x1b8] ss:$20 sps:$4 sm:$0xff]   ;;  %v4935_v54 = vld [vmem:[#allocation6 + $0x1c0] ss:$20 sps:$4 sm:$0xff]  }
  0x6c   :  { %v4937_v53 = vld [vmem:[#allocation6 + $0x1c4] ss:$20 sps:$4 sm:$0xff]   ;;  %v5676_v57 = vsub.s32 0, %v5673_v56  ;;  %v96_v58 = vld [vmem:[#allocation9] ss:$8 sm:$0x3] }
  0x6d   :  { %638 = vmatpush1.bf16.msra.mxu0 %v4881_v19  ;;  %v5679_v59 = vsub.s32 1, %v5673_v56  ;;  %vm588_vm1 = vcmask 523264   ;;  %v4938_v8 = vld [vmem:[#allocation6 + $0x10] ss:$20 sps:$4 sm:$0xff]   ;;  %v4939_v10 = vld [vmem:[#allocation6 + $0x38] ss:$20 sps:$4 sm:$0xff]  }
  0x6e   :  { %639 = vmatprep.subr.bf16.mxu0 %v4889_v22  ;;  %601 = vmatpush1.bf16.msra.mxu1 %v4892_v24  ;;  %v101_v60 = vrot.slane %v96_v58, %v5676_v57  ;;  %v4940_v11 = vld [vmem:[#allocation6 + $0x60] ss:$20 sps:$4 sm:$0xff]   ;;  %v4941_v12 = vld [vmem:[#allocation6 + $0x88] ss:$20 sps:$4 sm:$0xff]   ;;  %v4942_v13 = vld [vmem:[#allocation6 + $0xb0] ss:$20 sps:$4 sm:$0xff]  }
  0x6f   :  { %602 = vmatprep.subr.bf16.mxu1 %v4896_v25  ;;  %v105_v61 = vrot.slane %v96_v58, %v5679_v59  ;;  %v4943_v14 = vld [vmem:[#allocation6 + $0xd8] ss:$20 sps:$4 sm:$0xff]   ;;  %v4944_v15 = vld [vmem:[#allocation6 + $0x100] ss:$20 sps:$4 sm:$0xff]   ;;  %v4945_v16 = vld [vmem:[#allocation6 + $0x128] ss:$20 sps:$4 sm:$0xff]  }
  0x70   :  { %v4946_v17 = vld [vmem:[#allocation6 + $0x150] ss:$20 sps:$4 sm:$0xff]   ;;  %v4947_v18 = vld [vmem:[#allocation6 + $0x178] ss:$20 sps:$4 sm:$0xff]   ;;  %v4948_v19 = vld [vmem:[#allocation6 + $0x1a0] ss:$20 sps:$4 sm:$0xff]  }
  0x71   :  { %640 = vmatpush1.bf16.msra.mxu0 %v4887_v23  ;;  %v4949_v20 = vld [vmem:[#allocation6 + $0x1c8] ss:$20 sps:$4 sm:$0xff]   ;;  %v5570_v21 = vmov 0.0   ;;  %vm5571_vm2 = vmmov 0   ;;  %s5572_s10 = smov 64   ;;  %vm782_vm3 = vcmask 1043456  }
  0x72   :  { %641 = vmatprep.subr.bf16.mxu0 %v4895_v26  ;;  %603 = vmatpush1.bf16.msra.mxu1 %v4898_v28  ;;  %v5709_v22 = vld [vmem:[%s5969_s3] ss:$2 sm:$0x1f]  ;;  %vm765_vm4 = vcmask 64512   ;;  %vm3845_vm5 = vcmask 57344   ;;  %vm4337_vm6 = vcmp.lt.s32.totalorder %v98_v55, 192 }
  0x73   :  { %604 = vmatprep.subr.bf16.mxu1 %v4902_v29  ;;  %v258_v23 = vrot.slane %v5709_v22, %v5679_v59 }
  0x75   :  { %642 = vmatpush1.bf16.msra.mxu0 %v4893_v27 }
  0x76   :  { %643 = vmatprep.subr.bf16.mxu0 %v4901_v30  ;;  %605 = vmatpush1.bf16.msra.mxu1 %v4904_v32 }
  0x77   :  { %606 = vmatprep.subr.bf16.mxu1 %v4908_v33 }
  0x79   :  { %644 = vmatpush1.bf16.msra.mxu0 %v4899_v31 }
  0x7a   :  { %645 = vmatprep.subr.bf16.mxu0 %v4907_v34  ;;  %607 = vmatpush1.bf16.msra.mxu1 %v4910_v36 }
  0x7b   :  { %608 = vmatprep.subr.bf16.mxu1 %v4914_v38  ;;  %v265_v38 = vsub.s32 3, %v5673_v56 }
  0x7d   :  { %646 = vmatpush1.bf16.msra.mxu0 %v4905_v35 }
  0x7e   :  { %647 = vmatprep.subr.bf16.mxu0 %v4913_v37  ;;  %609 = vmatpush1.bf16.msra.mxu1 %v4916_v39  ;;  %v266_v39 = vrot.slane %v5709_v22, %v265_v38 }
  0x7f   :  { %610 = vmatprep.subr.bf16.mxu1 %v4920_v41 }
  0x81   :  { %648 = vmatpush1.bf16.msra.mxu0 %v4911_v40  ;;  %v254_v40 = vrot.slane %v5709_v22, %v5676_v57 }
  0x82   :  { %649 = vmatprep.subr.bf16.mxu0 %v4919_v42  ;;  %611 = vmatpush1.bf16.msra.mxu1 %v4922_v43 }
  0x83   :  { %612 = vmatprep.subr.bf16.mxu1 %v4926_v47 }
  0x85   :  { %650 = vmatpush1.bf16.msra.mxu0 %v4917_v44 }
  0x86   :  { %651 = vmatprep.subr.bf16.mxu0 %v4925_v45  ;;  %613 = vmatpush1.bf16.msra.mxu1 %v4928_v48 }
  0x87   :  { %614 = vmatprep.subr.bf16.mxu1 %v4932_v51 }
  0x89   :  { %652 = vmatpush1.bf16.msra.mxu0 %v4923_v46 }
  0x8a   :  { %653 = vmatprep.subr.bf16.mxu0 %v4931_v49  ;;  %615 = vmatpush1.bf16.msra.mxu1 %v4934_v52 }
  0x8b   :  { %674 = vmatprep.subr.bf16.mxu1 %v5569_v0 }
  0x8d   :  { %654 = vmatpush1.bf16.msra.mxu0 %v4929_v50 }
  0x8e   :  { %655 = vmatprep.subr.bf16.mxu0 %v4937_v53 }
  0x91   :  { %656 = vmatpush1.bf16.msra.mxu0 %v4935_v54 }
  0x92   :  { %4771 = vmatprep.subr.bf16.mxu0 %v5570_v21 }
 0x137   :  { %v166_v62 = vpop.f32.mrb[0].mxu0 }
 0x138   :  { %v167_v63 = vadd.f32 %v166_v62, %v101_v60  ;;  %v168_v1 = vpop.f32.mrb[1].mxu0  ;;  %v261_v62 = vsub.s32 2, %v5673_v56 }
 0x139   :  { %v169_v2 = vadd.f32 %v168_v1, %v105_v61  ;;  %v170_v3 = vpop.f32.mrb[2].mxu0 }
 0x13a   :  { %v5683_v4 = vmax.f32 %v167_v63, 0.0  ;;  %v171_v5 = vpop.f32.mrb[3].mxu0  ;;  %v262_v1 = vrot.slane %v5709_v22, %v261_v62 }
 0x13b   :  { %v5685_v6 = vmax.f32 %v169_v2, 0.0 }
 0x13c   :  { %v247_v9 = vpack.c.bf16 %v5683_v4, %v5683_v4 }
 0x13d   :  { %v248_v7 = vpack.c.bf16 %v5685_v6, %v5685_v6 }
 0x13f   :  { %4412 = vmatprep.mubr.msk.bf16.mxu1 %vm588_vm1, %v248_v7  ;;  %4413 = vmatprep.mubr.msk.bf16.mxu0 %vm588_vm1, %v248_v7 }
 0x140   :  { %625 = vmatmul.mubr.bf16.vlgmr.msra.gmra.mrb[0].mxu1 %v247_v9  ;;  %666 = vmatmul.mubr.bf16.vlgmr.msra.gmra.mrb[4].mxu0 %v247_v9 }
 0x141   :  { %675 = vmatpush1.bf16.msra.mxu1 %v4938_v8  ;;  %4414 = vmatprep.mubr.msk.bf16.mxu1 %vm588_vm1, %v248_v7 }
 0x142   :  { %676 = vmatprep.subr.bf16.mxu1 %v5569_v0  ;;  %4773 = vmatprep.mubr.msk.bf16.mxu0 %vm5571_vm2, %v5570_v21 }
 0x145   :  { %677 = vmatpush1.bf16.msra.mxu1 %v4939_v10 }
 0x146   :  { %678 = vmatprep.subr.bf16.mxu1 %v5569_v0 }
 0x149   :  { %679 = vmatpush1.bf16.msra.mxu1 %v4940_v11 }
 0x14a   :  { %680 = vmatprep.subr.bf16.mxu1 %v5569_v0 }
 0x14d   :  { %681 = vmatpush1.bf16.msra.mxu1 %v4941_v12 }
 0x14e   :  { %682 = vmatprep.subr.bf16.mxu1 %v5569_v0 }
 0x151   :  { %683 = vmatpush1.bf16.msra.mxu1 %v4942_v13 }
 0x152   :  { %684 = vmatprep.subr.bf16.mxu1 %v5569_v0 }
 0x155   :  { %685 = vmatpush1.bf16.msra.mxu1 %v4943_v14 }
 0x156   :  { %686 = vmatprep.subr.bf16.mxu1 %v5569_v0 }
 0x159   :  { %687 = vmatpush1.bf16.msra.mxu1 %v4944_v15 }
 0x15a   :  { %688 = vmatprep.subr.bf16.mxu1 %v5569_v0 }
 0x15d   :  { %689 = vmatpush1.bf16.msra.mxu1 %v4945_v16 }
 0x15e   :  { %690 = vmatprep.subr.bf16.mxu1 %v5569_v0 }
 0x161   :  { %691 = vmatpush1.bf16.msra.mxu1 %v4946_v17 }
 0x162   :  { %692 = vmatprep.subr.bf16.mxu1 %v5569_v0 }
 0x165   :  { %693 = vmatpush1.bf16.msra.mxu1 %v4947_v18 }
 0x166   :  { %694 = vmatprep.subr.bf16.mxu1 %v5569_v0 }
 0x169   :  { %695 = vmatpush1.bf16.msra.mxu1 %v4948_v19 }
 0x16a   :  { %696 = vmatprep.subr.bf16.mxu1 %v5569_v0 }
 0x16d   :  { %697 = vmatpush1.bf16.msra.mxu1 %v4949_v20 }
 0x170   :  { %707 = vmatmul.mubr.bf16.vlgmr.msra.gmra.mrb[4].mxu1 %v247_v9 }
 0x213   :  { %v626_v24 = vpop.f32.mrb[0].mxu1  ;;  %v667_v25 = vpop.f32.mrb[4].mxu0 }
 0x214   :  { %v628_v26 = vpop.f32.mrb[1].mxu1  ;;  %v669_v27 = vpop.f32.mrb[5].mxu0  ;;  %v627_v44 = vadd.f32 %v626_v24, %v254_v40  ;;  %v668_v2 = vadd.f32 %v667_v25, %v262_v1  ;;  %v4956_v1 = vld [vmem:[#allocation7 + $0x20] ss:$8 sps:$4 sm:$0xff]  }
 0x215   :  { %v629_v28 = vadd.f32 %v628_v26, %v258_v23  ;;  %v630_v29 = vpop.f32.mrb[2].mxu1  ;;  %v671_v30 = vpop.f32.mrb[6].mxu0  ;;  %v670_v42 = vadd.f32 %v669_v27, %v266_v39 }
 0x216   :  { %v631_v31 = vpop.f32.mrb[3].mxu1  ;;  %v672_v32 = vpop.f32.mrb[7].mxu0  ;;  %v714_v46 = vpack.c.bf16 %v627_v44, %v627_v44  ;;  %v826_v5 = vpack.c.bf16 %v668_v2, %v668_v2  ;;  %v269_v30 = vsub.s32 4, %v5673_v56  ;;  %v4961_v2 = vld [vmem:[#allocation7 + $0x34] ss:$8 sps:$4 sm:$0xff]  }
 0x217   :  { %v5715_v33 = vpack.c.bf16 %v629_v28, %v629_v28  ;;  %v778_v45 = vpack.c.bf16 %v670_v42, %v670_v42 }
 0x218   :  { %v834_v9 = vsel %vm588_vm1, %v826_v5, 0  ;;  %v270_v32 = vrot.slane %v5709_v22, %v269_v30 }
 0x219   :  { %717 = vrot.lane.b32.xlu0 %v5715_v33, %s5572_s10  ;;  %v784_v47 = vsel %vm782_vm3, %v778_v45, 0 }
 0x243   :  { %v5719_v34 = vpop.f32.mrb[4].mxu1 }
 0x244   :  { %v710_v35 = vpop.f32.mrb[5].mxu1  ;;  %v709_v39 = vadd.f32 %v5719_v34, %v270_v32 }
 0x245   :  { %v711_v36 = vpop.f32.mrb[6].mxu1 }
 0x246   :  { %v712_v37 = vpop.f32.mrb[7].mxu1 }
 0x28b   :  { %v718_v41 = vpop.permute.xlu0 %717 }
 0x28c   :  { %v723_v43 = vsel %vm588_vm1, %v718_v41, 0  ;;  %v998_v41 = vpack.c.bf16 %v709_v39, %v709_v39 }
 0x28d   :  { %4772 = vmatpush3.bf16.xpose.msra.mxu0 %v723_v43 }
 0x28e   :  { %4777 = vmatprep.subr.bf16.mxu0 %v5570_v21  ;;  %v1003_v42 = vsel %vm782_vm3, %v998_v41, 0  ;;  %v1077_v41 = vld [vmem:[#allocation9 + $0x1] ss:$8 sm:$0x3] }
 0x294   :  { %4774 = vmatmul.mubr.msk.bf16.vlgmr.msra.gmra.mrb[8].mxu0 %vm588_vm1, %v714_v46 }
 0x295   :  { %4778 = vmatpush3.bf16.msra.mxu0 %v784_v47  ;;  %4779 = vmatprep.mubr.msk.bf16.mxu0 %vm5571_vm2, %v5570_v21 }
 0x296   :  { %4783 = vmatprep.subr.bf16.mxu0 %v5570_v21 }
 0x367   :  { %v759_v48 = vpop.f32.mrb[8].mxu0 }
 0x368   :  { %v4775_v49 = vpop.f32.mrb[9].mxu0  ;;  %v766_v50 = vsel %vm765_vm4, %v759_v48, -inf }
 0x369   :  { %767 = vmax.xlane.f32.xlu0 %v766_v50  ;;  %v762_v51 = vpop.f32.mrb[10].mxu0 }
 0x36a   :  { %v4776_v52 = vpop.f32.mrb[11].mxu0 }
 0x3f6   :  { %v768_v53 = vpop.xlane.xlu0 %767 }
 0x3f7   :  { %v769_v54 = vsub.f32 %v759_v48, %v768_v53 }
 0x3f9   :  { %v770_v58 = vmul.f32 1.442695, %v769_v54  ;;  %v4950_v54 = vld [vmem:[#allocation7] ss:$8 sps:$4 sm:$0xff]  }
 0x3fb   :  { %5394 = vpow2.f32 %v770_v58  ;;  %v4952_v58 = vld [vmem:[#allocation7 + $0x4] ss:$8 sps:$4 sm:$0xff]  }
 0x3fc   :  { %1212 = vmatprep.subr.bf16.mxu1 %v4952_v58  ;;  %v4992_v58 = vld [vmem:[#allocation7 + $0xe0] ss:$8 sps:$4 sm:$0xff]  }
 0x3fd   :  { %1213 = vmatpush1.bf16.msra.mxu1 %v4950_v54  ;;  %v4994_v54 = vld [vmem:[#allocation7 + $0xe4] ss:$8 sps:$4 sm:$0xff]  }
 0x405   :  { %v5395_v60 = vpop.eup %5394 }
 0x406   :  { %v772_v61 = vsel %vm765_vm4, %v5395_v60, 0.0 }
 0x407   :  { %773 = vadd.xlane.f32.xlu1 %v772_v61  ;;  %v4953_v61 = vld [vmem:[#allocation7 + $0x10] ss:$8 sps:$4 sm:$0xff]  }
 0x418   :  { %828 = vrot.lane.b32.xlu1 %v714_v46, %s5572_s10 }
 0x494   :  { %v774_v63 = vpop.xlane.xlu1 %773 }
 0x495   :  { %5396 = vrcp.f32 %v774_v63  ;;  %v4958_v63 = vld [vmem:[#allocation7 + $0x24] ss:$8 sps:$4 sm:$0xff]  }
 0x498   :  { %v829_v10 = vpop.permute.xlu1 %828 }
 0x49f   :  { %v5397_v3 = vpop.eup %5396 }
 0x4a0   :  { %v776_v7 = vmul.f32 %v5397_v3, %v5395_v60  ;;  %v4955_v60 = vld [vmem:[#allocation7 + $0x14] ss:$8 sps:$4 sm:$0xff]   ;;  %v4959_v3 = vld [vmem:[#allocation7 + $0x30] ss:$8 sps:$4 sm:$0xff]  }
 0x4a1   :  { %1214 = vmatprep.subr.bf16.mxu1 %v4955_v60  ;;  %v4997_v60 = vld [vmem:[#allocation7 + $0xf4] ss:$8 sps:$4 sm:$0xff]  }
 0x4a2   :  { %v777_v8 = vpack.c.bf16 %v776_v7, %v776_v7  ;;  %1215 = vmatpush1.bf16.msra.mxu1 %v4953_v61  ;;  %v4962_v7 = vld [vmem:[#allocation7 + $0x40] ss:$8 sps:$4 sm:$0xff]  }
 0x4a3   :  { %1216 = vmatprep.subr.bf16.mxu1 %v4958_v63  ;;  %v4998_v61 = vld [vmem:[#allocation7 + $0x100] ss:$8 sps:$4 sm:$0xff]   ;;  %v5003_v63 = vld [vmem:[#allocation7 + $0x114] ss:$8 sps:$4 sm:$0xff]  }
 0x4a4   :  { %4780 = vmatmul.mubr.msk.bf16.vlgmr.msra.gmra.mrb[12].mxu0 %vm765_vm4, %v777_v8  ;;  %v4967_v8 = vld [vmem:[#allocation7 + $0x54] ss:$8 sps:$4 sm:$0xff]  }
 0x4a5   :  { %4784 = vmatpush3.bf16.xpose.msra.mxu0 %v834_v9  ;;  %4785 = vmatprep.mubr.msk.bf16.mxu0 %vm5571_vm2, %v5570_v21  ;;  %v4965_v9 = vld [vmem:[#allocation7 + $0x50] ss:$8 sps:$4 sm:$0xff]  }
 0x4a6   :  { %4789 = vmatprep.subr.bf16.mxu0 %v5570_v21  ;;  %1217 = vmatpush1.bf16.msra.mxu1 %v4956_v1  ;;  %v5001_v1 = vld [vmem:[#allocation7 + $0x110] ss:$8 sps:$4 sm:$0xff]  }
 0x4a7   :  { %1218 = vmatprep.subr.bf16.mxu1 %v4961_v2 }
 0x4aa   :  { %1219 = vmatpush1.bf16.msra.mxu1 %v4959_v3 }
 0x4ac   :  { %4786 = vmatmul.mubr.msk.bf16.vlgmr.msra.gmra.mrb[16].mxu0 %vm588_vm1, %v829_v10  ;;  %v4970_v10 = vld [vmem:[#allocation7 + $0x64] ss:$8 sps:$4 sm:$0xff]  }
 0x4ad   :  { %4791 = vmatprep.mubr.msk.bf16.mxu0 %vm5571_vm2, %v5570_v21 }
 0x577   :  { %v5749_v11 = vpop.f32.mrb[12].mxu0 }
 0x578   :  { %v4781_v12 = vpop.f32.mrb[13].mxu0 }
 0x579   :  { %v823_v13 = vpop.f32.mrb[14].mxu0  ;;  %v4968_v12 = vld [vmem:[#allocation7 + $0x60] ss:$8 sps:$4 sm:$0xff]  }
 0x57a   :  { %v4782_v14 = vpop.f32.mrb[15].mxu0  ;;  %v4973_v13 = vld [vmem:[#allocation7 + $0x74] ss:$8 sps:$4 sm:$0xff]  }
 0x57b   :  { %v4971_v14 = vld [vmem:[#allocation7 + $0x70] ss:$8 sps:$4 sm:$0xff]  }
 0x57f   :  { %v870_v15 = vpop.f32.mrb[16].mxu0 }
 0x580   :  { %v4787_v16 = vpop.f32.mrb[17].mxu0  ;;  %v876_v17 = vsel %vm765_vm4, %v870_v15, -inf }
 0x581   :  { %877 = vmax.xlane.f32.xlu1 %v876_v17  ;;  %v873_v18 = vpop.f32.mrb[18].mxu0  ;;  %v4974_v16 = vld [vmem:[#allocation7 + $0x80] ss:$8 sps:$4 sm:$0xff]   ;;  %v4979_v17 = vld [vmem:[#allocation7 + $0x94] ss:$8 sps:$4 sm:$0xff]  }
 0x582   :  { %v4788_v19 = vpop.f32.mrb[19].mxu0  ;;  %v4977_v18 = vld [vmem:[#allocation7 + $0x90] ss:$8 sps:$4 sm:$0xff]  }
 0x583   :  { %v4982_v19 = vld [vmem:[#allocation7 + $0xa4] ss:$8 sps:$4 sm:$0xff]  }
 0x592   :  { %938 = vrot.lane.b32.xlu1 %v826_v5, %s5572_s10  ;;  %v4964_v5 = vld [vmem:[#allocation7 + $0x44] ss:$8 sps:$4 sm:$0xff]  }
 0x593   :  { %1220 = vmatprep.subr.bf16.mxu1 %v4964_v5 }
 0x594   :  { %1221 = vmatpush1.bf16.msra.mxu1 %v4962_v7 }
 0x595   :  { %1222 = vmatprep.subr.bf16.mxu1 %v4967_v8 }
 0x598   :  { %1223 = vmatpush1.bf16.msra.mxu1 %v4965_v9 }
 0x599   :  { %1224 = vmatprep.subr.bf16.mxu1 %v4970_v10 }
 0x59c   :  { %1225 = vmatpush1.bf16.msra.mxu1 %v4968_v12 }
 0x59d   :  { %1226 = vmatprep.subr.bf16.mxu1 %v4973_v13  ;;  %v5006_v13 = vld [vmem:[#allocation7 + $0x124] ss:$8 sps:$4 sm:$0xff]  }
 0x5a0   :  { %1227 = vmatpush1.bf16.msra.mxu1 %v4971_v14  ;;  %v5004_v14 = vld [vmem:[#allocation7 + $0x120] ss:$8 sps:$4 sm:$0xff]  }
 0x60e   :  { %v878_v20 = vpop.xlane.xlu1 %877 }
 0x60f   :  { %v879_v23 = vsub.f32 %v870_v15, %v878_v20  ;;  %v4976_v15 = vld [vmem:[#allocation7 + $0x84] ss:$8 sps:$4 sm:$0xff]   ;;  %v4980_v20 = vld [vmem:[#allocation7 + $0xa0] ss:$8 sps:$4 sm:$0xff]  }
 0x610   :  { %1228 = vmatprep.subr.bf16.mxu1 %v4976_v15  ;;  %v5009_v15 = vld [vmem:[#allocation7 + $0x134] ss:$8 sps:$4 sm:$0xff]  }
 0x611   :  { %v880_v24 = vmul.f32 1.442695, %v879_v23  ;;  %1229 = vmatpush1.bf16.msra.mxu1 %v4974_v16  ;;  %v5007_v16 = vld [vmem:[#allocation7 + $0x130] ss:$8 sps:$4 sm:$0xff]  }
 0x612   :  { %v939_v36 = vpop.permute.xlu1 %938  ;;  %1230 = vmatprep.subr.bf16.mxu1 %v4979_v17  ;;  %v5012_v17 = vld [vmem:[#allocation7 + $0x144] ss:$8 sps:$4 sm:$0xff]  }
 0x613   :  { %5398 = vpow2.f32 %v880_v24  ;;  %v944_v40 = vsel %vm588_vm1, %v939_v36, 0 }
 0x615   :  { %1231 = vmatpush1.bf16.msra.mxu1 %v4977_v18  ;;  %v5010_v18 = vld [vmem:[#allocation7 + $0x140] ss:$8 sps:$4 sm:$0xff]  }
 0x616   :  { %1232 = vmatprep.subr.bf16.mxu1 %v4982_v19  ;;  %v5015_v19 = vld [vmem:[#allocation7 + $0x154] ss:$8 sps:$4 sm:$0xff]  }
 0x619   :  { %1233 = vmatpush1.bf16.msra.mxu1 %v4980_v20  ;;  %v5013_v20 = vld [vmem:[#allocation7 + $0x150] ss:$8 sps:$4 sm:$0xff]  }
 0x61d   :  { %v5399_v25 = vpop.eup %5398 }
 0x61e   :  { %v882_v26 = vsel %vm765_vm4, %v5399_v25, 0.0 }
 0x61f   :  { %883 = vadd.xlane.f32.xlu0 %v882_v26 }
 0x635   :  { %889 = vrot.lane.b32.xlu0 %v778_v45, %s5572_s10 }
 0x6ac   :  { %v884_v27 = vpop.xlane.xlu0 %883 }
 0x6ad   :  { %5400 = vrcp.f32 %v884_v27  ;;  %v4985_v27 = vld [vmem:[#allocation7 + $0xb4] ss:$8 sps:$4 sm:$0xff]  }
 0x6ae   :  { %1234 = vmatprep.subr.bf16.mxu1 %v4985_v27  ;;  %v5022_v27 = vld [vmem:[#allocation7 + $0x180] ss:$8 sps:$4 sm:$0xff]  }
 0x6b0   :  { %v890_v28 = vpop.permute.xlu0 %889 }
 0x6b1   :  { %v895_v29 = vsel %vm782_vm3, %v890_v28, 0  ;;  %v4983_v28 = vld [vmem:[#allocation7 + $0xb0] ss:$8 sps:$4 sm:$0xff]  }
 0x6b2   :  { %4790 = vmatpush3.bf16.msra.mxu0 %v895_v29  ;;  %1235 = vmatpush1.bf16.msra.mxu1 %v4983_v28  ;;  %v5024_v28 = vld [vmem:[#allocation7 + $0x184] ss:$8 sps:$4 sm:$0xff]  }
 0x6b3   :  { %4795 = vmatprep.subr.bf16.mxu0 %v5570_v21  ;;  %1673 = vmatprep.subr.bf16.mxu1 %v5024_v28 }
 0x6b7   :  { %v5401_v31 = vpop.eup %5400 }
 0x6b8   :  { %v886_v35 = vmul.f32 %v5401_v31, %v5399_v25 }
 0x6ba   :  { %v887_v37 = vpack.c.bf16 %v886_v35, %v886_v35 }
 0x6bc   :  { %4792 = vmatmul.mubr.msk.bf16.vlgmr.msra.gmra.mrb[20].mxu0 %vm765_vm4, %v887_v37 }
 0x6bd   :  { %4796 = vmatpush3.bf16.xpose.msra.mxu0 %v944_v40  ;;  %4797 = vmatprep.mubr.msk.bf16.mxu0 %vm5571_vm2, %v5570_v21 }
 0x6be   :  { %4801 = vmatprep.subr.bf16.mxu0 %v5570_v21 }
 0x6c4   :  { %4798 = vmatmul.mubr.msk.bf16.vlgmr.msra.gmra.mrb[24].mxu0 %vm588_vm1, %v5715_v33 }
 0x6c5   :  { %4802 = vmatpush3.bf16.msra.mxu0 %v1003_v42  ;;  %4803 = vmatprep.mubr.msk.bf16.mxu0 %vm5571_vm2, %v5570_v21  ;;  %v1082_v42 = vrot.slane %v1077_v41, %v5676_v57 }
 0x78f   :  { %v931_v22 = vpop.f32.mrb[20].mxu0 }
 0x790   :  { %v4793_v34 = vpop.f32.mrb[21].mxu0 }
 0x791   :  { %v934_v43 = vpop.f32.mrb[22].mxu0 }
 0x792   :  { %v4794_v44 = vpop.f32.mrb[23].mxu0 }
 0x797   :  { %v980_v45 = vpop.f32.mrb[24].mxu0 }
 0x798   :  { %v4799_v46 = vpop.f32.mrb[25].mxu0  ;;  %v986_v47 = vsel %vm765_vm4, %v980_v45, -inf }
 0x799   :  { %987 = vmax.xlane.f32.xlu0 %v986_v47  ;;  %v983_v48 = vpop.f32.mrb[26].mxu0 }
 0x79a   :  { %v4800_v49 = vpop.f32.mrb[27].mxu0 }
 0x7af   :  { %1046 = vrot.lane.b32.xlu0 %v931_v22, %s5572_s10  ;;  %v1086_v22 = vrot.slane %v1077_v41, %v5679_v59  ;;  %v5039_v41 = vld [vmem:[#allocation7 + $0x1d4] ss:$8 sps:$4 sm:$0xff]  }
 0x826   :  { %v988_v50 = vpop.xlane.xlu0 %987 }
 0x827   :  { %v989_v51 = vsub.f32 %v980_v45, %v988_v50 }
 0x829   :  { %v990_v33 = vmul.f32 1.442695, %v989_v51  ;;  %v4986_v51 = vld [vmem:[#allocation7 + $0xc0] ss:$8 sps:$4 sm:$0xff]  }
 0x82a   :  { %v1047_v29 = vpop.permute.xlu0 %1046 }
 0x82b   :  { %5402 = vpow2.f32 %v990_v33  ;;  %v1049_v31 = vsel %vm588_vm1, %v5749_v11, %v1047_v29  ;;  %v4988_v33 = vld [vmem:[#allocation7 + $0xc4] ss:$8 sps:$4 sm:$0xff]   ;;  %v5027_v29 = vld [vmem:[#allocation7 + $0x194] ss:$8 sps:$4 sm:$0xff]  }
 0x82c   :  { %v1074_v37 = vpack.c.bf16 %v1049_v31, %v1049_v31  ;;  %1467 = vmatprep.subr.bf16.mxu0 %v4988_v33  ;;  %v5025_v31 = vld [vmem:[#allocation7 + $0x190] ss:$8 sps:$4 sm:$0xff]   ;;  %v1258_v33 = vld [vmem:[#allocation9 + $0x5] ss:$8 sm:$0x3] }
 0x835   :  { %v5403_v52 = vpop.eup %5402 }
 0x836   :  { %v992_v53 = vsel %vm765_vm4, %v5403_v52, 0.0 }
 0x837   :  { %993 = vadd.xlane.f32.xlu1 %v992_v53  ;;  %v4989_v53 = vld [vmem:[#allocation7 + $0xd0] ss:$8 sps:$4 sm:$0xff]  }
 0x8c4   :  { %v994_v23 = vpop.xlane.xlu1 %993 }
 0x8c5   :  { %5404 = vrcp.f32 %v994_v23  ;;  %v5016_v23 = vld [vmem:[#allocation7 + $0x160] ss:$8 sps:$4 sm:$0xff]  }
 0x8cf   :  { %v5405_v24 = vpop.eup %5404 }
 0x8d0   :  { %v996_v25 = vmul.f32 %v5405_v24, %v5403_v52  ;;  %v4991_v52 = vld [vmem:[#allocation7 + $0xd4] ss:$8 sps:$4 sm:$0xff]   ;;  %v5018_v24 = vld [vmem:[#allocation7 + $0x164] ss:$8 sps:$4 sm:$0xff]  }
 0x8d2   :  { %v997_v26 = vpack.c.bf16 %v996_v25, %v996_v25  ;;  %v5021_v25 = vld [vmem:[#allocation7 + $0x174] ss:$8 sps:$4 sm:$0xff]  }
 0x8d4   :  { %4804 = vmatmul.mubr.msk.bf16.vlgmr.msra.gmra.mrb[28].mxu0 %vm765_vm4, %v997_v26  ;;  %v5019_v26 = vld [vmem:[#allocation7 + $0x170] ss:$8 sps:$4 sm:$0xff]  }
 0x8d5   :  { %1468 = vmatpush1.bf16.msra.mxu0 %v4986_v51  ;;  %v1256_v51 = vld [vmem:[#allocation9 + $0x3] ss:$8 sm:$0x3] }
 0x8d6   :  { %1469 = vmatprep.subr.bf16.mxu0 %v4991_v52  ;;  %v1286_v52 = vrot.slane %v1256_v51, %v5679_v59 }
 0x8d9   :  { %1470 = vmatpush1.bf16.msra.mxu0 %v4989_v53  ;;  %v1282_v53 = vrot.slane %v1256_v51, %v5676_v57  ;;  %v5070_v51 = vld [vmem:[#allocation6 + $0x230] ss:$20 sps:$4 sm:$0xff]  }
 0x8da   :  { %1471 = vmatprep.subr.bf16.mxu0 %v4994_v54 }
 0x8dd   :  { %1472 = vmatpush1.bf16.msra.mxu0 %v4992_v58 }
 0x8de   :  { %1473 = vmatprep.subr.bf16.mxu0 %v4997_v60 }
 0x9a7   :  { %v1039_v32 = vpop.f32.mrb[28].mxu0 }
 0x9a8   :  { %v1075_v35 = vpack.c.bf16 %v1039_v32, %v1039_v32  ;;  %v4805_v36 = vpop.f32.mrb[29].mxu0  ;;  %v5030_v32 = vld [vmem:[#allocation7 + $0x1a4] ss:$8 sps:$4 sm:$0xff]  }
 0x9a9   :  { %v1042_v39 = vpop.f32.mrb[30].mxu0  ;;  %v5033_v36 = vld [vmem:[#allocation7 + $0x1b4] ss:$8 sps:$4 sm:$0xff]  }
 0x9aa   :  { %v4806_v40 = vpop.f32.mrb[31].mxu0  ;;  %4445 = vmatprep.mubr.msk.bf16.mxu1 %vm588_vm1, %v1075_v35  ;;  %v5028_v35 = vld [vmem:[#allocation7 + $0x1a0] ss:$8 sps:$4 sm:$0xff]   ;;  %v5036_v39 = vld [vmem:[#allocation7 + $0x1c4] ss:$8 sps:$4 sm:$0xff]  }
 0x9ab   :  { %1245 = vmatmul.mubr.bf16.vlgmr.msra.gmra.mrb[8].mxu1 %v1074_v37  ;;  %v5031_v37 = vld [vmem:[#allocation7 + $0x1b0] ss:$8 sps:$4 sm:$0xff]   ;;  %v5034_v40 = vld [vmem:[#allocation7 + $0x1c0] ss:$8 sps:$4 sm:$0xff]  }
 0x9ac   :  { %1674 = vmatpush1.bf16.msra.mxu1 %v5022_v27  ;;  %v1538_v27 = vld [vmem:[#allocation9 + $0x11] ss:$8 sm:$0x3] }
 0x9ad   :  { %1675 = vmatprep.subr.bf16.mxu1 %v5027_v29  ;;  %v1543_v28 = vrot.slane %v1538_v27, %v5676_v57  ;;  %v1547_v29 = vrot.slane %v1538_v27, %v5679_v59  ;;  %v5111_v27 = vld [vmem:[#allocation6 + $0x32c] ss:$20 sps:$4 sm:$0xff]  }
 0x9b0   :  { %1676 = vmatpush1.bf16.msra.mxu1 %v5025_v31 }
 0x9b1   :  { %1677 = vmatprep.subr.bf16.mxu1 %v5030_v32 }
 0x9b4   :  { %1678 = vmatpush1.bf16.msra.mxu1 %v5028_v35 }
 0x9b5   :  { %1679 = vmatprep.subr.bf16.mxu1 %v5033_v36 }
 0x9b8   :  { %1680 = vmatpush1.bf16.msra.mxu1 %v5031_v37 }
 0x9b9   :  { %1681 = vmatprep.subr.bf16.mxu1 %v5036_v39 }
 0x9bc   :  { %1682 = vmatpush1.bf16.msra.mxu1 %v5034_v40 }
 0x9bd   :  { %1683 = vmatprep.subr.bf16.mxu1 %v5039_v41 }
 0xa7e   :  { %v1246_v34 = vpop.f32.mrb[8].mxu1 }
 0xa7f   :  { %v1247_v43 = vadd.f32 %v1246_v34, %v1082_v42  ;;  %v1248_v44 = vpop.f32.mrb[9].mxu1  ;;  %v5037_v42 = vld [vmem:[#allocation7 + $0x1d0] ss:$8 sps:$4 sm:$0xff]   ;;  %v5040_v34 = vld [vmem:[#allocation7 + $0x1e0] ss:$8 sps:$4 sm:$0xff]  }
 0xa80   :  { %v1249_v45 = vadd.f32 %v1248_v44, %v1086_v22  ;;  %v1250_v46 = vpop.f32.mrb[10].mxu1  ;;  %v5042_v22 = vld [vmem:[#allocation7 + $0x1e4] ss:$8 sps:$4 sm:$0xff]   ;;  %1684 = vmatpush1.bf16.msra.mxu1 %v5037_v42  ;;  %v5043_v44 = vld [vmem:[#allocation7 + $0x1f0] ss:$8 sps:$4 sm:$0xff]  }
 0xa81   :  { %v1251_v11 = vpop.f32.mrb[11].mxu1  ;;  %v1253_v48 = vadd.f32 %v1247_v43, %v5683_v4  ;;  %v5000_v4 = vld [vmem:[#allocation7 + $0x104] ss:$8 sps:$4 sm:$0xff]   ;;  %1685 = vmatprep.subr.bf16.mxu1 %v5042_v22  ;;  %v5045_v43 = vld [vmem:[#allocation7 + $0x1f4] ss:$8 sps:$4 sm:$0xff]  }
 0xa82   :  { %v1254_v47 = vadd.f32 %v1249_v45, %v5685_v6  ;;  %v4995_v6 = vld [vmem:[#allocation7 + $0xf0] ss:$8 sps:$4 sm:$0xff]   ;;  %v5048_v45 = vld [vmem:[#allocation7 + $0x204] ss:$8 sps:$4 sm:$0xff]   ;;  %v5046_v46 = vld [vmem:[#allocation7 + $0x200] ss:$8 sps:$4 sm:$0xff]  }
 0xa83   :  { %1474 = vmatpush1.bf16.msra.mxu0 %v4995_v6  ;;  %v5051_v11 = vld [vmem:[#allocation7 + $0x214] ss:$8 sps:$4 sm:$0xff]   ;;  %v1299_v6 = vrot.slane %v1258_v33, %v5679_v59 }
 0xa84   :  { %v1259_v49 = vsel %vm588_vm1, %v1254_v47, 0.0  ;;  %1475 = vmatprep.subr.bf16.mxu0 %v5000_v4  ;;  %1686 = vmatpush1.bf16.msra.mxu1 %v5040_v34  ;;  %v1295_v4 = vrot.slane %v1258_v33, %v5676_v57  ;;  %v5058_v34 = vld [vmem:[#allocation6 + $0x1e0] ss:$20 sps:$4 sm:$0xff]   ;;  %v5073_v33 = vld [vmem:[#allocation6 + $0x238] ss:$20 sps:$4 sm:$0xff]  }
 0xa85   :  { %v1260_v50 = vadd.f32 %v1259_v49, %v1253_v48  ;;  %1687 = vmatprep.subr.bf16.mxu1 %v5045_v43  ;;  %v5060_v43 = vld [vmem:[#allocation6 + $0x1e4] ss:$20 sps:$4 sm:$0xff]  }
 0xa87   :  { %1261 = vadd.xlane.f32.xlu1 %v1260_v50  ;;  %1476 = vmatpush1.bf16.msra.mxu0 %v4998_v61 }
 0xa88   :  { %1477 = vmatprep.subr.bf16.mxu0 %v5003_v63  ;;  %1688 = vmatpush1.bf16.msra.mxu1 %v5043_v44  ;;  %v5061_v44 = vld [vmem:[#allocation6 + $0x1e8] ss:$20 sps:$4 sm:$0xff]  }
 0xa89   :  { %1689 = vmatprep.subr.bf16.mxu1 %v5048_v45  ;;  %v5063_v45 = vld [vmem:[#allocation6 + $0x1ec] ss:$20 sps:$4 sm:$0xff]  }
 0xa8b   :  { %1478 = vmatpush1.bf16.msra.mxu0 %v5001_v1 }
 0xa8c   :  { %1479 = vmatprep.subr.bf16.mxu0 %v5006_v13  ;;  %1690 = vmatpush1.bf16.msra.mxu1 %v5046_v46  ;;  %v5066_v46 = vld [vmem:[#allocation6 + $0x20c] ss:$20 sps:$4 sm:$0xff]  }
 0xa8d   :  { %1691 = vmatprep.subr.bf16.mxu1 %v5051_v11  ;;  %v5069_v11 = vld [vmem:[#allocation6 + $0x214] ss:$20 sps:$4 sm:$0xff]  }
 0xa8f   :  { %1480 = vmatpush1.bf16.msra.mxu0 %v5004_v14 }
 0xa90   :  { %1481 = vmatprep.subr.bf16.mxu0 %v5009_v15 }
 0xa93   :  { %1482 = vmatpush1.bf16.msra.mxu0 %v5007_v16 }
 0xa94   :  { %1483 = vmatprep.subr.bf16.mxu0 %v5012_v17 }
 0xa97   :  { %1484 = vmatpush1.bf16.msra.mxu0 %v5010_v18 }
 0xa98   :  { %1485 = vmatprep.subr.bf16.mxu0 %v5015_v19 }
 0xa9b   :  { %1486 = vmatpush1.bf16.msra.mxu0 %v5013_v20 }
 0xa9c   :  { %1487 = vmatprep.subr.bf16.mxu0 %v5018_v24 }
 0xa9f   :  { %1488 = vmatpush1.bf16.msra.mxu0 %v5016_v23 }
 0xaa0   :  { %1489 = vmatprep.subr.bf16.mxu0 %v5021_v25 }
 0xaa3   :  { %1490 = vmatpush1.bf16.msra.mxu0 %v5019_v26 }
 0xaa4   :  { %2182 = vmatprep.subr.bf16.mxu0 %v5060_v43 }
 0xb14   :  { %v1262_v2 = vpop.xlane.xlu1 %1261 }
 0xb15   :  { %v1264_v3 = vmul.f32 0.0052083335, %v1262_v2 }
 0xb17   :  { %v5784_v5 = vsub.f32 %v1253_v48, %v1264_v3  ;;  %v5786_v7 = vsub.f32 %v1254_v47, %v1264_v3  ;;  %v5049_v47 = vld [vmem:[#allocation7 + $0x210] ss:$8 sps:$4 sm:$0xff]  }
 0xb18   :  { %1692 = vmatpush1.bf16.msra.mxu1 %v5049_v47  ;;  %v5064_v47 = vld [vmem:[#allocation6 + $0x208] ss:$20 sps:$4 sm:$0xff]  }
 0xb19   :  { %v1267_v8 = vmul.f32 %v5784_v5, %v5784_v5  ;;  %v1268_v9 = vmul.f32 %v5786_v7, %v5786_v7 }
 0xb1b   :  { %v1269_v10 = vsel %vm588_vm1, %v1268_v9, 0.0  ;;  %v5054_v9 = vld [vmem:[#allocation7 + $0x224] ss:$8 sps:$4 sm:$0xff]  }
 0xb1c   :  { %v1270_v12 = vadd.f32 %v1269_v10, %v1267_v8  ;;  %v5052_v10 = vld [vmem:[#allocation7 + $0x220] ss:$8 sps:$4 sm:$0xff]   ;;  %1693 = vmatprep.subr.bf16.mxu1 %v5054_v9  ;;  %v5094_v9 = vld [vmem:[#allocation6 + $0x2d0] ss:$20 sps:$4 sm:$0xff]  }
 0xb1d   :  { %1694 = vmatpush1.bf16.msra.mxu1 %v5052_v10 }
 0xb1e   :  { %1271 = vadd.xlane.f32.xlu0 %v1270_v12  ;;  %v5055_v12 = vld [vmem:[#allocation7 + $0x230] ss:$8 sps:$4 sm:$0xff]  }
 0xbab   :  { %v1272_v48 = vpop.xlane.xlu0 %1271 }
 0xbac   :  { %v1273_v49 = vmul.f32 0.0052083335, %v1272_v48  ;;  %v5067_v48 = vld [vmem:[#allocation6 + $0x210] ss:$20 sps:$4 sm:$0xff]  }
 0xbae   :  { %v1274_v50 = vadd.f32 1e-05, %v1273_v49  ;;  %v5072_v49 = vld [vmem:[#allocation6 + $0x234] ss:$20 sps:$4 sm:$0xff]  }
 0xbb0   :  { %5406 = vrsqrt.f32 %v1274_v50  ;;  %v5075_v50 = vld [vmem:[#allocation6 + $0x23c] ss:$20 sps:$4 sm:$0xff]  }
 0xbba   :  { %v5407_v54 = vpop.eup %5406 }
 0xbbb   :  { %v1276_v58 = vmul.f32 %v5407_v54, %v5784_v5  ;;  %v1277_v60 = vmul.f32 %v5407_v54, %v5786_v7  ;;  %v5057_v5 = vld [vmem:[#allocation7 + $0x234] ss:$8 sps:$4 sm:$0xff]   ;;  %v1332_v7 = vld [vmem:[#allocation9 + $0x7] ss:$8 sm:$0x3] }
 0xbbc   :  { %1695 = vmatprep.subr.bf16.mxu1 %v5057_v5  ;;  %v1337_v13 = vrot.slane %v1332_v7, %v5676_v57  ;;  %v1341_v14 = vrot.slane %v1332_v7, %v5679_v59  ;;  %v5076_v54 = vld [vmem:[#allocation6 + $0x258] ss:$20 sps:$4 sm:$0xff]  }
 0xbbd   :  { %v1290_v61 = vmul.f32 %v1286_v52, %v1277_v60  ;;  %v1289_v63 = vmul.f32 %v1282_v53, %v1276_v58  ;;  %1696 = vmatpush1.bf16.msra.mxu1 %v5055_v12  ;;  %v5078_v52 = vld [vmem:[#allocation6 + $0x25c] ss:$20 sps:$4 sm:$0xff]   ;;  %v5081_v53 = vld [vmem:[#allocation6 + $0x264] ss:$20 sps:$4 sm:$0xff]   ;;  %v5079_v58 = vld [vmem:[#allocation6 + $0x260] ss:$20 sps:$4 sm:$0xff]  }
 0xbbe   :  { %2223 = vmatprep.subr.bf16.mxu1 %v5063_v45  ;;  %v5084_v60 = vld [vmem:[#allocation6 + $0x284] ss:$20 sps:$4 sm:$0xff]  }
 0xbbf   :  { %v1303_v1 = vadd.f32 %v1299_v6, %v1290_v61  ;;  %v1302_v2 = vadd.f32 %v1295_v4, %v1289_v63  ;;  %v5087_v6 = vld [vmem:[#allocation6 + $0x28c] ss:$20 sps:$4 sm:$0xff]   ;;  %v5085_v61 = vld [vmem:[#allocation6 + $0x288] ss:$20 sps:$4 sm:$0xff]  }
 0xbc0   :  { %v5082_v4 = vld [vmem:[#allocation6 + $0x280] ss:$20 sps:$4 sm:$0xff]  }
 0xbc1   :  { %v1330_v3 = vpack.c.bf16 %v1303_v1, %v1303_v1  ;;  %v1329_v8 = vpack.c.bf16 %v1302_v2, %v1302_v2  ;;  %v5090_v63 = vld [vmem:[#allocation6 + $0x2ac] ss:$20 sps:$4 sm:$0xff]  }
 0xbc3   :  { %4470 = vmatprep.mubr.msk.bf16.mxu0 %vm588_vm1, %v1330_v3  ;;  %v5091_v3 = vld [vmem:[#allocation6 + $0x2b0] ss:$20 sps:$4 sm:$0xff]  }
 0xbc4   :  { %1500 = vmatmul.mubr.bf16.vlgmr.msra.gmra.mrb[32].mxu0 %v1329_v8  ;;  %v5096_v8 = vld [vmem:[#allocation6 + $0x2d4] ss:$20 sps:$4 sm:$0xff]  }
 0xbc5   :  { %2183 = vmatpush1.bf16.msra.mxu0 %v5058_v34  ;;  %v5127_v34 = vld [vmem:[#allocation6 + $0x3a0] ss:$20 sps:$4 sm:$0xff]  }
 0xbc6   :  { %2184 = vmatprep.subr.bf16.mxu0 %v5066_v46  ;;  %v1717_v46 = vld [vmem:[#allocation9 + $0x13] ss:$8 sm:$0x3] }
 0xbc9   :  { %2185 = vmatpush1.bf16.msra.mxu0 %v5064_v47  ;;  %v1746_v47 = vrot.slane %v1717_v46, %v5679_v59 }
 0xbca   :  { %2186 = vmatprep.subr.bf16.mxu0 %v5072_v49 }
 0xbcd   :  { %2187 = vmatpush1.bf16.msra.mxu0 %v5070_v51 }
 0xbce   :  { %2188 = vmatprep.subr.bf16.mxu0 %v5078_v52 }
 0xbd1   :  { %2189 = vmatpush1.bf16.msra.mxu0 %v5076_v54 }
 0xbd2   :  { %2190 = vmatprep.subr.bf16.mxu0 %v5084_v60 }
 0xbd5   :  { %2191 = vmatpush1.bf16.msra.mxu0 %v5082_v4 }
 0xbd6   :  { %2192 = vmatprep.subr.bf16.mxu0 %v5090_v63  ;;  %v5131_v63 = vld [vmem:[#allocation6 + $0x218] ss:$20 sps:$4 sm:$0xff]  }
 0xc97   :  { %v1501_v15 = vpop.f32.mrb[32].mxu0 }
 0xc98   :  { %v1502_v16 = vadd.f32 %v1501_v15, %v1337_v13  ;;  %v1503_v17 = vpop.f32.mrb[33].mxu0 }
 0xc99   :  { %v1504_v18 = vadd.f32 %v1503_v17, %v1341_v14  ;;  %v1505_v19 = vpop.f32.mrb[34].mxu0  ;;  %v5099_v17 = vld [vmem:[#allocation6 + $0x2dc] ss:$20 sps:$4 sm:$0xff]  }
 0xc9a   :  { %v1508_v20 = vmax.f32 %v1502_v16, 0.0  ;;  %v1506_v23 = vpop.f32.mrb[35].mxu0  ;;  %v5102_v19 = vld [vmem:[#allocation6 + $0x2fc] ss:$20 sps:$4 sm:$0xff]  }
 0xc9b   :  { %v1509_v24 = vmax.f32 %v1504_v18, 0.0  ;;  %v5097_v18 = vld [vmem:[#allocation6 + $0x2d8] ss:$20 sps:$4 sm:$0xff]  }
 0xc9c   :  { %v1535_v26 = vpack.c.bf16 %v1508_v20, %v1508_v20  ;;  %v5100_v20 = vld [vmem:[#allocation6 + $0x2f8] ss:$20 sps:$4 sm:$0xff]  }
 0xc9d   :  { %v1536_v25 = vpack.c.bf16 %v1509_v24, %v1509_v24  ;;  %v5105_v23 = vld [vmem:[#allocation6 + $0x304] ss:$20 sps:$4 sm:$0xff]   ;;  %v5103_v24 = vld [vmem:[#allocation6 + $0x300] ss:$20 sps:$4 sm:$0xff]  }
 0xc9f   :  { %4495 = vmatprep.mubr.msk.bf16.mxu1 %vm588_vm1, %v1536_v25  ;;  %v5108_v25 = vld [vmem:[#allocation6 + $0x324] ss:$20 sps:$4 sm:$0xff]  }
 0xca0   :  { %1706 = vmatmul.mubr.bf16.vlgmr.msra.gmra.mrb[12].mxu1 %v1535_v26  ;;  %v5106_v26 = vld [vmem:[#allocation6 + $0x320] ss:$20 sps:$4 sm:$0xff]  }
 0xca1   :  { %2224 = vmatpush1.bf16.msra.mxu1 %v5061_v44 }
 0xca2   :  { %2225 = vmatprep.subr.bf16.mxu1 %v5069_v11  ;;  %v1719_v11 = vld [vmem:[#allocation9 + $0x15] ss:$8 sm:$0x3] }
 0xca3   :  { %v1755_v52 = vrot.slane %v1719_v11, %v5676_v57 }
 0xca5   :  { %2226 = vmatpush1.bf16.msra.mxu1 %v5067_v48  ;;  %v1742_v48 = vrot.slane %v1717_v46, %v5676_v57 }
 0xca6   :  { %2227 = vmatprep.subr.bf16.mxu1 %v5075_v50 }
 0xca9   :  { %2228 = vmatpush1.bf16.msra.mxu1 %v5073_v33  ;;  %v1759_v33 = vrot.slane %v1719_v11, %v5679_v59 }
 0xcaa   :  { %2229 = vmatprep.subr.bf16.mxu1 %v5081_v53 }
 0xcad   :  { %2230 = vmatpush1.bf16.msra.mxu1 %v5079_v58 }
 0xcae   :  { %2231 = vmatprep.subr.bf16.mxu1 %v5087_v6 }
 0xcb1   :  { %2232 = vmatpush1.bf16.msra.mxu1 %v5085_v61  ;;  %v5130_v61 = vld [vmem:[#allocation6 + $0x1f0] ss:$20 sps:$4 sm:$0xff]  }
 0xd73   :  { %v1707_v31 = vpop.f32.mrb[12].mxu1 }
 0xd74   :  { %v1708_v32 = vadd.f32 %v1707_v31, %v1543_v28  ;;  %v1709_v35 = vpop.f32.mrb[13].mxu1  ;;  %v5109_v28 = vld [vmem:[#allocation6 + $0x328] ss:$20 sps:$4 sm:$0xff]  }
 0xd75   :  { %v1710_v36 = vadd.f32 %v1709_v35, %v1547_v29  ;;  %v1711_v37 = vpop.f32.mrb[14].mxu1  ;;  %v5114_v29 = vld [vmem:[#allocation6 + $0x34c] ss:$20 sps:$4 sm:$0xff]   ;;  %v5112_v31 = vld [vmem:[#allocation6 + $0x348] ss:$20 sps:$4 sm:$0xff]  }
 0xd76   :  { %v1712_v39 = vpop.f32.mrb[15].mxu1  ;;  %v1714_v41 = vadd.f32 %v1708_v32, %v1302_v2  ;;  %v5088_v2 = vld [vmem:[#allocation6 + $0x2a8] ss:$20 sps:$4 sm:$0xff]   ;;  %v5115_v35 = vld [vmem:[#allocation6 + $0x350] ss:$20 sps:$4 sm:$0xff]  }
 0xd77   :  { %v1715_v40 = vadd.f32 %v1710_v36, %v1303_v1  ;;  %v5093_v1 = vld [vmem:[#allocation6 + $0x2b4] ss:$20 sps:$4 sm:$0xff]   ;;  %2193 = vmatpush1.bf16.msra.mxu0 %v5088_v2  ;;  %v5118_v37 = vld [vmem:[#allocation6 + $0x370] ss:$20 sps:$4 sm:$0xff]   ;;  %v5121_v39 = vld [vmem:[#allocation6 + $0x378] ss:$20 sps:$4 sm:$0xff]  }
 0xd78   :  { %2233 = vmatprep.subr.bf16.mxu1 %v5093_v1  ;;  %2194 = vmatprep.subr.bf16.mxu0 %v5096_v8  ;;  %v5117_v32 = vld [vmem:[#allocation6 + $0x354] ss:$20 sps:$4 sm:$0xff]   ;;  %v5135_v8 = vld [vmem:[#allocation6 + $0x2b8] ss:$20 sps:$4 sm:$0xff]  }
 0xd79   :  { %v1720_v42 = vsel %vm588_vm1, %v1715_v40, 0.0  ;;  %2234 = vmatpush1.bf16.msra.mxu1 %v5091_v3  ;;  %v5120_v36 = vld [vmem:[#allocation6 + $0x374] ss:$20 sps:$4 sm:$0xff]   ;;  %v5134_v3 = vld [vmem:[#allocation6 + $0x290] ss:$20 sps:$4 sm:$0xff]  }
 0xd7a   :  { %v1721_v22 = vadd.f32 %v1720_v42, %v1714_v41  ;;  %2235 = vmatprep.subr.bf16.mxu1 %v5099_v17  ;;  %v5124_v42 = vld [vmem:[#allocation6 + $0x398] ss:$20 sps:$4 sm:$0xff]   ;;  %v5132_v1 = vld [vmem:[#allocation6 + $0x240] ss:$20 sps:$4 sm:$0xff]   ;;  %v5133_v2 = vld [vmem:[#allocation6 + $0x268] ss:$20 sps:$4 sm:$0xff]  }
 0xd7b   :  { %2195 = vmatpush1.bf16.msra.mxu0 %v5094_v9  ;;  %v5136_v9 = vld [vmem:[#allocation6 + $0x2e0] ss:$20 sps:$4 sm:$0xff]  }
 0xd7c   :  { %1722 = vadd.xlane.f32.xlu1 %v1721_v22  ;;  %2196 = vmatprep.subr.bf16.mxu0 %v5102_v19  ;;  %v5129_v22 = vld [vmem:[#allocation6 + $0x3a4] ss:$20 sps:$4 sm:$0xff]  }
 0xd7d   :  { %2236 = vmatpush1.bf16.msra.mxu1 %v5097_v18 }
 0xd7e   :  { %2237 = vmatprep.subr.bf16.mxu1 %v5105_v23 }
 0xd7f   :  { %2197 = vmatpush1.bf16.msra.mxu0 %v5100_v20 }
 0xd80   :  { %2198 = vmatprep.subr.bf16.mxu0 %v5108_v25 }
 0xd81   :  { %2238 = vmatpush1.bf16.msra.mxu1 %v5103_v24 }
 0xd82   :  { %2239 = vmatprep.subr.bf16.mxu1 %v5111_v27 }
 0xd83   :  { %2199 = vmatpush1.bf16.msra.mxu0 %v5106_v26 }
 0xd84   :  { %2200 = vmatprep.subr.bf16.mxu0 %v5114_v29 }
 0xd85   :  { %2240 = vmatpush1.bf16.msra.mxu1 %v5109_v28 }
 0xd86   :  { %2241 = vmatprep.subr.bf16.mxu1 %v5117_v32 }
 0xd87   :  { %2201 = vmatpush1.bf16.msra.mxu0 %v5112_v31 }
 0xd88   :  { %2202 = vmatprep.subr.bf16.mxu0 %v5120_v36 }
 0xd89   :  { %2242 = vmatpush1.bf16.msra.mxu1 %v5115_v35 }
 0xd8b   :  { %2203 = vmatpush1.bf16.msra.mxu0 %v5118_v37 }
 0xe09   :  { %v1723_v10 = vpop.xlane.xlu1 %1722 }
 0xe0a   :  { %v1724_v5 = vmul.f32 0.0052083335, %v1723_v10  ;;  %v5137_v10 = vld [vmem:[#allocation6 + $0x308] ss:$20 sps:$4 sm:$0xff]  }
 0xe0c   :  { %v1725_v12 = vsub.f32 %v1714_v41, %v1724_v5  ;;  %v1726_v7 = vsub.f32 %v1715_v40, %v1724_v5  ;;  %v5123_v40 = vld [vmem:[#allocation6 + $0x37c] ss:$20 sps:$4 sm:$0xff]  }
 0xe0d   :  { %v5126_v41 = vld [vmem:[#allocation6 + $0x39c] ss:$20 sps:$4 sm:$0xff]   ;;  %2243 = vmatprep.subr.bf16.mxu1 %v5123_v40 }
 0xe0e   :  { %v1727_v13 = vmul.f32 %v1725_v12, %v1725_v12  ;;  %v1728_v14 = vmul.f32 %v1726_v7, %v1726_v7  ;;  %2244 = vmatpush1.bf16.msra.mxu1 %v5121_v39  ;;  %2204 = vmatprep.subr.bf16.mxu0 %v5126_v41  ;;  %v5138_v5 = vld [vmem:[#allocation6 + $0x330] ss:$20 sps:$4 sm:$0xff]  }
 0xe0f   :  { %2245 = vmatprep.subr.bf16.mxu1 %v5129_v22  ;;  %2205 = vmatpush1.bf16.msra.mxu0 %v5124_v42 }
 0xe10   :  { %v1729_v15 = vsel %vm588_vm1, %v1728_v14, 0.0  ;;  %2264 = vmatprep.subr.bf16.mxu0 %v5569_v0  ;;  %v5843_v14 = vld [vmem:[%s5969_s3 + $0x1] ss:$2 sm:$0x1f] }
 0xe11   :  { %v1730_v16 = vadd.f32 %v1729_v15, %v1727_v13  ;;  %v5141_v13 = vld [vmem:[#allocation6 + $0x3a8] ss:$20 sps:$4 sm:$0xff]   ;;  %v1853_v15 = vrot.slane %v5843_v14, %v261_v62  ;;  %v1845_v17 = vrot.slane %v5843_v14, %v5676_v57  ;;  %v1857_v42 = vrot.slane %v5843_v14, %v265_v38 }
 0xe12   :  { %2246 = vmatpush1.bf16.msra.mxu1 %v5127_v34 }
 0xe13   :  { %1731 = vadd.xlane.f32.xlu1 %v1730_v16  ;;  %4819 = vmatprep.subr.bf16.mxu1 %v5570_v21  ;;  %v1849_v16 = vrot.slane %v5843_v14, %v5679_v59 }
 0xea0   :  { %v1732_v43 = vpop.xlane.xlu1 %1731 }
 0xea1   :  { %v1733_v44 = vmul.f32 0.0052083335, %v1732_v43 }
 0xea3   :  { %v1734_v45 = vadd.f32 1e-05, %v1733_v44 }
 0xea5   :  { %5408 = vrsqrt.f32 %v1734_v45 }
 0xeaf   :  { %v5409_v49 = vpop.eup %5408 }
 0xeb0   :  { %v1736_v50 = vmul.f32 %v5409_v49, %v1725_v12  ;;  %v1737_v51 = vmul.f32 %v5409_v49, %v1726_v7  ;;  %v5139_v12 = vld [vmem:[#allocation6 + $0x358] ss:$20 sps:$4 sm:$0xff]   ;;  %v5140_v7 = vld [vmem:[#allocation6 + $0x380] ss:$20 sps:$4 sm:$0xff]  }
 0xeb2   :  { %v1750_v53 = vmul.f32 %v1746_v47, %v1737_v51  ;;  %v1749_v54 = vmul.f32 %v1742_v48, %v1736_v50 }
 0xeb4   :  { %v5813_v58 = vadd.f32 %v1759_v33, %v1750_v53  ;;  %v5815_v60 = vadd.f32 %v1755_v52, %v1749_v54 }
 0xeb6   :  { %v1838_v6 = vpack.c.bf16 %v5813_v58, %v5813_v58  ;;  %v1837_v4 = vpack.c.bf16 %v5815_v60, %v5815_v60 }
 0xeb8   :  { %4557 = vmatprep.mubr.msk.bf16.mxu0 %vm588_vm1, %v1838_v6  ;;  %4558 = vmatprep.mubr.msk.bf16.mxu1 %vm588_vm1, %v1838_v6 }
 0xeb9   :  { %2215 = vmatmul.mubr.bf16.vlgmr.msra.gmra.mrb[36].mxu0 %v1837_v4  ;;  %2256 = vmatmul.mubr.bf16.vlgmr.msra.gmra.mrb[16].mxu1 %v1837_v4 }
 0xeba   :  { %2265 = vmatpush1.bf16.msra.mxu0 %v5130_v61  ;;  %4559 = vmatprep.mubr.msk.bf16.mxu0 %vm588_vm1, %v1838_v6 }
 0xebb   :  { %2266 = vmatprep.subr.bf16.mxu0 %v5569_v0  ;;  %4821 = vmatprep.mubr.msk.bf16.mxu1 %vm5571_vm2, %v5570_v21 }
 0xebe   :  { %2267 = vmatpush1.bf16.msra.mxu0 %v5131_v63 }
 0xebf   :  { %2268 = vmatprep.subr.bf16.mxu0 %v5569_v0 }
 0xec2   :  { %2269 = vmatpush1.bf16.msra.mxu0 %v5132_v1 }
 0xec3   :  { %2270 = vmatprep.subr.bf16.mxu0 %v5569_v0 }
 0xec6   :  { %2271 = vmatpush1.bf16.msra.mxu0 %v5133_v2 }
 0xec7   :  { %2272 = vmatprep.subr.bf16.mxu0 %v5569_v0 }
 0xeca   :  { %2273 = vmatpush1.bf16.msra.mxu0 %v5134_v3 }
 0xecb   :  { %2274 = vmatprep.subr.bf16.mxu0 %v5569_v0 }
 0xece   :  { %2275 = vmatpush1.bf16.msra.mxu0 %v5135_v8 }
 0xecf   :  { %2276 = vmatprep.subr.bf16.mxu0 %v5569_v0 }
 0xed2   :  { %2277 = vmatpush1.bf16.msra.mxu0 %v5136_v9 }
 0xed3   :  { %2278 = vmatprep.subr.bf16.mxu0 %v5569_v0 }
 0xed6   :  { %2279 = vmatpush1.bf16.msra.mxu0 %v5137_v10 }
 0xed7   :  { %2280 = vmatprep.subr.bf16.mxu0 %v5569_v0 }
 0xeda   :  { %2281 = vmatpush1.bf16.msra.mxu0 %v5138_v5 }
 0xedb   :  { %2282 = vmatprep.subr.bf16.mxu0 %v5569_v0 }
 0xede   :  { %2283 = vmatpush1.bf16.msra.mxu0 %v5139_v12 }
 0xedf   :  { %2284 = vmatprep.subr.bf16.mxu0 %v5569_v0 }
 0xee2   :  { %2285 = vmatpush1.bf16.msra.mxu0 %v5140_v7 }
 0xee3   :  { %2286 = vmatprep.subr.bf16.mxu0 %v5569_v0 }
 0xee6   :  { %2287 = vmatpush1.bf16.msra.mxu0 %v5141_v13 }
 0xee7   :  { %4807 = vmatprep.subr.bf16.mxu0 %v5570_v21 }
 0xee9   :  { %2297 = vmatmul.mubr.bf16.vlgmr.msra.gmra.mrb[40].mxu0 %v1837_v4 }
 0xeea   :  { %4809 = vmatprep.mubr.msk.bf16.mxu0 %vm5571_vm2, %v5570_v21 }
 0xf8c   :  { %v2216_v18 = vpop.f32.mrb[36].mxu0  ;;  %v2257_v19 = vpop.f32.mrb[16].mxu1 }
 0xf8d   :  { %v2258_v20 = vadd.f32 %v2257_v19, %v1853_v15  ;;  %v2218_v23 = vpop.f32.mrb[37].mxu0  ;;  %v2259_v24 = vpop.f32.mrb[17].mxu1  ;;  %v2217_v32 = vadd.f32 %v2216_v18, %v1845_v17 }
 0xf8e   :  { %v2219_v25 = vadd.f32 %v2218_v23, %v1849_v16  ;;  %v2220_v26 = vpop.f32.mrb[38].mxu0  ;;  %v2261_v27 = vpop.f32.mrb[18].mxu1  ;;  %v2260_v34 = vadd.f32 %v2259_v24, %v1857_v42 }
 0xf8f   :  { %v2414_v28 = vpack.c.bf16 %v2258_v20, %v2258_v20  ;;  %v2221_v29 = vpop.f32.mrb[39].mxu0  ;;  %v2262_v31 = vpop.f32.mrb[19].mxu1  ;;  %v2304_v36 = vpack.c.bf16 %v2217_v32, %v2217_v32  ;;  %v1861_v27 = vrot.slane %v5843_v14, %v269_v30 }
 0xf90   :  { %v2305_v35 = vpack.c.bf16 %v2219_v25, %v2219_v25  ;;  %v2367_v45 = vpack.c.bf16 %v2260_v34, %v2260_v34  ;;  %v5144_v34 = vld [vmem:[#allocation7 + $0x244] ss:$8 sps:$4 sm:$0xff]  }
 0xf91   :  { %v2422_v62 = vsel %vm588_vm1, %v2414_v28, 0 }
 0xf92   :  { %4820 = vmatpush3.bf16.xpose.msra.mxu1 %v2422_v62  ;;  %2307 = vrot.lane.b32.xlu1 %v2305_v35, %s5572_s10  ;;  %v2372_v11 = vsel %vm782_vm3, %v2367_v45, 0 }
 0xf93   :  { %4831 = vmatprep.subr.bf16.mxu1 %v5570_v21 }
 0xf96   :  { %2416 = vrot.lane.b32.xlu1 %v2304_v36, %s5572_s10 }
 0xf9a   :  { %2526 = vrot.lane.b32.xlu1 %v2414_v28, %s5572_s10 }
 0xfbc   :  { %v5857_v37 = vpop.f32.mrb[40].mxu0 }
 0xfbd   :  { %v2300_v39 = vpop.f32.mrb[41].mxu0 }
 0xfbe   :  { %v2301_v40 = vpop.f32.mrb[42].mxu0 }
 0xfbf   :  { %v2302_v41 = vpop.f32.mrb[43].mxu0 }
0x1004   :  { %v2308_v22 = vpop.permute.xlu1 %2307 }
0x1005   :  { %v2313_v43 = vsel %vm588_vm1, %v2308_v22, 0  ;;  %v5142_v22 = vld [vmem:[#allocation7 + $0x240] ss:$8 sps:$4 sm:$0xff]  }
0x1006   :  { %4808 = vmatpush3.bf16.xpose.msra.mxu0 %v2313_v43  ;;  %v5147_v43 = vld [vmem:[#allocation7 + $0x254] ss:$8 sps:$4 sm:$0xff]  }
0x1007   :  { %4813 = vmatprep.subr.bf16.mxu0 %v5570_v21 }
0x1008   :  { %v2417_v44 = vpop.permute.xlu1 %2416 }
0x1009   :  { %4822 = vmatmul.mubr.msk.bf16.vlgmr.msra.gmra.mrb[20].mxu1 %vm588_vm1, %v2417_v44  ;;  %v5145_v44 = vld [vmem:[#allocation7 + $0x250] ss:$8 sps:$4 sm:$0xff]  }
0x100a   :  { %4833 = vmatprep.mubr.msk.bf16.mxu1 %vm5571_vm2, %v5570_v21 }
0x100c   :  { %v2527_v46 = vpop.permute.xlu1 %2526 }
0x100d   :  { %v2532_v47 = vsel %vm588_vm1, %v2527_v46, 0  ;;  %4810 = vmatmul.mubr.msk.bf16.vlgmr.msra.gmra.mrb[44].mxu0 %vm588_vm1, %v2304_v36  ;;  %v5148_v46 = vld [vmem:[#allocation7 + $0x260] ss:$8 sps:$4 sm:$0xff]  }
0x100e   :  { %4814 = vmatpush3.bf16.msra.mxu0 %v2372_v11  ;;  %4832 = vmatpush3.bf16.xpose.msra.mxu1 %v2532_v47  ;;  %v5153_v11 = vld [vmem:[#allocation7 + $0x274] ss:$8 sps:$4 sm:$0xff]   ;;  %v5156_v47 = vld [vmem:[#allocation7 + $0x284] ss:$8 sps:$4 sm:$0xff]  }
0x100f   :  { %4815 = vmatprep.mubr.msk.bf16.mxu0 %vm5571_vm2, %v5570_v21  ;;  %4825 = vmatprep.subr.bf16.mxu0 %v5570_v21 }
0x1010   :  { %2801 = vmatprep.subr.bf16.mxu1 %v5144_v34  ;;  %v5184_v34 = vld [vmem:[#allocation7 + $0x320] ss:$8 sps:$4 sm:$0xff]  }
0x1015   :  { %4834 = vmatmul.mubr.msk.bf16.vlgmr.msra.gmra.mrb[24].mxu1 %vm588_vm1, %v2305_v35  ;;  %v2299_v35 = vadd.f32 %v5857_v37, %v1861_v27 }
0x1016   :  { %2802 = vmatpush1.bf16.msra.mxu1 %v5142_v22  ;;  %v5186_v22 = vld [vmem:[#allocation7 + $0x324] ss:$8 sps:$4 sm:$0xff]  }
0x1017   :  { %v2586_v39 = vpack.c.bf16 %v2299_v35, %v2299_v35  ;;  %2803 = vmatprep.subr.bf16.mxu1 %v5147_v43  ;;  %v5189_v43 = vld [vmem:[#allocation7 + $0x334] ss:$8 sps:$4 sm:$0xff]  }
0x1019   :  { %v2591_v30 = vsel %vm782_vm3, %v2586_v39, 0 }
0x101a   :  { %2804 = vmatpush1.bf16.msra.mxu1 %v5145_v44  ;;  %v5190_v44 = vld [vmem:[#allocation7 + $0x340] ss:$8 sps:$4 sm:$0xff]  }
0x10dc   :  { %v2458_v38 = vpop.f32.mrb[20].mxu1 }
0x10dd   :  { %v4823_v48 = vpop.f32.mrb[21].mxu1  ;;  %v2464_v49 = vsel %vm765_vm4, %v2458_v38, -inf }
0x10de   :  { %2465 = vmax.xlane.f32.xlu1 %v2464_v49  ;;  %v2461_v50 = vpop.f32.mrb[22].mxu1  ;;  %v5159_v48 = vld [vmem:[#allocation7 + $0x294] ss:$8 sps:$4 sm:$0xff]   ;;  %v5157_v49 = vld [vmem:[#allocation7 + $0x290] ss:$8 sps:$4 sm:$0xff]  }
0x10df   :  { %v4824_v51 = vpop.f32.mrb[23].mxu1  ;;  %v5162_v50 = vld [vmem:[#allocation7 + $0x2a4] ss:$8 sps:$4 sm:$0xff]  }
0x10e0   :  { %v2349_v33 = vpop.f32.mrb[44].mxu0  ;;  %v5160_v51 = vld [vmem:[#allocation7 + $0x2a0] ss:$8 sps:$4 sm:$0xff]  }
0x10e1   :  { %v4811_v52 = vpop.f32.mrb[45].mxu0  ;;  %v2355_v53 = vsel %vm765_vm4, %v2349_v33, -inf }
0x10e2   :  { %2356 = vmax.xlane.f32.xlu0 %v2355_v53  ;;  %v2352_v54 = vpop.f32.mrb[46].mxu0  ;;  %v5163_v52 = vld [vmem:[#allocation7 + $0x2b0] ss:$8 sps:$4 sm:$0xff]   ;;  %v5168_v53 = vld [vmem:[#allocation7 + $0x2c4] ss:$8 sps:$4 sm:$0xff]  }
0x10e3   :  { %v4812_v6 = vpop.f32.mrb[47].mxu0  ;;  %v5166_v54 = vld [vmem:[#allocation7 + $0x2c0] ss:$8 sps:$4 sm:$0xff]  }
0x10e4   :  { %v5171_v6 = vld [vmem:[#allocation7 + $0x2d4] ss:$8 sps:$4 sm:$0xff]  }
0x10e8   :  { %v2568_v4 = vpop.f32.mrb[24].mxu1 }
0x10e9   :  { %v4835_v61 = vpop.f32.mrb[25].mxu1  ;;  %v2574_v63 = vsel %vm765_vm4, %v2568_v4, -inf }
0x10ea   :  { %v2571_v1 = vpop.f32.mrb[26].mxu1  ;;  %2575 = vmax.xlane.f32.xlu0 %v2574_v63  ;;  %v5174_v61 = vld [vmem:[#allocation7 + $0x2e4] ss:$8 sps:$4 sm:$0xff]   ;;  %v5172_v63 = vld [vmem:[#allocation7 + $0x2e0] ss:$8 sps:$4 sm:$0xff]  }
0x10eb   :  { %v4836_v2 = vpop.f32.mrb[27].mxu1  ;;  %v5177_v1 = vld [vmem:[#allocation7 + $0x2f4] ss:$8 sps:$4 sm:$0xff]  }
0x10ec   :  { %v5175_v2 = vld [vmem:[#allocation7 + $0x2f0] ss:$8 sps:$4 sm:$0xff]  }
0x116b   :  { %v2466_v3 = vpop.xlane.xlu1 %2465 }
0x116c   :  { %v2467_v8 = vsub.f32 %v2458_v38, %v2466_v3  ;;  %v5154_v38 = vld [vmem:[#allocation7 + $0x280] ss:$8 sps:$4 sm:$0xff]  }
0x116e   :  { %v2468_v5 = vmul.f32 1.442695, %v2467_v8 }
0x116f   :  { %v2357_v9 = vpop.xlane.xlu0 %2356 }
0x1170   :  { %v2358_v10 = vsub.f32 %v2349_v33, %v2357_v9  ;;  %v5165_v33 = vld [vmem:[#allocation7 + $0x2b4] ss:$8 sps:$4 sm:$0xff]  }
0x1172   :  { %v2359_v12 = vmul.f32 1.442695, %v2358_v10 }
0x1174   :  { %5410 = vpow2.f32 %v2359_v12 }
0x1175   :  { %5412 = vpow2.f32 %v2468_v5 }
0x1177   :  { %v2576_v17 = vpop.xlane.xlu0 %2575 }
0x1178   :  { %v2577_v18 = vsub.f32 %v2568_v4, %v2576_v17  ;;  %v5169_v4 = vld [vmem:[#allocation7 + $0x2d0] ss:$8 sps:$4 sm:$0xff]  }
0x117a   :  { %v2578_v19 = vmul.f32 1.442695, %v2577_v18 }
0x117c   :  { %5414 = vpow2.f32 %v2578_v19 }
0x117e   :  { %v5411_v7 = vpop.eup %5410 }
0x117f   :  { %v2361_v13 = vsel %vm765_vm4, %v5411_v7, 0.0  ;;  %v5413_v15 = vpop.eup %5412 }
0x1180   :  { %2362 = vadd.xlane.f32.xlu0 %v2361_v13  ;;  %v2470_v16 = vsel %vm765_vm4, %v5413_v15, 0.0 }
0x1184   :  { %2471 = vadd.xlane.f32.xlu0 %v2470_v16 }
0x1186   :  { %v5415_v20 = vpop.eup %5414 }
0x1187   :  { %v2580_v23 = vsel %vm765_vm4, %v5415_v20, 0.0 }
0x119a   :  { %2477 = vrot.lane.b32.xlu0 %v2367_v45, %s5572_s10  ;;  %v5150_v45 = vld [vmem:[#allocation7 + $0x264] ss:$8 sps:$4 sm:$0xff]  }
0x119b   :  { %2805 = vmatprep.subr.bf16.mxu1 %v5150_v45  ;;  %v5195_v45 = vld [vmem:[#allocation7 + $0x354] ss:$8 sps:$4 sm:$0xff]  }
0x119c   :  { %2806 = vmatpush1.bf16.msra.mxu1 %v5148_v46  ;;  %v5193_v46 = vld [vmem:[#allocation7 + $0x350] ss:$8 sps:$4 sm:$0xff]  }
0x119d   :  { %2807 = vmatprep.subr.bf16.mxu1 %v5153_v11 }
0x11b9   :  { %2581 = vadd.xlane.f32.xlu0 %v2580_v23 }
0x120d   :  { %v2363_v24 = vpop.xlane.xlu0 %2362 }
0x120e   :  { %5416 = vrcp.f32 %v2363_v24 }
0x1211   :  { %v2472_v25 = vpop.xlane.xlu0 %2471 }
0x1212   :  { %5418 = vrcp.f32 %v2472_v25  ;;  %v2666_v25 = vld [vmem:[#allocation9 + $0x2] ss:$8 sm:$0x3] }
0x1213   :  { %v2675_v27 = vrot.slane %v2666_v25, %v5679_v59 }
0x1215   :  { %v2478_v29 = vpop.permute.xlu0 %2477 }
0x1216   :  { %v2483_v62 = vsel %vm782_vm3, %v2478_v29, 0 }
0x1218   :  { %v5417_v26 = vpop.eup %5416 }
0x1219   :  { %v2365_v28 = vmul.f32 %v5417_v26, %v5411_v7  ;;  %v2671_v26 = vrot.slane %v2666_v25, %v5676_v57  ;;  %v5237_v25 = vld [vmem:[#allocation7 + $0x434] ss:$8 sps:$4 sm:$0xff]  }
0x121b   :  { %v2366_v31 = vpack.c.bf16 %v2365_v28, %v2365_v28 }
0x121c   :  { %v5419_v32 = vpop.eup %5418 }
0x121d   :  { %4816 = vmatmul.mubr.msk.bf16.vlgmr.msra.gmra.mrb[48].mxu0 %vm765_vm4, %v2366_v31  ;;  %v2474_v36 = vmul.f32 %v5419_v32, %v5413_v15 }
0x121e   :  { %4826 = vmatpush3.bf16.msra.mxu0 %v2483_v62  ;;  %4827 = vmatprep.mubr.msk.bf16.mxu0 %vm5571_vm2, %v5570_v21 }
0x121f   :  { %4837 = vmatprep.subr.bf16.mxu0 %v5570_v21  ;;  %v2475_v40 = vpack.c.bf16 %v2474_v36, %v2474_v36 }
0x1225   :  { %4828 = vmatmul.mubr.msk.bf16.vlgmr.msra.gmra.mrb[52].mxu0 %vm765_vm4, %v2475_v40 }
0x1226   :  { %4838 = vmatpush3.bf16.msra.mxu0 %v2591_v30  ;;  %4839 = vmatprep.mubr.msk.bf16.mxu0 %vm5571_vm2, %v5570_v21  ;;  %v5151_v21 = vld [vmem:[#allocation7 + $0x270] ss:$8 sps:$4 sm:$0xff]  }
0x1227   :  { %2808 = vmatpush1.bf16.msra.mxu1 %v5151_v21 }
0x1228   :  { %2809 = vmatprep.subr.bf16.mxu1 %v5156_v47 }
0x122b   :  { %2810 = vmatpush1.bf16.msra.mxu1 %v5154_v38 }
0x122c   :  { %2811 = vmatprep.subr.bf16.mxu1 %v5159_v48 }
0x122f   :  { %2812 = vmatpush1.bf16.msra.mxu1 %v5157_v49 }
0x1230   :  { %2813 = vmatprep.subr.bf16.mxu1 %v5162_v50 }
0x1233   :  { %2814 = vmatpush1.bf16.msra.mxu1 %v5160_v51 }
0x1234   :  { %2815 = vmatprep.subr.bf16.mxu1 %v5165_v33  ;;  %v5198_v33 = vld [vmem:[#allocation7 + $0x364] ss:$8 sps:$4 sm:$0xff]  }
0x1237   :  { %2816 = vmatpush1.bf16.msra.mxu1 %v5163_v52  ;;  %v5196_v52 = vld [vmem:[#allocation7 + $0x360] ss:$8 sps:$4 sm:$0xff]  }
0x1238   :  { %2817 = vmatprep.subr.bf16.mxu1 %v5168_v53  ;;  %v5201_v53 = vld [vmem:[#allocation7 + $0x374] ss:$8 sps:$4 sm:$0xff]  }
0x123b   :  { %2818 = vmatpush1.bf16.msra.mxu1 %v5166_v54  ;;  %v5199_v54 = vld [vmem:[#allocation7 + $0x370] ss:$8 sps:$4 sm:$0xff]  }
0x123c   :  { %2819 = vmatprep.subr.bf16.mxu1 %v5171_v6  ;;  %v5204_v6 = vld [vmem:[#allocation7 + $0x384] ss:$8 sps:$4 sm:$0xff]  }
0x123f   :  { %2820 = vmatpush1.bf16.msra.mxu1 %v5169_v4  ;;  %v5202_v4 = vld [vmem:[#allocation7 + $0x380] ss:$8 sps:$4 sm:$0xff]  }
0x1240   :  { %2821 = vmatprep.subr.bf16.mxu1 %v5174_v61  ;;  %v5207_v61 = vld [vmem:[#allocation7 + $0x394] ss:$8 sps:$4 sm:$0xff]  }
0x1243   :  { %2822 = vmatpush1.bf16.msra.mxu1 %v5172_v63  ;;  %v5205_v63 = vld [vmem:[#allocation7 + $0x390] ss:$8 sps:$4 sm:$0xff]  }
0x1244   :  { %2823 = vmatprep.subr.bf16.mxu1 %v5177_v1  ;;  %v5208_v1 = vld [vmem:[#allocation7 + $0x3a0] ss:$8 sps:$4 sm:$0xff]  }
0x1246   :  { %v2582_v14 = vpop.xlane.xlu0 %2581 }
0x1247   :  { %5420 = vrcp.f32 %v2582_v14  ;;  %2824 = vmatpush1.bf16.msra.mxu1 %v5175_v2  ;;  %v5178_v14 = vld [vmem:[#allocation7 + $0x300] ss:$8 sps:$4 sm:$0xff]   ;;  %v5210_v2 = vld [vmem:[#allocation7 + $0x3a4] ss:$8 sps:$4 sm:$0xff]  }
0x1251   :  { %v5421_v37 = vpop.eup %5420 }
0x1252   :  { %v2584_v41 = vmul.f32 %v5421_v37, %v5415_v20  ;;  %v5180_v37 = vld [vmem:[#allocation7 + $0x304] ss:$8 sps:$4 sm:$0xff]  }
0x1253   :  { %3055 = vmatprep.subr.bf16.mxu0 %v5180_v37 }
0x1254   :  { %v2585_v42 = vpack.c.bf16 %v2584_v41, %v2584_v41  ;;  %v5183_v41 = vld [vmem:[#allocation7 + $0x314] ss:$8 sps:$4 sm:$0xff]  }
0x1256   :  { %4840 = vmatmul.mubr.msk.bf16.vlgmr.msra.gmra.mrb[56].mxu0 %vm765_vm4, %v2585_v42  ;;  %v5181_v42 = vld [vmem:[#allocation7 + $0x310] ss:$8 sps:$4 sm:$0xff]  }
0x1257   :  { %3056 = vmatpush1.bf16.msra.mxu0 %v5178_v14 }
0x1258   :  { %3057 = vmatprep.subr.bf16.mxu0 %v5183_v41 }
0x125b   :  { %3058 = vmatpush1.bf16.msra.mxu0 %v5181_v42 }
0x125c   :  { %3059 = vmatprep.subr.bf16.mxu0 %v5186_v22 }
0x125f   :  { %3060 = vmatpush1.bf16.msra.mxu0 %v5184_v34 }
0x1260   :  { %3061 = vmatprep.subr.bf16.mxu0 %v5189_v43 }
0x12f0   :  { %v2408_v3 = vpop.f32.mrb[48].mxu0 }
0x12f1   :  { %v4817_v8 = vpop.f32.mrb[49].mxu0 }
0x12f2   :  { %v2411_v9 = vpop.f32.mrb[50].mxu0  ;;  %v5211_v8 = vld [vmem:[#allocation7 + $0x3b0] ss:$8 sps:$4 sm:$0xff]  }
0x12f3   :  { %v4818_v10 = vpop.f32.mrb[51].mxu0  ;;  %v5214_v9 = vld [vmem:[#allocation7 + $0x3c0] ss:$8 sps:$4 sm:$0xff]  }
0x12f4   :  { %v5216_v10 = vld [vmem:[#allocation7 + $0x3c4] ss:$8 sps:$4 sm:$0xff]  }
0x12f5   :  { %3261 = vmatprep.subr.bf16.mxu1 %v5216_v10 }
0x12f8   :  { %v2519_v5 = vpop.f32.mrb[52].mxu0 }
0x12f9   :  { %2634 = vrot.lane.b32.xlu1 %v2519_v5, %s5572_s10  ;;  %v4829_v12 = vpop.f32.mrb[53].mxu0  ;;  %v5219_v5 = vld [vmem:[#allocation7 + $0x3d4] ss:$8 sps:$4 sm:$0xff]  }
0x12fa   :  { %v2522_v7 = vpop.f32.mrb[54].mxu0  ;;  %v5217_v12 = vld [vmem:[#allocation7 + $0x3d0] ss:$8 sps:$4 sm:$0xff]  }
0x12fb   :  { %v4830_v13 = vpop.f32.mrb[55].mxu0  ;;  %v5222_v7 = vld [vmem:[#allocation7 + $0x3e4] ss:$8 sps:$4 sm:$0xff]  }
0x12fc   :  { %v5220_v13 = vld [vmem:[#allocation7 + $0x3e0] ss:$8 sps:$4 sm:$0xff]  }
0x1329   :  { %v2627_v15 = vpop.f32.mrb[56].mxu0 }
0x132a   :  { %v2664_v16 = vpack.c.bf16 %v2627_v15, %v2627_v15  ;;  %v4841_v17 = vpop.f32.mrb[57].mxu0  ;;  %v5225_v15 = vld [vmem:[#allocation7 + $0x3f4] ss:$8 sps:$4 sm:$0xff]  }
0x132b   :  { %v2630_v18 = vpop.f32.mrb[58].mxu0  ;;  %v5228_v17 = vld [vmem:[#allocation7 + $0x404] ss:$8 sps:$4 sm:$0xff]  }
0x132c   :  { %v4842_v19 = vpop.f32.mrb[59].mxu0  ;;  %4590 = vmatprep.mubr.msk.bf16.mxu1 %vm588_vm1, %v2664_v16  ;;  %v5223_v16 = vld [vmem:[#allocation7 + $0x3f0] ss:$8 sps:$4 sm:$0xff]   ;;  %v5226_v18 = vld [vmem:[#allocation7 + $0x400] ss:$8 sps:$4 sm:$0xff]  }
0x132d   :  { %v5231_v19 = vld [vmem:[#allocation7 + $0x414] ss:$8 sps:$4 sm:$0xff]  }
0x136b   :  { %v2635_v20 = vpop.permute.xlu1 %2634 }
0x136c   :  { %v2637_v23 = vsel %vm588_vm1, %v2408_v3, %v2635_v20  ;;  %v5213_v3 = vld [vmem:[#allocation7 + $0x3b4] ss:$8 sps:$4 sm:$0xff]   ;;  %v5229_v20 = vld [vmem:[#allocation7 + $0x410] ss:$8 sps:$4 sm:$0xff]  }
0x136d   :  { %v2663_v24 = vpack.c.bf16 %v2637_v23, %v2637_v23  ;;  %v5234_v23 = vld [vmem:[#allocation7 + $0x424] ss:$8 sps:$4 sm:$0xff]  }
0x136f   :  { %2834 = vmatmul.mubr.bf16.vlgmr.msra.gmra.mrb[28].mxu1 %v2663_v24  ;;  %v5232_v24 = vld [vmem:[#allocation7 + $0x420] ss:$8 sps:$4 sm:$0xff]  }
0x1370   :  { %3262 = vmatpush1.bf16.msra.mxu1 %v5214_v9 }
0x1371   :  { %3263 = vmatprep.subr.bf16.mxu1 %v5219_v5 }
0x1374   :  { %3264 = vmatpush1.bf16.msra.mxu1 %v5217_v12 }
0x1375   :  { %3265 = vmatprep.subr.bf16.mxu1 %v5222_v7 }
0x1378   :  { %3266 = vmatpush1.bf16.msra.mxu1 %v5220_v13 }
0x1379   :  { %3267 = vmatprep.subr.bf16.mxu1 %v5225_v15 }
0x137c   :  { %3268 = vmatpush1.bf16.msra.mxu1 %v5223_v16 }
0x137d   :  { %3269 = vmatprep.subr.bf16.mxu1 %v5228_v17 }
0x1380   :  { %3270 = vmatpush1.bf16.msra.mxu1 %v5226_v18  ;;  %v5250_v18 = vld [vmem:[#allocation7 + $0x480] ss:$8 sps:$4 sm:$0xff]  }
0x1381   :  { %3271 = vmatprep.subr.bf16.mxu1 %v5231_v19  ;;  %v5252_v19 = vld [vmem:[#allocation7 + $0x484] ss:$8 sps:$4 sm:$0xff]  }
0x1384   :  { %3272 = vmatpush1.bf16.msra.mxu1 %v5229_v20  ;;  %v5253_v20 = vld [vmem:[#allocation7 + $0x540] ss:$8 sps:$4 sm:$0xff]  }
0x1385   :  { %3273 = vmatprep.subr.bf16.mxu1 %v5234_v23  ;;  %v5255_v23 = vld [vmem:[#allocation7 + $0x544] ss:$8 sps:$4 sm:$0xff]  }
0x1388   :  { %3274 = vmatpush1.bf16.msra.mxu1 %v5232_v24  ;;  %v5258_v24 = vld [vmem:[#allocation7 + $0x494] ss:$8 sps:$4 sm:$0xff]  }
0x1389   :  { %3275 = vmatprep.subr.bf16.mxu1 %v5237_v25  ;;  %v5261_v25 = vld [vmem:[#allocation7 + $0x554] ss:$8 sps:$4 sm:$0xff]  }
0x1442   :  { %v2835_v28 = vpop.f32.mrb[28].mxu1 }
0x1443   :  { %v2836_v29 = vadd.f32 %v2835_v28, %v2671_v26  ;;  %v2837_v31 = vpop.f32.mrb[29].mxu1  ;;  %v5235_v26 = vld [vmem:[#allocation7 + $0x430] ss:$8 sps:$4 sm:$0xff]   ;;  %v5238_v28 = vld [vmem:[#allocation7 + $0x440] ss:$8 sps:$4 sm:$0xff]  }
0x1444   :  { %v2838_v32 = vadd.f32 %v2837_v31, %v2675_v27  ;;  %v2839_v35 = vpop.f32.mrb[30].mxu1  ;;  %v5240_v27 = vld [vmem:[#allocation7 + $0x444] ss:$8 sps:$4 sm:$0xff]   ;;  %3276 = vmatpush1.bf16.msra.mxu1 %v5235_v26  ;;  %v5241_v31 = vld [vmem:[#allocation7 + $0x450] ss:$8 sps:$4 sm:$0xff]  }
0x1445   :  { %v2840_v62 = vpop.f32.mrb[31].mxu1  ;;  %v2842_v39 = vadd.f32 %v2836_v29, %v5815_v60  ;;  %v5192_v60 = vld [vmem:[#allocation7 + $0x344] ss:$8 sps:$4 sm:$0xff]   ;;  %3277 = vmatprep.subr.bf16.mxu1 %v5240_v27  ;;  %v5243_v29 = vld [vmem:[#allocation7 + $0x454] ss:$8 sps:$4 sm:$0xff]  }
0x1446   :  { %v2843_v36 = vadd.f32 %v2838_v32, %v5813_v58  ;;  %v5187_v58 = vld [vmem:[#allocation7 + $0x330] ss:$8 sps:$4 sm:$0xff]  }
0x1447   :  { %3062 = vmatpush1.bf16.msra.mxu0 %v5187_v58  ;;  %v5256_v26 = vld [vmem:[#allocation7 + $0x490] ss:$8 sps:$4 sm:$0xff]  }
0x1448   :  { %v2848_v40 = vsel %vm588_vm1, %v2843_v36, 0.0  ;;  %3063 = vmatprep.subr.bf16.mxu0 %v5192_v60  ;;  %3278 = vmatpush1.bf16.msra.mxu1 %v5238_v28  ;;  %v5259_v27 = vld [vmem:[#allocation7 + $0x550] ss:$8 sps:$4 sm:$0xff]   ;;  %v5264_v28 = vld [vmem:[#allocation7 + $0x4a4] ss:$8 sps:$4 sm:$0xff]  }
0x1449   :  { %v2849_v30 = vadd.f32 %v2848_v40, %v2842_v39  ;;  %3279 = vmatprep.subr.bf16.mxu1 %v5243_v29  ;;  %v5267_v29 = vld [vmem:[#allocation7 + $0x564] ss:$8 sps:$4 sm:$0xff]  }
0x144b   :  { %2850 = vadd.xlane.f32.xlu1 %v2849_v30  ;;  %3064 = vmatpush1.bf16.msra.mxu0 %v5190_v44 }
0x144c   :  { %3065 = vmatprep.subr.bf16.mxu0 %v5195_v45  ;;  %3280 = vmatpush1.bf16.msra.mxu1 %v5241_v31  ;;  %v5262_v31 = vld [vmem:[#allocation7 + $0x4a0] ss:$8 sps:$4 sm:$0xff]  }
0x144f   :  { %3066 = vmatpush1.bf16.msra.mxu0 %v5193_v46  ;;  %v5246_v46 = vld [vmem:[#allocation7 + $0x464] ss:$8 sps:$4 sm:$0xff]  }
0x1450   :  { %3067 = vmatprep.subr.bf16.mxu0 %v5198_v33  ;;  %3281 = vmatprep.subr.bf16.mxu1 %v5246_v46 }
0x1453   :  { %3068 = vmatpush1.bf16.msra.mxu0 %v5196_v52 }
0x1454   :  { %3069 = vmatprep.subr.bf16.mxu0 %v5201_v53 }
0x1457   :  { %3070 = vmatpush1.bf16.msra.mxu0 %v5199_v54 }
0x1458   :  { %3071 = vmatprep.subr.bf16.mxu0 %v5204_v6 }
0x145b   :  { %3072 = vmatpush1.bf16.msra.mxu0 %v5202_v4 }
0x145c   :  { %3073 = vmatprep.subr.bf16.mxu0 %v5207_v61 }
0x145f   :  { %3074 = vmatpush1.bf16.msra.mxu0 %v5205_v63 }
0x1460   :  { %3075 = vmatprep.subr.bf16.mxu0 %v5210_v2 }
0x1463   :  { %3076 = vmatpush1.bf16.msra.mxu0 %v5208_v1  ;;  %v3126_v1 = vld [vmem:[#allocation9 + $0x12] ss:$8 sm:$0x3] }
0x1464   :  { %3077 = vmatprep.subr.bf16.mxu0 %v5213_v3  ;;  %v3131_v2 = vrot.slane %v3126_v1, %v5676_v57  ;;  %v3135_v3 = vrot.slane %v3126_v1, %v5679_v59  ;;  %v5304_v1 = vld [vmem:[#allocation7 + $0x510] ss:$8 sps:$4 sm:$0xff]  }
0x1467   :  { %3078 = vmatpush1.bf16.msra.mxu0 %v5211_v8 }
0x1468   :  { %3515 = vmatprep.subr.bf16.mxu0 %v5252_v19  ;;  %v3307_v19 = vld [vmem:[#allocation9 + $0x16] ss:$8 sm:$0x3] }
0x14d8   :  { %v2851_v11 = vpop.xlane.xlu1 %2850 }
0x14d9   :  { %v2852_v21 = vmul.f32 0.0052083335, %v2851_v11  ;;  %v5244_v11 = vld [vmem:[#allocation7 + $0x460] ss:$8 sps:$4 sm:$0xff]  }
0x14da   :  { %3282 = vmatpush1.bf16.msra.mxu1 %v5244_v11 }
0x14db   :  { %v5903_v47 = vsub.f32 %v2842_v39, %v2852_v21  ;;  %v5905_v38 = vsub.f32 %v2843_v36, %v2852_v21  ;;  %v2845_v36 = vld [vmem:[#allocation9 + $0x4] ss:$8 sm:$0x3]  ;;  %v2847_v39 = vld [vmem:[#allocation9 + $0x6] ss:$8 sm:$0x3] }
0x14dc   :  { %v2874_v40 = vrot.slane %v2845_v36, %v5679_v59  ;;  %v2870_v30 = vrot.slane %v2845_v36, %v5676_v57  ;;  %v2887_v42 = vrot.slane %v2847_v39, %v5679_v59  ;;  %v2883_v22 = vrot.slane %v2847_v39, %v5676_v57  ;;  %v5249_v21 = vld [vmem:[#allocation7 + $0x474] ss:$8 sps:$4 sm:$0xff]   ;;  %v5268_v36 = vld [vmem:[#allocation7 + $0x4b0] ss:$8 sps:$4 sm:$0xff]  }
0x14dd   :  { %v2855_v48 = vmul.f32 %v5903_v47, %v5903_v47  ;;  %v2856_v49 = vmul.f32 %v5905_v38, %v5905_v38  ;;  %3283 = vmatprep.subr.bf16.mxu1 %v5249_v21  ;;  %v5271_v39 = vld [vmem:[#allocation7 + $0x570] ss:$8 sps:$4 sm:$0xff]  }
0x14df   :  { %v2857_v50 = vsel %vm588_vm1, %v2856_v49, 0.0 }
0x14e0   :  { %v2858_v51 = vadd.f32 %v2857_v50, %v2855_v48 }
0x14e2   :  { %2859 = vadd.xlane.f32.xlu0 %v2858_v51 }
0x156f   :  { %v2860_v32 = vpop.xlane.xlu0 %2859 }
0x1570   :  { %v2861_v35 = vmul.f32 0.0052083335, %v2860_v32  ;;  %v5265_v32 = vld [vmem:[#allocation7 + $0x560] ss:$8 sps:$4 sm:$0xff]  }
0x1572   :  { %v2862_v62 = vadd.f32 1e-05, %v2861_v35  ;;  %v5270_v35 = vld [vmem:[#allocation7 + $0x4b4] ss:$8 sps:$4 sm:$0xff]  }
0x1574   :  { %5422 = vrsqrt.f32 %v2862_v62  ;;  %v5273_v62 = vld [vmem:[#allocation7 + $0x574] ss:$8 sps:$4 sm:$0xff]  }
0x157e   :  { %v5423_v14 = vpop.eup %5422 }
0x157f   :  { %v2864_v37 = vmul.f32 %v5423_v14, %v5903_v47  ;;  %v2865_v41 = vmul.f32 %v5423_v14, %v5905_v38  ;;  %v5247_v47 = vld [vmem:[#allocation7 + $0x470] ss:$8 sps:$4 sm:$0xff]   ;;  %v5274_v14 = vld [vmem:[#allocation7 + $0x4c0] ss:$8 sps:$4 sm:$0xff]  }
0x1580   :  { %3284 = vmatpush1.bf16.msra.mxu1 %v5247_v47  ;;  %v2920_v38 = vld [vmem:[#allocation9 + $0x10] ss:$8 sm:$0x3]  ;;  %v5288_v47 = vld [vmem:[#allocation7 + $0x4e4] ss:$8 sps:$4 sm:$0xff]  }
0x1581   :  { %v2878_v34 = vmul.f32 %v2874_v40, %v2865_v41  ;;  %v2877_v43 = vmul.f32 %v2870_v30, %v2864_v37  ;;  %v2925_v48 = vrot.slane %v2920_v38, %v5676_v57  ;;  %v2929_v49 = vrot.slane %v2920_v38, %v5679_v59  ;;  %3716 = vmatprep.subr.bf16.mxu1 %v5255_v23  ;;  %v5276_v40 = vld [vmem:[#allocation7 + $0x4c4] ss:$8 sps:$4 sm:$0xff]   ;;  %v5277_v37 = vld [vmem:[#allocation7 + $0x580] ss:$8 sps:$4 sm:$0xff]   ;;  %v5282_v41 = vld [vmem:[#allocation7 + $0x4d4] ss:$8 sps:$4 sm:$0xff]  }
0x1582   :  { %v5279_v30 = vld [vmem:[#allocation7 + $0x584] ss:$8 sps:$4 sm:$0xff]  }
0x1583   :  { %v2891_v58 = vadd.f32 %v2887_v42, %v2878_v34  ;;  %v2890_v60 = vadd.f32 %v2883_v22, %v2877_v43  ;;  %v5285_v42 = vld [vmem:[#allocation7 + $0x594] ss:$8 sps:$4 sm:$0xff]   ;;  %v5280_v22 = vld [vmem:[#allocation7 + $0x4d0] ss:$8 sps:$4 sm:$0xff]   ;;  %v5291_v38 = vld [vmem:[#allocation7 + $0x5a4] ss:$8 sps:$4 sm:$0xff]  }
0x1584   :  { %v5283_v34 = vld [vmem:[#allocation7 + $0x590] ss:$8 sps:$4 sm:$0xff]  }
0x1585   :  { %v2918_v44 = vpack.c.bf16 %v2891_v58, %v2891_v58  ;;  %v2917_v45 = vpack.c.bf16 %v2890_v60, %v2890_v60 }
0x1587   :  { %4615 = vmatprep.mubr.msk.bf16.mxu0 %vm588_vm1, %v2918_v44 }
0x1588   :  { %3088 = vmatmul.mubr.bf16.vlgmr.msra.gmra.mrb[60].mxu0 %v2917_v45 }
0x1589   :  { %3516 = vmatpush1.bf16.msra.mxu0 %v5250_v18  ;;  %v3305_v18 = vld [vmem:[#allocation9 + $0x14] ss:$8 sm:$0x3] }
0x158a   :  { %3517 = vmatprep.subr.bf16.mxu0 %v5258_v24  ;;  %v3330_v23 = vrot.slane %v3305_v18, %v5676_v57 }
0x158d   :  { %3518 = vmatpush1.bf16.msra.mxu0 %v5256_v26  ;;  %v3347_v26 = vrot.slane %v3307_v19, %v5679_v59 }
0x158e   :  { %3519 = vmatprep.subr.bf16.mxu0 %v5264_v28  ;;  %v3343_v28 = vrot.slane %v3307_v19, %v5676_v57 }
0x1591   :  { %3520 = vmatpush1.bf16.msra.mxu0 %v5262_v31 }
0x1592   :  { %3521 = vmatprep.subr.bf16.mxu0 %v5270_v35 }
0x1595   :  { %3522 = vmatpush1.bf16.msra.mxu0 %v5268_v36 }
0x1596   :  { %3523 = vmatprep.subr.bf16.mxu0 %v5276_v40 }
0x1599   :  { %3524 = vmatpush1.bf16.msra.mxu0 %v5274_v14  ;;  %v3789_v14 = vld [vmem:[#allocation9 + $0x21] ss:$8 sm:$0x3] }
0x159a   :  { %3525 = vmatprep.subr.bf16.mxu0 %v5282_v41 }
0x159d   :  { %3526 = vmatpush1.bf16.msra.mxu0 %v5280_v22 }
0x159e   :  { %3527 = vmatprep.subr.bf16.mxu0 %v5288_v47 }
0x165b   :  { %v3089_v50 = vpop.f32.mrb[60].mxu0 }
0x165c   :  { %v3090_v51 = vadd.f32 %v3089_v50, %v2925_v48  ;;  %v3091_v33 = vpop.f32.mrb[61].mxu0  ;;  %v5286_v48 = vld [vmem:[#allocation7 + $0x4e0] ss:$8 sps:$4 sm:$0xff]   ;;  %v5294_v50 = vld [vmem:[#allocation7 + $0x4f4] ss:$8 sps:$4 sm:$0xff]  }
0x165d   :  { %v3092_v52 = vadd.f32 %v3091_v33, %v2929_v49  ;;  %v3093_v53 = vpop.f32.mrb[62].mxu0  ;;  %v5289_v49 = vld [vmem:[#allocation7 + $0x5a0] ss:$8 sps:$4 sm:$0xff]   ;;  %3528 = vmatpush1.bf16.msra.mxu0 %v5286_v48  ;;  %v5292_v33 = vld [vmem:[#allocation7 + $0x4f0] ss:$8 sps:$4 sm:$0xff]  }
0x165e   :  { %v3096_v54 = vmax.f32 %v3090_v51, 0.0  ;;  %v3094_v6 = vpop.f32.mrb[63].mxu0  ;;  %v5297_v51 = vld [vmem:[#allocation7 + $0x5b4] ss:$8 sps:$4 sm:$0xff]   ;;  %3529 = vmatprep.subr.bf16.mxu0 %v5294_v50  ;;  %v5300_v53 = vld [vmem:[#allocation7 + $0x504] ss:$8 sps:$4 sm:$0xff]  }
0x165f   :  { %v3097_v4 = vmax.f32 %v3092_v52, 0.0  ;;  %v5295_v52 = vld [vmem:[#allocation7 + $0x5b0] ss:$8 sps:$4 sm:$0xff]   ;;  %v5298_v6 = vld [vmem:[#allocation7 + $0x500] ss:$8 sps:$4 sm:$0xff]  }
0x1660   :  { %v3123_v63 = vpack.c.bf16 %v3096_v54, %v3096_v54  ;;  %v5303_v54 = vld [vmem:[#allocation7 + $0x5c4] ss:$8 sps:$4 sm:$0xff]   ;;  %v3380_v48 = vld [vmem:[#allocation9 + $0x17] ss:$8 sm:$0x3] }
0x1661   :  { %v3124_v61 = vpack.c.bf16 %v3097_v4, %v3097_v4  ;;  %3530 = vmatpush1.bf16.msra.mxu0 %v5292_v33  ;;  %v5301_v4 = vld [vmem:[#allocation7 + $0x5c0] ss:$8 sps:$4 sm:$0xff]   ;;  %v3389_v50 = vrot.slane %v3380_v48, %v5679_v59 }
0x1662   :  { %3531 = vmatprep.subr.bf16.mxu0 %v5300_v53 }
0x1663   :  { %4640 = vmatprep.mubr.msk.bf16.mxu1 %vm588_vm1, %v3124_v61  ;;  %v5306_v61 = vld [vmem:[#allocation7 + $0x514] ss:$8 sps:$4 sm:$0xff]  }
0x1664   :  { %3294 = vmatmul.mubr.bf16.vlgmr.msra.gmra.mrb[32].mxu1 %v3123_v63  ;;  %v5309_v63 = vld [vmem:[#allocation7 + $0x5d4] ss:$8 sps:$4 sm:$0xff]  }
0x1665   :  { %3717 = vmatpush1.bf16.msra.mxu1 %v5253_v20  ;;  %3532 = vmatpush1.bf16.msra.mxu0 %v5298_v6  ;;  %v3334_v20 = vrot.slane %v3305_v18, %v5679_v59 }
0x1666   :  { %3718 = vmatprep.subr.bf16.mxu1 %v5261_v25  ;;  %3533 = vmatprep.subr.bf16.mxu0 %v5306_v61 }
0x1669   :  { %3719 = vmatpush1.bf16.msra.mxu1 %v5259_v27  ;;  %3534 = vmatpush1.bf16.msra.mxu0 %v5304_v1 }
0x166a   :  { %3720 = vmatprep.subr.bf16.mxu1 %v5267_v29 }
0x166d   :  { %3721 = vmatpush1.bf16.msra.mxu1 %v5265_v32 }
0x166e   :  { %3722 = vmatprep.subr.bf16.mxu1 %v5273_v62 }
0x1671   :  { %3723 = vmatpush1.bf16.msra.mxu1 %v5271_v39  ;;  %v3770_v39 = vld [vmem:[#allocation9 + $0x22] ss:$8 sm:$0x3] }
0x1672   :  { %3724 = vmatprep.subr.bf16.mxu1 %v5279_v30  ;;  %v3781_v40 = vrot.slane %v3770_v39, %v5679_v59 }
0x1674   :  { %v3785_v30 = vpack.c.bf16 %v3781_v40, %v3781_v40  ;;  %v5328_v40 = vld [vmem:[#allocation7 + $0x620] ss:$8 sps:$4 sm:$0xff]  }
0x1675   :  { %3725 = vmatpush1.bf16.msra.mxu1 %v5277_v37  ;;  %v3584_v37 = vld [vmem:[#allocation9 + $0x20] ss:$8 sm:$0x3] }
0x1676   :  { %3726 = vmatprep.subr.bf16.mxu1 %v5285_v42  ;;  %v3589_v41 = vrot.slane %v3584_v37, %v5676_v57  ;;  %v3593_v42 = vrot.slane %v3584_v37, %v5679_v59  ;;  %v5336_v37 = vld [vmem:[#allocation7 + $0x644] ss:$8 sps:$4 sm:$0xff]  }
0x1679   :  { %3727 = vmatpush1.bf16.msra.mxu1 %v5283_v34 }
0x167a   :  { %3728 = vmatprep.subr.bf16.mxu1 %v5291_v38 }
0x167d   :  { %3729 = vmatpush1.bf16.msra.mxu1 %v5289_v49  ;;  %v3385_v49 = vrot.slane %v3380_v48, %v5676_v57  ;;  %v5355_v48 = vld [vmem:[#allocation7 + $0x6b0] ss:$8 sps:$4 sm:$0xff]  }
0x167e   :  { %3730 = vmatprep.subr.bf16.mxu1 %v5297_v51 }
0x1681   :  { %3731 = vmatpush1.bf16.msra.mxu1 %v5295_v52 }
0x1682   :  { %3732 = vmatprep.subr.bf16.mxu1 %v5303_v54 }
0x1685   :  { %3733 = vmatpush1.bf16.msra.mxu1 %v5301_v4 }
0x1686   :  { %3734 = vmatprep.subr.bf16.mxu1 %v5309_v63 }
0x1737   :  { %v3295_v8 = vpop.f32.mrb[32].mxu1 }
0x1738   :  { %v3296_v9 = vadd.f32 %v3295_v8, %v3131_v2  ;;  %v3297_v10 = vpop.f32.mrb[33].mxu1  ;;  %v5307_v2 = vld [vmem:[#allocation7 + $0x5d0] ss:$8 sps:$4 sm:$0xff]   ;;  %v5315_v8 = vld [vmem:[#allocation7 + $0x5e4] ss:$8 sps:$4 sm:$0xff]  }
0x1739   :  { %v3298_v5 = vadd.f32 %v3297_v10, %v3135_v3  ;;  %v3299_v12 = vpop.f32.mrb[34].mxu1  ;;  %v5312_v3 = vld [vmem:[#allocation7 + $0x524] ss:$8 sps:$4 sm:$0xff]   ;;  %3735 = vmatpush1.bf16.msra.mxu1 %v5307_v2  ;;  %v5313_v10 = vld [vmem:[#allocation7 + $0x5e0] ss:$8 sps:$4 sm:$0xff]  }
0x173a   :  { %v3300_v7 = vpop.f32.mrb[35].mxu1  ;;  %v3302_v15 = vadd.f32 %v3296_v9, %v2890_v60  ;;  %v5310_v9 = vld [vmem:[#allocation7 + $0x520] ss:$8 sps:$4 sm:$0xff]   ;;  %3535 = vmatprep.subr.bf16.mxu0 %v5312_v3  ;;  %3736 = vmatprep.subr.bf16.mxu1 %v5315_v8  ;;  %v5321_v12 = vld [vmem:[#allocation7 + $0x5f4] ss:$8 sps:$4 sm:$0xff]  }
0x173b   :  { %v3303_v13 = vadd.f32 %v3298_v5, %v2891_v58  ;;  %v5318_v5 = vld [vmem:[#allocation7 + $0x534] ss:$8 sps:$4 sm:$0xff]   ;;  %3536 = vmatpush1.bf16.msra.mxu0 %v5310_v9  ;;  %v5316_v7 = vld [vmem:[#allocation7 + $0x530] ss:$8 sps:$4 sm:$0xff]  }
0x173c   :  { %3537 = vmatprep.subr.bf16.mxu0 %v5318_v5 }
0x173d   :  { %v3308_v16 = vsel %vm588_vm1, %v3303_v13, 0.0  ;;  %3737 = vmatpush1.bf16.msra.mxu1 %v5313_v10  ;;  %v3777_v10 = vrot.slane %v3770_v39, %v5676_v57  ;;  %v5330_v39 = vld [vmem:[#allocation7 + $0x624] ss:$8 sps:$4 sm:$0xff]  }
0x173e   :  { %v3309_v17 = vadd.f32 %v3308_v16, %v3302_v15  ;;  %3738 = vmatprep.subr.bf16.mxu1 %v5321_v12 }
0x173f   :  { %3538 = vmatpush1.bf16.msra.mxu0 %v5316_v7  ;;  %v3784_v5 = vpack.c.bf16 %v3777_v10, %v3777_v10  ;;  %v5384_v10 = vld [vmem:[#allocation7 + $0x744] ss:$8 sps:$4 sm:$0xff]  }
0x1740   :  { %3310 = vadd.xlane.f32.xlu0 %v3309_v17 }
0x17cd   :  { %v3311_v43 = vpop.xlane.xlu0 %3310 }
0x17ce   :  { %v3312_v58 = vmul.f32 0.0052083335, %v3311_v43 }
0x17d0   :  { %v5925_v60 = vsub.f32 %v3302_v15, %v3312_v58  ;;  %v5927_v44 = vsub.f32 %v3303_v13, %v3312_v58  ;;  %v5319_v13 = vld [vmem:[#allocation7 + $0x5f0] ss:$8 sps:$4 sm:$0xff]  }
0x17d1   :  { %3739 = vmatpush1.bf16.msra.mxu1 %v5319_v13 }
0x17d2   :  { %v3315_v45 = vmul.f32 %v5925_v60, %v5925_v60  ;;  %v3316_v46 = vmul.f32 %v5927_v44, %v5927_v44 }
0x17d4   :  { %v3317_v11 = vsel %vm588_vm1, %v3316_v46, 0.0 }
0x17d5   :  { %v3318_v21 = vadd.f32 %v3317_v11, %v3315_v45 }
0x17d7   :  { %3319 = vadd.xlane.f32.xlu0 %v3318_v21 }
0x17ed   :  { %3792 = vperm.xlu0 %4859, %v3789_v14   ;;  %v5331_v14 = vld [vmem:[#allocation7 + $0x630] ss:$8 sps:$4 sm:$0xff]  }
0x1864   :  { %v3320_v15 = vpop.xlane.xlu0 %3319 }
0x1865   :  { %v3321_v16 = vmul.f32 0.0052083335, %v3320_v15 }
0x1867   :  { %v3322_v17 = vadd.f32 1e-05, %v3321_v16 }
0x1869   :  { %5424 = vrsqrt.f32 %v3322_v17 }
0x186c   :  { %v3793_v7 = vpop.permute.xlu0 %3792 }
0x186d   :  { %v3798_v13 = vrot.slane %v3793_v7, %v5676_v57  ;;  %v5385_v7 = vld [vmem:[#allocation7 + $0x750] ss:$8 sps:$4 sm:$0xff]  }
0x1873   :  { %v5425_v24 = vpop.eup %5424 }
0x1874   :  { %v3325_v25 = vmul.f32 %v5425_v24, %v5927_v44  ;;  %v3324_v27 = vmul.f32 %v5425_v24, %v5925_v60 }
0x1876   :  { %v3338_v29 = vmul.f32 %v3334_v20, %v3325_v25  ;;  %v3337_v31 = vmul.f32 %v3330_v23, %v3324_v27 }
0x1878   :  { %v3351_v32 = vadd.f32 %v3347_v26, %v3338_v29  ;;  %v3350_v35 = vadd.f32 %v3343_v28, %v3337_v31  ;;  %v5324_v28 = vld [vmem:[#allocation7 + $0x604] ss:$8 sps:$4 sm:$0xff]  }
0x187a   :  { %v3378_v62 = vpack.c.bf16 %v3351_v32, %v3351_v32  ;;  %v3377_v36 = vpack.c.bf16 %v3350_v35, %v3350_v35  ;;  %v5322_v32 = vld [vmem:[#allocation7 + $0x600] ss:$8 sps:$4 sm:$0xff]  }
0x187c   :  { %4665 = vmatprep.mubr.msk.bf16.mxu0 %vm588_vm1, %v3378_v62  ;;  %4690 = vmatprep.mubr.msk.bf16.mxu1 %vm588_vm1, %v3378_v62  ;;  %v3862_v12 = vsel %vm782_vm3, %v3377_v36, 0 }
0x187d   :  { %3548 = vmatmul.mubr.bf16.vlgmr.msra.gmra.mrb[64].mxu0 %v3377_v36  ;;  %3749 = vmatmul.mubr.bf16.vlgmr.msra.gmra.mrb[36].mxu1 %v3377_v36  ;;  %v5325_v36 = vld [vmem:[#allocation7 + $0x610] ss:$8 sps:$4 sm:$0xff]  }
0x187e   :  { %4694 = vmatprep.mubr.msk.bf16.mxu0 %vm588_vm1, %v3785_v30  ;;  %v5333_v30 = vld [vmem:[#allocation7 + $0x634] ss:$8 sps:$4 sm:$0xff]  }
0x1950   :  { %v3549_v22 = vpop.f32.mrb[64].mxu0  ;;  %v3750_v34 = vpop.f32.mrb[36].mxu1 }
0x1951   :  { %v3751_v43 = vadd.f32 %v3750_v34, %v3589_v41  ;;  %v3551_v58 = vpop.f32.mrb[65].mxu0  ;;  %v3752_v60 = vpop.f32.mrb[37].mxu1  ;;  %v3550_v51 = vadd.f32 %v3549_v22, %v3385_v49  ;;  %v5334_v41 = vld [vmem:[#allocation7 + $0x640] ss:$8 sps:$4 sm:$0xff]   ;;  %v5337_v22 = vld [vmem:[#allocation7 + $0x650] ss:$8 sps:$4 sm:$0xff]  }
0x1952   :  { %v3753_v44 = vadd.f32 %v3752_v60, %v3593_v42  ;;  %v3553_v45 = vpop.f32.mrb[66].mxu0  ;;  %v3754_v46 = vpop.f32.mrb[38].mxu1  ;;  %v3552_v33 = vadd.f32 %v3551_v58, %v3389_v50  ;;  %v5339_v42 = vld [vmem:[#allocation7 + $0x654] ss:$8 sps:$4 sm:$0xff]   ;;  %v5342_v34 = vld [vmem:[#allocation7 + $0x664] ss:$8 sps:$4 sm:$0xff]  }
0x1953   :  { %v4691_v11 = vmul.f32 -1.442695, %v3751_v43  ;;  %v3554_v21 = vpop.f32.mrb[67].mxu0  ;;  %v3755_v47 = vpop.f32.mrb[39].mxu1  ;;  %v5340_v43 = vld [vmem:[#allocation7 + $0x660] ss:$8 sps:$4 sm:$0xff]  }
0x1954   :  { %v4692_v38 = vmul.f32 -1.442695, %v3753_v44  ;;  %v5345_v58 = vld [vmem:[#allocation7 + $0x674] ss:$8 sps:$4 sm:$0xff]   ;;  %v5343_v60 = vld [vmem:[#allocation7 + $0x670] ss:$8 sps:$4 sm:$0xff]  }
0x1955   :  { %5426 = vpow2.f32 %v4691_v11  ;;  %v5348_v44 = vld [vmem:[#allocation7 + $0x684] ss:$8 sps:$4 sm:$0xff]   ;;  %v5346_v45 = vld [vmem:[#allocation7 + $0x680] ss:$8 sps:$4 sm:$0xff]   ;;  %v5351_v46 = vld [vmem:[#allocation7 + $0x694] ss:$8 sps:$4 sm:$0xff]  }
0x1956   :  { %5428 = vpow2.f32 %v4692_v38  ;;  %v5349_v11 = vld [vmem:[#allocation7 + $0x690] ss:$8 sps:$4 sm:$0xff]   ;;  %v5354_v21 = vld [vmem:[#allocation7 + $0x6a4] ss:$8 sps:$4 sm:$0xff]   ;;  %v5352_v47 = vld [vmem:[#allocation7 + $0x6a0] ss:$8 sps:$4 sm:$0xff]  }
0x1957   :  { %5430 = vtanh.f32 %v3550_v51  ;;  %v5357_v38 = vld [vmem:[#allocation7 + $0x6b4] ss:$8 sps:$4 sm:$0xff]   ;;  %v5358_v49 = vld [vmem:[#allocation7 + $0x6c0] ss:$8 sps:$4 sm:$0xff]   ;;  %v5360_v50 = vld [vmem:[#allocation7 + $0x6c4] ss:$8 sps:$4 sm:$0xff]  }
0x1958   :  { %5432 = vtanh.f32 %v3552_v33  ;;  %v5363_v51 = vld [vmem:[#allocation7 + $0x6d4] ss:$8 sps:$4 sm:$0xff]   ;;  %4276 = vmatprep.subr.bf16.mxu1 %v5360_v50  ;;  %v5361_v33 = vld [vmem:[#allocation7 + $0x6d0] ss:$8 sps:$4 sm:$0xff]  }
0x1959   :  { %4277 = vmatpush1.bf16.msra.mxu1 %v5358_v49 }
0x195a   :  { %4278 = vmatprep.subr.bf16.mxu1 %v5363_v51 }
0x195d   :  { %4279 = vmatpush1.bf16.msra.mxu1 %v5361_v33 }
0x195f   :  { %v5427_v52 = vpop.eup %5426 }
0x1960   :  { %v5429_v53 = vpop.eup %5428  ;;  %v3763_v54 = vadd.f32 1.0, %v5427_v52  ;;  %v5366_v52 = vld [vmem:[#allocation7 + $0x6e4] ss:$8 sps:$4 sm:$0xff]  }
0x1961   :  { %v3764_v6 = vadd.f32 1.0, %v5429_v53  ;;  %v5431_v4 = vpop.eup %5430  ;;  %v5364_v53 = vld [vmem:[#allocation7 + $0x6e0] ss:$8 sps:$4 sm:$0xff]   ;;  %4280 = vmatprep.subr.bf16.mxu1 %v5366_v52 }
0x1962   :  { %5434 = vrcp.f32 %v3763_v54  ;;  %v5433_v61 = vpop.eup %5432  ;;  %v5369_v54 = vld [vmem:[#allocation7 + $0x6f4] ss:$8 sps:$4 sm:$0xff]   ;;  %4281 = vmatpush1.bf16.msra.mxu1 %v5364_v53 }
0x1963   :  { %5436 = vrcp.f32 %v3764_v6  ;;  %v5367_v6 = vld [vmem:[#allocation7 + $0x6f0] ss:$8 sps:$4 sm:$0xff]   ;;  %4282 = vmatprep.subr.bf16.mxu1 %v5369_v54 }
0x1966   :  { %4283 = vmatpush1.bf16.msra.mxu1 %v5367_v6 }
0x196c   :  { %v5435_v63 = vpop.eup %5434 }
0x196d   :  { %v5437_v1 = vpop.eup %5436  ;;  %v3771_v2 = vmul.f32 %v5435_v63, %v5431_v4  ;;  %v5372_v4 = vld [vmem:[#allocation7 + $0x704] ss:$8 sps:$4 sm:$0xff]   ;;  %v5375_v63 = vld [vmem:[#allocation7 + $0x714] ss:$8 sps:$4 sm:$0xff]  }
0x196e   :  { %v3772_v3 = vmul.f32 %v5437_v1, %v5433_v61  ;;  %v5370_v61 = vld [vmem:[#allocation7 + $0x700] ss:$8 sps:$4 sm:$0xff]   ;;  %4284 = vmatprep.subr.bf16.mxu1 %v5372_v4  ;;  %v5373_v1 = vld [vmem:[#allocation7 + $0x710] ss:$8 sps:$4 sm:$0xff]  }
0x196f   :  { %v3786_v9 = vpack.c.bf16 %v3771_v2, %v3771_v2  ;;  %4285 = vmatpush1.bf16.msra.mxu1 %v5370_v61  ;;  %v5378_v2 = vld [vmem:[#allocation7 + $0x724] ss:$8 sps:$4 sm:$0xff]  }
0x1970   :  { %v3787_v8 = vpack.c.bf16 %v3772_v3, %v3772_v3  ;;  %4286 = vmatprep.subr.bf16.mxu1 %v5375_v63  ;;  %v5376_v3 = vld [vmem:[#allocation7 + $0x720] ss:$8 sps:$4 sm:$0xff]  }
0x1972   :  { %4693 = vmatprep.subr.msk.bf16.mxu0 %vm588_vm1, %v3787_v8  ;;  %v5381_v8 = vld [vmem:[#allocation7 + $0x734] ss:$8 sps:$4 sm:$0xff]  }
0x1973   :  { %3806 = vmatpush1.bf16.xpose.msra.mxu0 %v3786_v9  ;;  %4287 = vmatpush1.bf16.msra.mxu1 %v5373_v1  ;;  %v5379_v9 = vld [vmem:[#allocation7 + $0x730] ss:$8 sps:$4 sm:$0xff]  }
0x1974   :  { %4695 = vmatprep.subr.msk.bf16.mxu0 %vm782_vm3, %v3378_v62  ;;  %v5327_v62 = vld [vmem:[#allocation7 + $0x614] ss:$8 sps:$4 sm:$0xff]   ;;  %4288 = vmatprep.subr.bf16.mxu1 %v5378_v2 }
0x1977   :  { %4289 = vmatpush1.bf16.msra.mxu1 %v5376_v3 }
0x1978   :  { %4290 = vmatprep.subr.bf16.mxu1 %v5381_v8 }
0x197a   :  { %3838 = vmatmul.mubr.bf16.vlgmr.msra.gmra.mrb[68].mxu0 %v3784_v5  ;;  %v5382_v5 = vld [vmem:[#allocation7 + $0x740] ss:$8 sps:$4 sm:$0xff]  }
0x197b   :  { %3867 = vmatpush1.bf16.msra.mxu0 %v3862_v12  ;;  %3898 = vmatprep.mubr.bf16.mxu0 %v5569_v0  ;;  %v5387_v12 = vld [vmem:[#allocation7 + $0x754] ss:$8 sps:$4 sm:$0xff]  }
0x197c   :  { %4070 = vmatprep.subr.bf16.mxu0 %v5324_v28  ;;  %4291 = vmatpush1.bf16.msra.mxu1 %v5379_v9 }
0x197d   :  { %4292 = vmatprep.subr.bf16.mxu1 %v5384_v10 }
0x1980   :  { %4293 = vmatpush1.bf16.msra.mxu1 %v5382_v5 }
0x1981   :  { %4294 = vmatprep.subr.bf16.mxu1 %v5387_v12 }
0x1984   :  { %4295 = vmatpush1.bf16.msra.mxu1 %v5385_v7 }
0x1a4d   :  { %v3839_v15 = vpop.f32.mrb[68].mxu0 }
0x1a4e   :  { %v3840_v16 = vadd.f32 %v3839_v15, %v3798_v13  ;;  %v3841_v17 = vpop.f32.mrb[69].mxu0 }
0x1a4f   :  { %v3842_v18 = vpop.f32.mrb[70].mxu0 }
0x1a50   :  { %v3843_v19 = vpop.f32.mrb[71].mxu0  ;;  %v3846_v20 = vsel %vm3845_vm5, %v3840_v16, -inf }
0x1a51   :  { %3847 = vmax.xlane.f32.xlu1 %v3846_v20  ;;  %v5390_v20 = vld [vmem:[#allocation7 + $0x764] ss:$8 sps:$4 sm:$0xff]  }
0x1a52   :  { %4296 = vmatprep.subr.bf16.mxu1 %v5390_v20 }
0x1ade   :  { %v3848_v23 = vpop.xlane.xlu1 %3847 }
0x1adf   :  { %v3849_v24 = vsub.f32 %v3840_v16, %v3848_v23  ;;  %v5388_v23 = vld [vmem:[#allocation7 + $0x760] ss:$8 sps:$4 sm:$0xff]  }
0x1ae0   :  { %4297 = vmatpush1.bf16.msra.mxu1 %v5388_v23 }
0x1ae1   :  { %v3850_v25 = vmul.f32 1.442695, %v3849_v24  ;;  %v5393_v24 = vld [vmem:[#allocation7 + $0x774] ss:$8 sps:$4 sm:$0xff]  }
0x1ae2   :  { %4298 = vmatprep.subr.bf16.mxu1 %v5393_v24 }
0x1ae3   :  { %5438 = vpow2.f32 %v3850_v25  ;;  %v5391_v25 = vld [vmem:[#allocation7 + $0x770] ss:$8 sps:$4 sm:$0xff]  }
0x1ae4   :  { %4299 = vmatpush1.bf16.msra.mxu1 %v5391_v25 }
0x1aed   :  { %v5439_v26 = vpop.eup %5438 }
0x1aee   :  { %v3852_v27 = vsel %vm3845_vm5, %v5439_v26, 0.0 }
0x1aef   :  { %3853 = vadd.xlane.f32.xlu1 %v3852_v27 }
0x1b7c   :  { %v3854_v0 = vpop.xlane.xlu1 %3853 }
0x1b7d   :  { %5440 = vrcp.f32 %v3854_v0 }
0x1b87   :  { %v5441_v29 = vpop.eup %5440 }
0x1b88   :  { %v3856_v31 = vmul.f32 %v5441_v29, %v5439_v26  ;;  %v3935_v26 = vld [vmem:[#allocation9 + $0x23] ss:$8 sm:$0x3] }
0x1b89   :  { %v4060_v27 = vrot.slane %v3935_v26, %v5676_v57  ;;  %v4064_v28 = vrot.slane %v3935_v26, %v5679_v59 }
0x1b8a   :  { %v3857_v35 = vpack.c.bf16 %v3856_v31, %v3856_v31 }
0x1b8c   :  { %4696 = vmatmul.mubr.msk.bf16.vlgmr.msra.gmra.mrb[72].mxu0 %vm765_vm4, %v3857_v35 }
0x1b8d   :  { %4071 = vmatpush1.bf16.msra.mxu0 %v5322_v32 }
0x1b8e   :  { %4072 = vmatprep.subr.bf16.mxu0 %v5327_v62 }
0x1b91   :  { %4073 = vmatpush1.bf16.msra.mxu0 %v5325_v36 }
0x1b92   :  { %4074 = vmatprep.subr.bf16.mxu0 %v5330_v39 }
0x1b95   :  { %4075 = vmatpush1.bf16.msra.mxu0 %v5328_v40 }
0x1b96   :  { %4076 = vmatprep.subr.bf16.mxu0 %v5333_v30 }
0x1b99   :  { %4077 = vmatpush1.bf16.msra.mxu0 %v5331_v14  ;;  %v4141_v14 = vld [vmem:[#allocation9 + $0x24] ss:$8 sm:$0x3] }
0x1b9a   :  { %4078 = vmatprep.subr.bf16.mxu0 %v5336_v37  ;;  %v5573_v37 = vmov 1966171168  }
0x1b9d   :  { %4079 = vmatpush1.bf16.msra.mxu0 %v5334_v41  ;;  %v4321_v41 = vunpack.c.l.s4 %v5573_v37 }
0x1b9e   :  { %4080 = vmatprep.subr.bf16.mxu0 %v5339_v42  ;;  %v4266_v42 = vrot.slane %v4141_v14, %v5676_v57 }
0x1ba1   :  { %4081 = vmatpush1.bf16.msra.mxu0 %v5337_v22  ;;  %v4270_v22 = vrot.slane %v4141_v14, %v5679_v59 }
0x1ba2   :  { %4082 = vmatprep.subr.bf16.mxu0 %v5342_v34  ;;  %v4322_v34 = vunpack.c.0.s8 %v4321_v41 }
0x1ba5   :  { %4083 = vmatpush1.bf16.msra.mxu0 %v5340_v43 }
0x1ba6   :  { %4084 = vmatprep.subr.bf16.mxu0 %v5345_v58 }
0x1ba9   :  { %4085 = vmatpush1.bf16.msra.mxu0 %v5343_v60 }
0x1baa   :  { %4086 = vmatprep.subr.bf16.mxu0 %v5348_v44 }
0x1bad   :  { %4087 = vmatpush1.bf16.msra.mxu0 %v5346_v45  ;;  %v4325_v45 = vsub.s32 %v4322_v34, %v5673_v56 }
0x1bae   :  { %4088 = vmatprep.subr.bf16.mxu0 %v5351_v46 }
0x1bb1   :  { %4089 = vmatpush1.bf16.msra.mxu0 %v5349_v11 }
0x1bb2   :  { %4090 = vmatprep.subr.bf16.mxu0 %v5354_v21 }
0x1bb5   :  { %4091 = vmatpush1.bf16.msra.mxu0 %v5352_v47 }
0x1bb6   :  { %4092 = vmatprep.subr.bf16.mxu0 %v5357_v38 }
0x1bb9   :  { %4093 = vmatpush1.bf16.msra.mxu0 %v5355_v48 }
0x1c5f   :  { %v3900_v13 = vpop.f32.mrb[72].mxu0 }
0x1c60   :  { %v3902_v15 = vpop.f32.mrb[73].mxu0  ;;  %v3932_v18 = vpack.c.bf16 %v3900_v13, %v3900_v13 }
0x1c61   :  { %v3933_v16 = vpack.c.bf16 %v3902_v15, %v3902_v15  ;;  %v3904_v17 = vpop.f32.mrb[74].mxu0 }
0x1c62   :  { %v3905_v19 = vpop.f32.mrb[75].mxu0 }
0x1c63   :  { %4721 = vmatprep.mubr.msk.bf16.mxu0 %vm588_vm1, %v3933_v16 }
0x1c64   :  { %4103 = vmatmul.mubr.bf16.vlgmr.msra.gmra.mrb[76].mxu0 %v3932_v18 }
0x1d37   :  { %v4104_v0 = vpop.f32.mrb[76].mxu0 }
0x1d38   :  { %v4105_v29 = vadd.f32 %v4104_v0, %v4060_v27  ;;  %v4106_v31 = vpop.f32.mrb[77].mxu0 }
0x1d39   :  { %v4107_v32 = vadd.f32 %v4106_v31, %v4064_v28  ;;  %v4108_v35 = vpop.f32.mrb[78].mxu0 }
0x1d3a   :  { %v4111_v62 = vmax.f32 %v4105_v29, 0.0  ;;  %v4109_v36 = vpop.f32.mrb[79].mxu0 }
0x1d3b   :  { %v4112_v39 = vmax.f32 %v4107_v32, 0.0 }
0x1d3c   :  { %v4138_v30 = vpack.c.bf16 %v4111_v62, %v4111_v62 }
0x1d3d   :  { %v4139_v40 = vpack.c.bf16 %v4112_v39, %v4112_v39 }
0x1d3f   :  { %4746 = vmatprep.mubr.msk.bf16.mxu1 %vm588_vm1, %v4139_v40 }
0x1d40   :  { %4309 = vmatmul.mubr.bf16.vlgmr.msra.gmra.mrb[40].mxu1 %v4138_v30 }
0x1e13   :  { %v4310_v43 = vpop.f32.mrb[40].mxu1 }
0x1e14   :  { %v4311_v58 = vadd.f32 %v4310_v43, %v4266_v42  ;;  %v4312_v60 = vpop.f32.mrb[41].mxu1 }
0x1e15   :  { %v4313_v44 = vadd.f32 %v4312_v60, %v4270_v22  ;;  %v4314_v46 = vpop.f32.mrb[42].mxu1 }
0x1e16   :  { %v4315_v11 = vpop.f32.mrb[43].mxu1 }
0x1e17   :  { %v4319_v21 = vcombine.low %v4311_v58, %v4313_v44 }
0x1e19   :  { %v4326_v47 = vrot.slane %v4319_v21, %v4325_v45 }
0x1e1b   :  { %v4333_v38 = vrot.slane %v4326_v47, %v4325_v45 }
0x1e1d   :  { %4339 = vst.msk [vmem:[%s5972_s6] sm:$0x3] %vm4337_vm6, %v4333_v38 }
0x1e1e   :  { %4344 = vsyncpa [#allocation3], 1 }
0x1e1f   :  { %4345 = vsyncpa [#allocation5], 1 }
0x1e20   :  { %4346 = vsyncpa [#allocation8], 1 }

</bundles_post_ra>
